<compile_context>
chip_gen: v7x
topology: tpu7x:2x2x1
jax: 0.10.0
libtpu: 0.0.40
codegen_flags: <defaults>
</compile_context>

<pallas_src>
import functools

import jax
import jax.numpy as jnp
import numpy as np
from jax.experimental import pallas as pl
from jax.experimental.pallas import tpu as pltpu

EPS = 1e-5
LANE = 128


def _round_up(x, m):
    return (x + m - 1) // m * m


def _pad_last(a, target):
    pad = target - a.shape[-1]
    if pad == 0:
        return a
    return jnp.pad(a, [(0, 0)] * (a.ndim - 1) + [(0, pad)])


def _fold_bn(gamma, beta, mean, var):
    scale = (gamma / jnp.sqrt(var + EPS)).astype(jnp.float32)
    bias = (beta - mean * scale).astype(jnp.float32)
    return scale, bias


# ---------------- fused Pallas kernel ----------------

def bottleneck_kernel(x0_ref, x1_ref, x2_ref, mask_ref, w1_ref, b1_ref,
                      w2_ref, b2_ref, w3_ref, b3_ref, o_ref,
                      h1_ref, o_scr, *, wp, rout, h_dim, w_dim, depth):
    """One (n, d) output plane of the full Bottleneck.

    For each of the 3 depth taps: conv1+bn1+relu on the padded input plane
    (halo rows zeroed by the mask so h1's implicit zero padding is preserved),
    then 9 row-shifted-slice matmuls of conv2 accumulated into a local f32
    value.  Finalize: bn2+relu, conv3+bn3, residual add (read from the centre
    input plane), relu, dense bf16 store.
    """
    d = pl.program_id(1)
    cm = w2_ref.shape[-1]
    acc = jnp.zeros((rout, cm), jnp.float32)

    for kd, x_ref in enumerate((x0_ref, x1_ref, x2_ref)):
        # conv1 (1x1x1, BN scale folded into w1) + bias + relu on the plane.
        g = jnp.dot(x_ref[0, 0], w1_ref[...],
                    preferred_element_type=jnp.float32)
        dv = ((d + kd >= 1) & (d + kd <= depth)).astype(jnp.float32)
        h1_ref[...] = (jnp.maximum(g + b1_ref[...], 0.0)
                       * (mask_ref[...] * dv)).astype(h1_ref.dtype)
        # 9 in-plane taps = static row-shifted slices of the flattened plane.
        for kh in range(3):
            for kw in range(3):
                win = h1_ref[pl.ds(kh * wp + kw, rout), :]
                acc = acc + jnp.dot(win, w2_ref[kd, kh * 3 + kw],
                                    preferred_element_type=jnp.float32)

    # bn2 bias + relu, conv3 (1x1x1) + bn3 bias, residual add + relu.
    h2 = jnp.maximum(acc + b2_ref[...], 0.0).astype(jnp.bfloat16)
    h3 = jnp.dot(h2, w3_ref[...], preferred_element_type=jnp.float32)
    h3 = h3 + b3_ref[...]
    res = x1_ref[0, 0, pl.ds(wp + 1, rout), :].astype(jnp.float32)
    o_scr[...] = jnp.maximum(h3 + res, 0.0)
    # Dense store: drop the 2 junk columns of each spatial row.
    for h in range(h_dim):
        o_ref[0, 0, pl.ds(h * w_dim, w_dim), :] = (
            o_scr[pl.ds(h * wp, w_dim), :].astype(o_ref.dtype))


# ---------------- wrapper ----------------

def bottleneck_forward(x_ncdhw, params):
    N, Cin, D, H, W = x_ncdhw.shape
    Cm = params["conv1_w"].shape[0]
    Cout = params["conv3_w"].shape[0]
    assert Cin == Cout, "stride=1 / downsample=None path requires Cin == Cout"

    Cin_p = _round_up(Cin, LANE)
    Cm_p = _round_up(Cm, LANE)
    Cout_p = _round_up(Cout, LANE)

    Hp, Wp = H + 2, W + 2
    Rout = _round_up(H * Wp, 8)               # accumulator rows (incl. junk cols)
    Rslab = _round_up(2 * Wp + 2 + Rout, 8)   # flattened padded plane + shift slack
    HWp = _round_up(H * W, 8)                 # dense output rows per plane

    # ---- layout glue: NDHWC bf16, channel pad, D/H/W halo, flatten planes ----
    x_ndhwc = jnp.transpose(x_ncdhw.astype(jnp.bfloat16), (0, 2, 3, 4, 1))
    x_cp = _pad_last(x_ndhwc, Cin_p)                               # (N,D,H,W,Cp)
    x_halo = jnp.pad(x_cp, ((0, 0), (1, 1), (1, 1), (1, 1), (0, 0)))
    x_slabs = x_halo.reshape(N, D + 2, Hp * Wp, Cin_p)
    x_slabs = jnp.pad(x_slabs, ((0, 0), (0, 0), (0, Rslab - Hp * Wp), (0, 0)))

    # spatial-validity mask for the flattened padded plane (host constant)
    rr = np.arange(Rslab)
    hh, ww = rr // Wp, rr % Wp
    valid = (hh >= 1) & (hh <= H) & (ww >= 1) & (ww <= W) & (rr < Hp * Wp)
    mask = jnp.asarray(valid.astype(np.float32).reshape(Rslab, 1))

    # ---- fold BN scales into conv weights (tiny trace-time work) ----
    s1, b1 = _fold_bn(*params["bn1"])
    s2, b2 = _fold_bn(*params["bn2"])
    s3, b3 = _fold_bn(*params["bn3"])

    w1 = params["conv1_w"][:, :, 0, 0, 0] * s1[:, None]            # (Cm, Cin)
    w1 = jnp.transpose(w1, (1, 0))                                 # (Cin, Cm)
    w1 = _pad_last(jnp.pad(w1, ((0, Cin_p - Cin), (0, 0))), Cm_p).astype(jnp.bfloat16)
    b1 = _pad_last(b1.reshape(1, Cm), Cm_p)

    w2 = params["conv2_w"] * s2[:, None, None, None, None]         # (Cm,Cm,3,3,3)
    w2 = jnp.transpose(w2, (2, 3, 4, 1, 0)).reshape(3, 9, Cm, Cm)  # (kd,kh*3+kw,in,out)
    w2 = jnp.pad(w2, ((0, 0), (0, 0), (0, Cm_p - Cm), (0, Cm_p - Cm)))
    w2 = w2.astype(jnp.bfloat16)
    b2 = _pad_last(b2.reshape(1, Cm), Cm_p)

    w3 = params["conv3_w"][:, :, 0, 0, 0] * s3[:, None]            # (Cout, Cm)
    w3 = jnp.transpose(w3, (1, 0))                                 # (Cm, Cout)
    w3 = _pad_last(jnp.pad(w3, ((0, Cm_p - Cm), (0, 0))), Cout_p).astype(jnp.bfloat16)
    b3 = _pad_last(b3.reshape(1, Cout), Cout_p)

    kernel = functools.partial(bottleneck_kernel, wp=Wp, rout=Rout,
                               h_dim=H, w_dim=W, depth=D)
    ce = pl.CostEstimate(
        flops=N * D * 2 * (3 * Rslab * Cin_p * Cm_p
                           + 27 * Rout * Cm_p * Cm_p
                           + Rout * Cm_p * Cout_p),
        transcendentals=0,
        bytes_accessed=(N * D * (3 * Rslab * Cin_p + HWp * Cout_p) * 2
                        + (Cin_p * Cm_p + 27 * Cm_p * Cm_p + Cm_p * Cout_p) * 2))

    out_dense = pl.pallas_call(
        kernel,
        out_shape=jax.ShapeDtypeStruct((N, D, HWp, Cout_p), jnp.bfloat16),
        grid_spec=pltpu.PrefetchScalarGridSpec(
            num_scalar_prefetch=0,
            grid=(N, D),
            in_specs=[
                pl.BlockSpec((1, 1, Rslab, Cin_p), lambda n, d: (n, d, 0, 0)),
                pl.BlockSpec((1, 1, Rslab, Cin_p), lambda n, d: (n, d + 1, 0, 0)),
                pl.BlockSpec((1, 1, Rslab, Cin_p), lambda n, d: (n, d + 2, 0, 0)),
                pl.BlockSpec((Rslab, 1), lambda n, d: (0, 0)),            # mask
                pl.BlockSpec((Cin_p, Cm_p), lambda n, d: (0, 0)),         # w1
                pl.BlockSpec((1, Cm_p), lambda n, d: (0, 0)),             # b1
                pl.BlockSpec((3, 9, Cm_p, Cm_p),
                             lambda n, d: (0, 0, 0, 0)),                  # w2 resident
                pl.BlockSpec((1, Cm_p), lambda n, d: (0, 0)),             # b2
                pl.BlockSpec((Cm_p, Cout_p), lambda n, d: (0, 0)),        # w3
                pl.BlockSpec((1, Cout_p), lambda n, d: (0, 0)),           # b3
            ],
            out_specs=pl.BlockSpec((1, 1, HWp, Cout_p),
                                   lambda n, d: (n, d, 0, 0)),
            scratch_shapes=[pltpu.VMEM((Rslab, Cm_p), jnp.bfloat16),
                            pltpu.VMEM((Rout, Cout_p), jnp.float32)]),
        compiler_params=pltpu.CompilerParams(
            dimension_semantics=("parallel", "parallel"),
            vmem_limit_bytes=32 * 1024 * 1024),
        cost_estimate=ce,
    )(x_slabs, x_slabs, x_slabs, mask, w1, b1, w2, b2, w3, b3)

    out = out_dense[:, :, :H * W, :Cout].reshape(N, D, H, W, Cout)
    return jnp.transpose(out, (0, 4, 1, 2, 3)).astype(jnp.float32)   # NCDHW


# ---------------- pure-JAX reference (verification only) ----------------

def reference_forward(x_ncdhw, params):
    x = jnp.transpose(x_ncdhw, (0, 2, 3, 4, 1)).astype(jnp.float32)

    def conv(h, w_oidhw, padding):
        w = jnp.transpose(w_oidhw, (2, 3, 4, 1, 0)).astype(jnp.float32)  # DHWIO
        return jax.lax.conv_general_dilated(
            h, w, (1, 1, 1), padding,
            dimension_numbers=("NDHWC", "DHWIO", "NDHWC"))

    def bn(h, g, b, m, v):
        return (h - m) / jnp.sqrt(v + EPS) * g + b

    h = jax.nn.relu(bn(conv(x, params["conv1_w"], "VALID"), *params["bn1"]))
    h = jax.nn.relu(bn(conv(h, params["conv2_w"], "SAME"), *params["bn2"]))
    h = bn(conv(h, params["conv3_w"], "VALID"), *params["bn3"])
    h = jax.nn.relu(h + x)
    return jnp.transpose(h, (0, 4, 1, 2, 3))


# ---------------- deterministic parameter construction ----------------

def make_params(key, in_channels, channels, expansion=4):
    ks = jax.random.split(key, 6)
    cm, cout = channels, channels * expansion

    def bn_params(k, c):
        k1, k2, k3, k4 = jax.random.split(k, 4)
        gamma = 0.5 + jax.random.uniform(k1, (c,), jnp.float32)
        beta = 0.1 * jax.random.normal(k2, (c,), jnp.float32)
        mean = 0.1 * jax.random.normal(k3, (c,), jnp.float32)
        var = 0.5 + jax.random.uniform(k4, (c,), jnp.float32)
        return (gamma, beta, mean, var)

    return {
        "conv1_w": 0.1 * jax.random.normal(ks[0], (cm, in_channels, 1, 1, 1), jnp.float32),
        "bn1": bn_params(ks[1], cm),
        "conv2_w": 0.1 * jax.random.normal(ks[2], (cm, cm, 3, 3, 3), jnp.float32),
        "bn2": bn_params(ks[3], cm),
        "conv3_w": 0.1 * jax.random.normal(ks[4], (cout, cm, 1, 1, 1), jnp.float32),
        "bn3": bn_params(ks[5], cout),
    }


if __name__ == "__main__":
    key = jax.random.PRNGKey(0)
    kx, kp = jax.random.split(key)

    channels = 4
    expansion = 4
    in_channels = channels * expansion  # residual add requires Cin == Cout
    N, D, H, W = 2, 8, 8, 8

    x = jax.random.normal(kx, (N, in_channels, D, H, W), jnp.float32)  # NCDHW
    params = make_params(kp, in_channels, channels, expansion)

    fwd = jax.jit(bottleneck_forward)
    out = jax.block_until_ready(fwd(x, params))
    ref = jax.block_until_ready(reference_forward(x, params))

    assert out.shape == (N, channels * expansion, D, H, W), out.shape
    # bf16 matmul operands / bf16 residual & output (f32 MXU accumulation)
    # -> expect ~1e-2 relative error.
    np.testing.assert_allclose(np.asarray(out), np.asarray(ref),
                               rtol=5e-2, atol=5e-2)
    print("KERNEL_OK")
</pallas_src>

<mosaic_0001>
module attributes {stable_mosaic.version = 11 : i64} {
  func.func @bottleneck_kernel(%arg0: i32, %arg1: i32, %arg2: memref<1x1x104x128xbf16, #tpu.memory_space<vmem>>, %arg3: memref<1x1x104x128xbf16, #tpu.memory_space<vmem>>, %arg4: memref<1x1x104x128xbf16, #tpu.memory_space<vmem>>, %arg5: memref<104x1xf32, #tpu.memory_space<vmem>>, %arg6: memref<128x128xbf16, #tpu.memory_space<vmem>>, %arg7: memref<1x128xf32, #tpu.memory_space<vmem>>, %arg8: memref<3x9x128x128xbf16, #tpu.memory_space<vmem>>, %arg9: memref<1x128xf32, #tpu.memory_space<vmem>>, %arg10: memref<128x128xbf16, #tpu.memory_space<vmem>>, %arg11: memref<1x128xf32, #tpu.memory_space<vmem>>, %arg12: memref<1x1x64x128xbf16, #tpu.memory_space<vmem>>, %arg13: memref<104x128xbf16, #tpu.memory_space<vmem>>, %arg14: memref<80x128xf32, #tpu.memory_space<vmem>>) attributes {dimension_semantics = [#tpu.dimension_semantics<parallel>, #tpu.dimension_semantics<parallel>], iteration_bounds = array<i64: 2, 8>, scalar_prefetch = 0 : i64, scratch_operands = 2 : i64, tpu.core_type = #tpu.core_type<tc>, window_params = [{transform_indices = @transform_0, window_bounds = array<i64: 1, 1, 104, 128>}, {transform_indices = @transform_1, window_bounds = array<i64: 1, 1, 104, 128>}, {transform_indices = @transform_2, window_bounds = array<i64: 1, 1, 104, 128>}, {pipeline_mode = #tpu.pipeline_mode<synchronous>, transform_indices = @transform_3, window_bounds = array<i64: 104, 1>}, {pipeline_mode = #tpu.pipeline_mode<synchronous>, transform_indices = @transform_4, window_bounds = array<i64: 128, 128>}, {pipeline_mode = #tpu.pipeline_mode<synchronous>, transform_indices = @transform_5, window_bounds = array<i64: 1, 128>}, {pipeline_mode = #tpu.pipeline_mode<synchronous>, transform_indices = @transform_6, window_bounds = array<i64: 3, 9, 128, 128>}, {pipeline_mode = #tpu.pipeline_mode<synchronous>, transform_indices = @transform_7, window_bounds = array<i64: 1, 128>}, {pipeline_mode = #tpu.pipeline_mode<synchronous>, transform_indices = @transform_8, window_bounds = array<i64: 128, 128>}, {pipeline_mode = #tpu.pipeline_mode<synchronous>, transform_indices = @transform_9, window_bounds = array<i64: 1, 128>}, {transform_indices = @transform_10, window_bounds = array<i64: 1, 1, 64, 128>}]} {
    %cst = arith.constant 0.000000e+00 : f32
    %0 = vector.broadcast %cst : f32 to vector<80x128xf32>
    %c0 = arith.constant 0 : index
    %c0_0 = arith.constant 0 : index
    %c0_1 = arith.constant 0 : index
    %c0_2 = arith.constant 0 : index
    %1 = vector.load %arg2[%c0, %c0_0, %c0_1, %c0_2] : memref<1x1x104x128xbf16, #tpu.memory_space<vmem>>, vector<1x1x104x128xbf16>
    %2 = vector.shape_cast %1 : vector<1x1x104x128xbf16> to vector<104x128xbf16>
    %c0_3 = arith.constant 0 : index
    %c0_4 = arith.constant 0 : index
    %3 = vector.load %arg6[%c0_3, %c0_4] : memref<128x128xbf16, #tpu.memory_space<vmem>>, vector<128x128xbf16>
    %cst_5 = arith.constant dense<0.000000e+00> : vector<104x128xf32>
    %4 = tpu.matmul %2, %3, %cst_5 {dimension_numbers = #tpu.dot_dimension_numbers<[1], [0], [0], [1], [0, 0, 1, 1], [], []>} : vector<104x128xbf16>, vector<128x128xbf16>, vector<104x128xf32> -> vector<104x128xf32>
    %c0_i32 = arith.constant 0 : i32
    %5 = arith.addi %arg1, %c0_i32 : i32
    %c1_i32 = arith.constant 1 : i32
    %6 = arith.cmpi sge, %5, %c1_i32 : i32
    %c0_i32_6 = arith.constant 0 : i32
    %7 = arith.addi %arg1, %c0_i32_6 : i32
    %c8_i32 = arith.constant 8 : i32
    %8 = arith.cmpi sle, %7, %c8_i32 : i32
    %9 = arith.andi %6, %8 : i1
    %10 = arith.extui %9 : i1 to i32
    %11 = arith.sitofp %10 : i32 to f32
    %c0_7 = arith.constant 0 : index
    %c0_8 = arith.constant 0 : index
    %12 = vector.load %arg7[%c0_7, %c0_8] : memref<1x128xf32, #tpu.memory_space<vmem>>, vector<1x128xf32>
    %13 = vector.broadcast %12 : vector<1x128xf32> to vector<104x128xf32>
    %14 = arith.addf %4, %13 : vector<104x128xf32>
    %cst_9 = arith.constant 0.000000e+00 : f32
    %15 = vector.broadcast %cst_9 : f32 to vector<104x128xf32>
    %16 = arith.maximumf %14, %15 : vector<104x128xf32>
    %c0_10 = arith.constant 0 : index
    %c0_11 = arith.constant 0 : index
    %17 = vector.load %arg5[%c0_10, %c0_11] : memref<104x1xf32, #tpu.memory_space<vmem>>, vector<104x1xf32>
    %18 = vector.broadcast %11 : f32 to vector<104x1xf32>
    %19 = arith.mulf %17, %18 : vector<104x1xf32>
    %20 = vector.broadcast %19 : vector<104x1xf32> to vector<104x128xf32>
    %21 = arith.mulf %16, %20 : vector<104x128xf32>
    %22 = arith.truncf %21 : vector<104x128xf32> to vector<104x128xbf16>
    %c0_12 = arith.constant 0 : index
    %c0_13 = arith.constant 0 : index
    %23 = vector.load %arg13[%c0_12, %c0_13] : memref<104x128xbf16, #tpu.memory_space<vmem>>, vector<104x128xbf16>
    tpu.vector_store %arg13[%c0_12, %c0_13], %22 {strides = array<i32>} : memref<104x128xbf16, #tpu.memory_space<vmem>>, vector<104x128xbf16>,
    %c0_14 = arith.constant 0 : index
    %c0_15 = arith.constant 0 : index
    %24 = vector.load %arg13[%c0_14, %c0_15] : memref<104x128xbf16, #tpu.memory_space<vmem>>, vector<80x128xbf16>
    %c0_16 = arith.constant 0 : index
    %c0_17 = arith.constant 0 : index
    %c0_18 = arith.constant 0 : index
    %c0_19 = arith.constant 0 : index
    %25 = vector.load %arg8[%c0_16, %c0_17, %c0_18, %c0_19] : memref<3x9x128x128xbf16, #tpu.memory_space<vmem>>, vector<1x1x128x128xbf16>
    %26 = vector.shape_cast %25 : vector<1x1x128x128xbf16> to vector<128x128xbf16>
    %cst_20 = arith.constant dense<0.000000e+00> : vector<80x128xf32>
    %27 = tpu.matmul %24, %26, %cst_20 {dimension_numbers = #tpu.dot_dimension_numbers<[1], [0], [0], [1], [0, 0, 1, 1], [], []>} : vector<80x128xbf16>, vector<128x128xbf16>, vector<80x128xf32> -> vector<80x128xf32>
    %28 = arith.addf %0, %27 : vector<80x128xf32>
    %c1 = arith.constant 1 : index
    %c0_21 = arith.constant 0 : index
    %29 = vector.load %arg13[%c1, %c0_21] : memref<104x128xbf16, #tpu.memory_space<vmem>>, vector<80x128xbf16>
    %c0_22 = arith.constant 0 : index
    %c1_23 = arith.constant 1 : index
    %c0_24 = arith.constant 0 : index
    %c0_25 = arith.constant 0 : index
    %30 = vector.load %arg8[%c0_22, %c1_23, %c0_24, %c0_25] : memref<3x9x128x128xbf16, #tpu.memory_space<vmem>>, vector<1x1x128x128xbf16>
    %31 = vector.shape_cast %30 : vector<1x1x128x128xbf16> to vector<128x128xbf16>
    %cst_26 = arith.constant dense<0.000000e+00> : vector<80x128xf32>
    %32 = tpu.matmul %29, %31, %cst_26 {dimension_numbers = #tpu.dot_dimension_numbers<[1], [0], [0], [1], [0, 0, 1, 1], [], []>} : vector<80x128xbf16>, vector<128x128xbf16>, vector<80x128xf32> -> vector<80x128xf32>
    %33 = arith.addf %28, %32 : vector<80x128xf32>
    %c2 = arith.constant 2 : index
    %c0_27 = arith.constant 0 : index
    %34 = vector.load %arg13[%c2, %c0_27] : memref<104x128xbf16, #tpu.memory_space<vmem>>, vector<80x128xbf16>
    %c0_28 = arith.constant 0 : index
    %c2_29 = arith.constant 2 : index
    %c0_30 = arith.constant 0 : index
    %c0_31 = arith.constant 0 : index
    %35 = vector.load %arg8[%c0_28, %c2_29, %c0_30, %c0_31] : memref<3x9x128x128xbf16, #tpu.memory_space<vmem>>, vector<1x1x128x128xbf16>
    %36 = vector.shape_cast %35 : vector<1x1x128x128xbf16> to vector<128x128xbf16>
    %cst_32 = arith.constant dense<0.000000e+00> : vector<80x128xf32>
    %37 = tpu.matmul %34, %36, %cst_32 {dimension_numbers = #tpu.dot_dimension_numbers<[1], [0], [0], [1], [0, 0, 1, 1], [], []>} : vector<80x128xbf16>, vector<128x128xbf16>, vector<80x128xf32> -> vector<80x128xf32>
    %38 = arith.addf %33, %37 : vector<80x128xf32>
    %c10 = arith.constant 10 : index
    %c0_33 = arith.constant 0 : index
    %39 = vector.load %arg13[%c10, %c0_33] : memref<104x128xbf16, #tpu.memory_space<vmem>>, vector<80x128xbf16>
    %c0_34 = arith.constant 0 : index
    %c3 = arith.constant 3 : index
    %c0_35 = arith.constant 0 : index
    %c0_36 = arith.constant 0 : index
    %40 = vector.load %arg8[%c0_34, %c3, %c0_35, %c0_36] : memref<3x9x128x128xbf16, #tpu.memory_space<vmem>>, vector<1x1x128x128xbf16>
    %41 = vector.shape_cast %40 : vector<1x1x128x128xbf16> to vector<128x128xbf16>
    %cst_37 = arith.constant dense<0.000000e+00> : vector<80x128xf32>
    %42 = tpu.matmul %39, %41, %cst_37 {dimension_numbers = #tpu.dot_dimension_numbers<[1], [0], [0], [1], [0, 0, 1, 1], [], []>} : vector<80x128xbf16>, vector<128x128xbf16>, vector<80x128xf32> -> vector<80x128xf32>
    %43 = arith.addf %38, %42 : vector<80x128xf32>
    %c11 = arith.constant 11 : index
    %c0_38 = arith.constant 0 : index
    %44 = vector.load %arg13[%c11, %c0_38] : memref<104x128xbf16, #tpu.memory_space<vmem>>, vector<80x128xbf16>
    %c0_39 = arith.constant 0 : index
    %c4 = arith.constant 4 : index
    %c0_40 = arith.constant 0 : index
    %c0_41 = arith.constant 0 : index
    %45 = vector.load %arg8[%c0_39, %c4, %c0_40, %c0_41] : memref<3x9x128x128xbf16, #tpu.memory_space<vmem>>, vector<1x1x128x128xbf16>
    %46 = vector.shape_cast %45 : vector<1x1x128x128xbf16> to vector<128x128xbf16>
    %cst_42 = arith.constant dense<0.000000e+00> : vector<80x128xf32>
    %47 = tpu.matmul %44, %46, %cst_42 {dimension_numbers = #tpu.dot_dimension_numbers<[1], [0], [0], [1], [0, 0, 1, 1], [], []>} : vector<80x128xbf16>, vector<128x128xbf16>, vector<80x128xf32> -> vector<80x128xf32>
    %48 = arith.addf %43, %47 : vector<80x128xf32>
    %c12 = arith.constant 12 : index
    %c0_43 = arith.constant 0 : index
    %49 = vector.load %arg13[%c12, %c0_43] : memref<104x128xbf16, #tpu.memory_space<vmem>>, vector<80x128xbf16>
    %c0_44 = arith.constant 0 : index
    %c5 = arith.constant 5 : index
    %c0_45 = arith.constant 0 : index
    %c0_46 = arith.constant 0 : index
    %50 = vector.load %arg8[%c0_44, %c5, %c0_45, %c0_46] : memref<3x9x128x128xbf16, #tpu.memory_space<vmem>>, vector<1x1x128x128xbf16>
    %51 = vector.shape_cast %50 : vector<1x1x128x128xbf16> to vector<128x128xbf16>
    %cst_47 = arith.constant dense<0.000000e+00> : vector<80x128xf32>
    %52 = tpu.matmul %49, %51, %cst_47 {dimension_numbers = #tpu.dot_dimension_numbers<[1], [0], [0], [1], [0, 0, 1, 1], [], []>} : vector<80x128xbf16>, vector<128x128xbf16>, vector<80x128xf32> -> vector<80x128xf32>
    %53 = arith.addf %48, %52 : vector<80x128xf32>
    %c20 = arith.constant 20 : index
    %c0_48 = arith.constant 0 : index
    %54 = vector.load %arg13[%c20, %c0_48] : memref<104x128xbf16, #tpu.memory_space<vmem>>, vector<80x128xbf16>
    %c0_49 = arith.constant 0 : index
    %c6 = arith.constant 6 : index
    %c0_50 = arith.constant 0 : index
    %c0_51 = arith.constant 0 : index
    %55 = vector.load %arg8[%c0_49, %c6, %c0_50, %c0_51] : memref<3x9x128x128xbf16, #tpu.memory_space<vmem>>, vector<1x1x128x128xbf16>
    %56 = vector.shape_cast %55 : vector<1x1x128x128xbf16> to vector<128x128xbf16>
    %cst_52 = arith.constant dense<0.000000e+00> : vector<80x128xf32>
    %57 = tpu.matmul %54, %56, %cst_52 {dimension_numbers = #tpu.dot_dimension_numbers<[1], [0], [0], [1], [0, 0, 1, 1], [], []>} : vector<80x128xbf16>, vector<128x128xbf16>, vector<80x128xf32> -> vector<80x128xf32>
    %58 = arith.addf %53, %57 : vector<80x128xf32>
    %c21 = arith.constant 21 : index
    %c0_53 = arith.constant 0 : index
    %59 = vector.load %arg13[%c21, %c0_53] : memref<104x128xbf16, #tpu.memory_space<vmem>>, vector<80x128xbf16>
    %c0_54 = arith.constant 0 : index
    %c7 = arith.constant 7 : index
    %c0_55 = arith.constant 0 : index
    %c0_56 = arith.constant 0 : index
    %60 = vector.load %arg8[%c0_54, %c7, %c0_55, %c0_56] : memref<3x9x128x128xbf16, #tpu.memory_space<vmem>>, vector<1x1x128x128xbf16>
    %61 = vector.shape_cast %60 : vector<1x1x128x128xbf16> to vector<128x128xbf16>
    %cst_57 = arith.constant dense<0.000000e+00> : vector<80x128xf32>
    %62 = tpu.matmul %59, %61, %cst_57 {dimension_numbers = #tpu.dot_dimension_numbers<[1], [0], [0], [1], [0, 0, 1, 1], [], []>} : vector<80x128xbf16>, vector<128x128xbf16>, vector<80x128xf32> -> vector<80x128xf32>
    %63 = arith.addf %58, %62 : vector<80x128xf32>
    %c22 = arith.constant 22 : index
    %c0_58 = arith.constant 0 : index
    %64 = vector.load %arg13[%c22, %c0_58] : memref<104x128xbf16, #tpu.memory_space<vmem>>, vector<80x128xbf16>
    %c0_59 = arith.constant 0 : index
    %c8 = arith.constant 8 : index
    %c0_60 = arith.constant 0 : index
    %c0_61 = arith.constant 0 : index
    %65 = vector.load %arg8[%c0_59, %c8, %c0_60, %c0_61] : memref<3x9x128x128xbf16, #tpu.memory_space<vmem>>, vector<1x1x128x128xbf16>
    %66 = vector.shape_cast %65 : vector<1x1x128x128xbf16> to vector<128x128xbf16>
    %cst_62 = arith.constant dense<0.000000e+00> : vector<80x128xf32>
    %67 = tpu.matmul %64, %66, %cst_62 {dimension_numbers = #tpu.dot_dimension_numbers<[1], [0], [0], [1], [0, 0, 1, 1], [], []>} : vector<80x128xbf16>, vector<128x128xbf16>, vector<80x128xf32> -> vector<80x128xf32>
    %68 = arith.addf %63, %67 : vector<80x128xf32>
    %c0_63 = arith.constant 0 : index
    %c0_64 = arith.constant 0 : index
    %c0_65 = arith.constant 0 : index
    %c0_66 = arith.constant 0 : index
    %69 = vector.load %arg3[%c0_63, %c0_64, %c0_65, %c0_66] : memref<1x1x104x128xbf16, #tpu.memory_space<vmem>>, vector<1x1x104x128xbf16>
    %70 = vector.shape_cast %69 : vector<1x1x104x128xbf16> to vector<104x128xbf16>
    %c0_67 = arith.constant 0 : index
    %c0_68 = arith.constant 0 : index
    %71 = vector.load %arg6[%c0_67, %c0_68] : memref<128x128xbf16, #tpu.memory_space<vmem>>, vector<128x128xbf16>
    %cst_69 = arith.constant dense<0.000000e+00> : vector<104x128xf32>
    %72 = tpu.matmul %70, %71, %cst_69 {dimension_numbers = #tpu.dot_dimension_numbers<[1], [0], [0], [1], [0, 0, 1, 1], [], []>} : vector<104x128xbf16>, vector<128x128xbf16>, vector<104x128xf32> -> vector<104x128xf32>
    %c1_i32_70 = arith.constant 1 : i32
    %73 = arith.addi %arg1, %c1_i32_70 : i32
    %c1_i32_71 = arith.constant 1 : i32
    %74 = arith.cmpi sge, %73, %c1_i32_71 : i32
    %c1_i32_72 = arith.constant 1 : i32
    %75 = arith.addi %arg1, %c1_i32_72 : i32
    %c8_i32_73 = arith.constant 8 : i32
    %76 = arith.cmpi sle, %75, %c8_i32_73 : i32
    %77 = arith.andi %74, %76 : i1
    %78 = arith.extui %77 : i1 to i32
    %79 = arith.sitofp %78 : i32 to f32
    %c0_74 = arith.constant 0 : index
    %c0_75 = arith.constant 0 : index
    %80 = vector.load %arg7[%c0_74, %c0_75] : memref<1x128xf32, #tpu.memory_space<vmem>>, vector<1x128xf32>
    %81 = vector.broadcast %80 : vector<1x128xf32> to vector<104x128xf32>
    %82 = arith.addf %72, %81 : vector<104x128xf32>
    %cst_76 = arith.constant 0.000000e+00 : f32
    %83 = vector.broadcast %cst_76 : f32 to vector<104x128xf32>
    %84 = arith.maximumf %82, %83 : vector<104x128xf32>
    %c0_77 = arith.constant 0 : index
    %c0_78 = arith.constant 0 : index
    %85 = vector.load %arg5[%c0_77, %c0_78] : memref<104x1xf32, #tpu.memory_space<vmem>>, vector<104x1xf32>
    %86 = vector.broadcast %79 : f32 to vector<104x1xf32>
    %87 = arith.mulf %85, %86 : vector<104x1xf32>
    %88 = vector.broadcast %87 : vector<104x1xf32> to vector<104x128xf32>
    %89 = arith.mulf %84, %88 : vector<104x128xf32>
    %90 = arith.truncf %89 : vector<104x128xf32> to vector<104x128xbf16>
    %c0_79 = arith.constant 0 : index
    %c0_80 = arith.constant 0 : index
    %91 = vector.load %arg13[%c0_79, %c0_80] : memref<104x128xbf16, #tpu.memory_space<vmem>>, vector<104x128xbf16>
    tpu.vector_store %arg13[%c0_79, %c0_80], %90 {strides = array<i32>} : memref<104x128xbf16, #tpu.memory_space<vmem>>, vector<104x128xbf16>,
    %c0_81 = arith.constant 0 : index
    %c0_82 = arith.constant 0 : index
    %92 = vector.load %arg13[%c0_81, %c0_82] : memref<104x128xbf16, #tpu.memory_space<vmem>>, vector<80x128xbf16>
    %c1_83 = arith.constant 1 : index
    %c0_84 = arith.constant 0 : index
    %c0_85 = arith.constant 0 : index
    %c0_86 = arith.constant 0 : index
    %93 = vector.load %arg8[%c1_83, %c0_84, %c0_85, %c0_86] : memref<3x9x128x128xbf16, #tpu.memory_space<vmem>>, vector<1x1x128x128xbf16>
    %94 = vector.shape_cast %93 : vector<1x1x128x128xbf16> to vector<128x128xbf16>
    %cst_87 = arith.constant dense<0.000000e+00> : vector<80x128xf32>
    %95 = tpu.matmul %92, %94, %cst_87 {dimension_numbers = #tpu.dot_dimension_numbers<[1], [0], [0], [1], [0, 0, 1, 1], [], []>} : vector<80x128xbf16>, vector<128x128xbf16>, vector<80x128xf32> -> vector<80x128xf32>
    %96 = arith.addf %68, %95 : vector<80x128xf32>
    %c1_88 = arith.constant 1 : index
    %c0_89 = arith.constant 0 : index
    %97 = vector.load %arg13[%c1_88, %c0_89] : memref<104x128xbf16, #tpu.memory_space<vmem>>, vector<80x128xbf16>
    %c1_90 = arith.constant 1 : index
    %c1_91 = arith.constant 1 : index
    %c0_92 = arith.constant 0 : index
    %c0_93 = arith.constant 0 : index
    %98 = vector.load %arg8[%c1_90, %c1_91, %c0_92, %c0_93] : memref<3x9x128x128xbf16, #tpu.memory_space<vmem>>, vector<1x1x128x128xbf16>
    %99 = vector.shape_cast %98 : vector<1x1x128x128xbf16> to vector<128x128xbf16>
    %cst_94 = arith.constant dense<0.000000e+00> : vector<80x128xf32>
    %100 = tpu.matmul %97, %99, %cst_94 {dimension_numbers = #tpu.dot_dimension_numbers<[1], [0], [0], [1], [0, 0, 1, 1], [], []>} : vector<80x128xbf16>, vector<128x128xbf16>, vector<80x128xf32> -> vector<80x128xf32>
    %101 = arith.addf %96, %100 : vector<80x128xf32>
    %c2_95 = arith.constant 2 : index
    %c0_96 = arith.constant 0 : index
    %102 = vector.load %arg13[%c2_95, %c0_96] : memref<104x128xbf16, #tpu.memory_space<vmem>>, vector<80x128xbf16>
    %c1_97 = arith.constant 1 : index
    %c2_98 = arith.constant 2 : index
    %c0_99 = arith.constant 0 : index
    %c0_100 = arith.constant 0 : index
    %103 = vector.load %arg8[%c1_97, %c2_98, %c0_99, %c0_100] : memref<3x9x128x128xbf16, #tpu.memory_space<vmem>>, vector<1x1x128x128xbf16>
    %104 = vector.shape_cast %103 : vector<1x1x128x128xbf16> to vector<128x128xbf16>
    %cst_101 = arith.constant dense<0.000000e+00> : vector<80x128xf32>
    %105 = tpu.matmul %102, %104, %cst_101 {dimension_numbers = #tpu.dot_dimension_numbers<[1], [0], [0], [1], [0, 0, 1, 1], [], []>} : vector<80x128xbf16>, vector<128x128xbf16>, vector<80x128xf32> -> vector<80x128xf32>
    %106 = arith.addf %101, %105 : vector<80x128xf32>
    %c10_102 = arith.constant 10 : index
    %c0_103 = arith.constant 0 : index
    %107 = vector.load %arg13[%c10_102, %c0_103] : memref<104x128xbf16, #tpu.memory_space<vmem>>, vector<80x128xbf16>
    %c1_104 = arith.constant 1 : index
    %c3_105 = arith.constant 3 : index
    %c0_106 = arith.constant 0 : index
    %c0_107 = arith.constant 0 : index
    %108 = vector.load %arg8[%c1_104, %c3_105, %c0_106, %c0_107] : memref<3x9x128x128xbf16, #tpu.memory_space<vmem>>, vector<1x1x128x128xbf16>
    %109 = vector.shape_cast %108 : vector<1x1x128x128xbf16> to vector<128x128xbf16>
    %cst_108 = arith.constant dense<0.000000e+00> : vector<80x128xf32>
    %110 = tpu.matmul %107, %109, %cst_108 {dimension_numbers = #tpu.dot_dimension_numbers<[1], [0], [0], [1], [0, 0, 1, 1], [], []>} : vector<80x128xbf16>, vector<128x128xbf16>, vector<80x128xf32> -> vector<80x128xf32>
    %111 = arith.addf %106, %110 : vector<80x128xf32>
    %c11_109 = arith.constant 11 : index
    %c0_110 = arith.constant 0 : index
    %112 = vector.load %arg13[%c11_109, %c0_110] : memref<104x128xbf16, #tpu.memory_space<vmem>>, vector<80x128xbf16>
    %c1_111 = arith.constant 1 : index
    %c4_112 = arith.constant 4 : index
    %c0_113 = arith.constant 0 : index
    %c0_114 = arith.constant 0 : index
    %113 = vector.load %arg8[%c1_111, %c4_112, %c0_113, %c0_114] : memref<3x9x128x128xbf16, #tpu.memory_space<vmem>>, vector<1x1x128x128xbf16>
    %114 = vector.shape_cast %113 : vector<1x1x128x128xbf16> to vector<128x128xbf16>
    %cst_115 = arith.constant dense<0.000000e+00> : vector<80x128xf32>
    %115 = tpu.matmul %112, %114, %cst_115 {dimension_numbers = #tpu.dot_dimension_numbers<[1], [0], [0], [1], [0, 0, 1, 1], [], []>} : vector<80x128xbf16>, vector<128x128xbf16>, vector<80x128xf32> -> vector<80x128xf32>
    %116 = arith.addf %111, %115 : vector<80x128xf32>
    %c12_116 = arith.constant 12 : index
    %c0_117 = arith.constant 0 : index
    %117 = vector.load %arg13[%c12_116, %c0_117] : memref<104x128xbf16, #tpu.memory_space<vmem>>, vector<80x128xbf16>
    %c1_118 = arith.constant 1 : index
    %c5_119 = arith.constant 5 : index
    %c0_120 = arith.constant 0 : index
    %c0_121 = arith.constant 0 : index
    %118 = vector.load %arg8[%c1_118, %c5_119, %c0_120, %c0_121] : memref<3x9x128x128xbf16, #tpu.memory_space<vmem>>, vector<1x1x128x128xbf16>
    %119 = vector.shape_cast %118 : vector<1x1x128x128xbf16> to vector<128x128xbf16>
    %cst_122 = arith.constant dense<0.000000e+00> : vector<80x128xf32>
    %120 = tpu.matmul %117, %119, %cst_122 {dimension_numbers = #tpu.dot_dimension_numbers<[1], [0], [0], [1], [0, 0, 1, 1], [], []>} : vector<80x128xbf16>, vector<128x128xbf16>, vector<80x128xf32> -> vector<80x128xf32>
    %121 = arith.addf %116, %120 : vector<80x128xf32>
    %c20_123 = arith.constant 20 : index
    %c0_124 = arith.constant 0 : index
    %122 = vector.load %arg13[%c20_123, %c0_124] : memref<104x128xbf16, #tpu.memory_space<vmem>>, vector<80x128xbf16>
    %c1_125 = arith.constant 1 : index
    %c6_126 = arith.constant 6 : index
    %c0_127 = arith.constant 0 : index
    %c0_128 = arith.constant 0 : index
    %123 = vector.load %arg8[%c1_125, %c6_126, %c0_127, %c0_128] : memref<3x9x128x128xbf16, #tpu.memory_space<vmem>>, vector<1x1x128x128xbf16>
    %124 = vector.shape_cast %123 : vector<1x1x128x128xbf16> to vector<128x128xbf16>
    %cst_129 = arith.constant dense<0.000000e+00> : vector<80x128xf32>
    %125 = tpu.matmul %122, %124, %cst_129 {dimension_numbers = #tpu.dot_dimension_numbers<[1], [0], [0], [1], [0, 0, 1, 1], [], []>} : vector<80x128xbf16>, vector<128x128xbf16>, vector<80x128xf32> -> vector<80x128xf32>
    %126 = arith.addf %121, %125 : vector<80x128xf32>
    %c21_130 = arith.constant 21 : index
    %c0_131 = arith.constant 0 : index
    %127 = vector.load %arg13[%c21_130, %c0_131] : memref<104x128xbf16, #tpu.memory_space<vmem>>, vector<80x128xbf16>
    %c1_132 = arith.constant 1 : index
    %c7_133 = arith.constant 7 : index
    %c0_134 = arith.constant 0 : index
    %c0_135 = arith.constant 0 : index
    %128 = vector.load %arg8[%c1_132, %c7_133, %c0_134, %c0_135] : memref<3x9x128x128xbf16, #tpu.memory_space<vmem>>, vector<1x1x128x128xbf16>
    %129 = vector.shape_cast %128 : vector<1x1x128x128xbf16> to vector<128x128xbf16>
    %cst_136 = arith.constant dense<0.000000e+00> : vector<80x128xf32>
    %130 = tpu.matmul %127, %129, %cst_136 {dimension_numbers = #tpu.dot_dimension_numbers<[1], [0], [0], [1], [0, 0, 1, 1], [], []>} : vector<80x128xbf16>, vector<128x128xbf16>, vector<80x128xf32> -> vector<80x128xf32>
    %131 = arith.addf %126, %130 : vector<80x128xf32>
    %c22_137 = arith.constant 22 : index
    %c0_138 = arith.constant 0 : index
    %132 = vector.load %arg13[%c22_137, %c0_138] : memref<104x128xbf16, #tpu.memory_space<vmem>>, vector<80x128xbf16>
    %c1_139 = arith.constant 1 : index
    %c8_140 = arith.constant 8 : index
    %c0_141 = arith.constant 0 : index
    %c0_142 = arith.constant 0 : index
    %133 = vector.load %arg8[%c1_139, %c8_140, %c0_141, %c0_142] : memref<3x9x128x128xbf16, #tpu.memory_space<vmem>>, vector<1x1x128x128xbf16>
    %134 = vector.shape_cast %133 : vector<1x1x128x128xbf16> to vector<128x128xbf16>
    %cst_143 = arith.constant dense<0.000000e+00> : vector<80x128xf32>
    %135 = tpu.matmul %132, %134, %cst_143 {dimension_numbers = #tpu.dot_dimension_numbers<[1], [0], [0], [1], [0, 0, 1, 1], [], []>} : vector<80x128xbf16>, vector<128x128xbf16>, vector<80x128xf32> -> vector<80x128xf32>
    %136 = arith.addf %131, %135 : vector<80x128xf32>
    %c0_144 = arith.constant 0 : index
    %c0_145 = arith.constant 0 : index
    %c0_146 = arith.constant 0 : index
    %c0_147 = arith.constant 0 : index
    %137 = vector.load %arg4[%c0_144, %c0_145, %c0_146, %c0_147] : memref<1x1x104x128xbf16, #tpu.memory_space<vmem>>, vector<1x1x104x128xbf16>
    %138 = vector.shape_cast %137 : vector<1x1x104x128xbf16> to vector<104x128xbf16>
    %c0_148 = arith.constant 0 : index
    %c0_149 = arith.constant 0 : index
    %139 = vector.load %arg6[%c0_148, %c0_149] : memref<128x128xbf16, #tpu.memory_space<vmem>>, vector<128x128xbf16>
    %cst_150 = arith.constant dense<0.000000e+00> : vector<104x128xf32>
    %140 = tpu.matmul %138, %139, %cst_150 {dimension_numbers = #tpu.dot_dimension_numbers<[1], [0], [0], [1], [0, 0, 1, 1], [], []>} : vector<104x128xbf16>, vector<128x128xbf16>, vector<104x128xf32> -> vector<104x128xf32>
    %c2_i32 = arith.constant 2 : i32
    %141 = arith.addi %arg1, %c2_i32 : i32
    %c1_i32_151 = arith.constant 1 : i32
    %142 = arith.cmpi sge, %141, %c1_i32_151 : i32
    %c2_i32_152 = arith.constant 2 : i32
    %143 = arith.addi %arg1, %c2_i32_152 : i32
    %c8_i32_153 = arith.constant 8 : i32
    %144 = arith.cmpi sle, %143, %c8_i32_153 : i32
    %145 = arith.andi %142, %144 : i1
    %146 = arith.extui %145 : i1 to i32
    %147 = arith.sitofp %146 : i32 to f32
    %c0_154 = arith.constant 0 : index
    %c0_155 = arith.constant 0 : index
    %148 = vector.load %arg7[%c0_154, %c0_155] : memref<1x128xf32, #tpu.memory_space<vmem>>, vector<1x128xf32>
    %149 = vector.broadcast %148 : vector<1x128xf32> to vector<104x128xf32>
    %150 = arith.addf %140, %149 : vector<104x128xf32>
    %cst_156 = arith.constant 0.000000e+00 : f32
    %151 = vector.broadcast %cst_156 : f32 to vector<104x128xf32>
    %152 = arith.maximumf %150, %151 : vector<104x128xf32>
    %c0_157 = arith.constant 0 : index
    %c0_158 = arith.constant 0 : index
    %153 = vector.load %arg5[%c0_157, %c0_158] : memref<104x1xf32, #tpu.memory_space<vmem>>, vector<104x1xf32>
    %154 = vector.broadcast %147 : f32 to vector<104x1xf32>
    %155 = arith.mulf %153, %154 : vector<104x1xf32>
    %156 = vector.broadcast %155 : vector<104x1xf32> to vector<104x128xf32>
    %157 = arith.mulf %152, %156 : vector<104x128xf32>
    %158 = arith.truncf %157 : vector<104x128xf32> to vector<104x128xbf16>
    %c0_159 = arith.constant 0 : index
    %c0_160 = arith.constant 0 : index
    %159 = vector.load %arg13[%c0_159, %c0_160] : memref<104x128xbf16, #tpu.memory_space<vmem>>, vector<104x128xbf16>
    tpu.vector_store %arg13[%c0_159, %c0_160], %158 {strides = array<i32>} : memref<104x128xbf16, #tpu.memory_space<vmem>>, vector<104x128xbf16>,
    %c0_161 = arith.constant 0 : index
    %c0_162 = arith.constant 0 : index
    %160 = vector.load %arg13[%c0_161, %c0_162] : memref<104x128xbf16, #tpu.memory_space<vmem>>, vector<80x128xbf16>
    %c2_163 = arith.constant 2 : index
    %c0_164 = arith.constant 0 : index
    %c0_165 = arith.constant 0 : index
    %c0_166 = arith.constant 0 : index
    %161 = vector.load %arg8[%c2_163, %c0_164, %c0_165, %c0_166] : memref<3x9x128x128xbf16, #tpu.memory_space<vmem>>, vector<1x1x128x128xbf16>
    %162 = vector.shape_cast %161 : vector<1x1x128x128xbf16> to vector<128x128xbf16>
    %cst_167 = arith.constant dense<0.000000e+00> : vector<80x128xf32>
    %163 = tpu.matmul %160, %162, %cst_167 {dimension_numbers = #tpu.dot_dimension_numbers<[1], [0], [0], [1], [0, 0, 1, 1], [], []>} : vector<80x128xbf16>, vector<128x128xbf16>, vector<80x128xf32> -> vector<80x128xf32>
    %164 = arith.addf %136, %163 : vector<80x128xf32>
    %c1_168 = arith.constant 1 : index
    %c0_169 = arith.constant 0 : index
    %165 = vector.load %arg13[%c1_168, %c0_169] : memref<104x128xbf16, #tpu.memory_space<vmem>>, vector<80x128xbf16>
    %c2_170 = arith.constant 2 : index
    %c1_171 = arith.constant 1 : index
    %c0_172 = arith.constant 0 : index
    %c0_173 = arith.constant 0 : index
    %166 = vector.load %arg8[%c2_170, %c1_171, %c0_172, %c0_173] : memref<3x9x128x128xbf16, #tpu.memory_space<vmem>>, vector<1x1x128x128xbf16>
    %167 = vector.shape_cast %166 : vector<1x1x128x128xbf16> to vector<128x128xbf16>
    %cst_174 = arith.constant dense<0.000000e+00> : vector<80x128xf32>
    %168 = tpu.matmul %165, %167, %cst_174 {dimension_numbers = #tpu.dot_dimension_numbers<[1], [0], [0], [1], [0, 0, 1, 1], [], []>} : vector<80x128xbf16>, vector<128x128xbf16>, vector<80x128xf32> -> vector<80x128xf32>
    %169 = arith.addf %164, %168 : vector<80x128xf32>
    %c2_175 = arith.constant 2 : index
    %c0_176 = arith.constant 0 : index
    %170 = vector.load %arg13[%c2_175, %c0_176] : memref<104x128xbf16, #tpu.memory_space<vmem>>, vector<80x128xbf16>
    %c2_177 = arith.constant 2 : index
    %c2_178 = arith.constant 2 : index
    %c0_179 = arith.constant 0 : index
    %c0_180 = arith.constant 0 : index
    %171 = vector.load %arg8[%c2_177, %c2_178, %c0_179, %c0_180] : memref<3x9x128x128xbf16, #tpu.memory_space<vmem>>, vector<1x1x128x128xbf16>
    %172 = vector.shape_cast %171 : vector<1x1x128x128xbf16> to vector<128x128xbf16>
    %cst_181 = arith.constant dense<0.000000e+00> : vector<80x128xf32>
    %173 = tpu.matmul %170, %172, %cst_181 {dimension_numbers = #tpu.dot_dimension_numbers<[1], [0], [0], [1], [0, 0, 1, 1], [], []>} : vector<80x128xbf16>, vector<128x128xbf16>, vector<80x128xf32> -> vector<80x128xf32>
    %174 = arith.addf %169, %173 : vector<80x128xf32>
    %c10_182 = arith.constant 10 : index
    %c0_183 = arith.constant 0 : index
    %175 = vector.load %arg13[%c10_182, %c0_183] : memref<104x128xbf16, #tpu.memory_space<vmem>>, vector<80x128xbf16>
    %c2_184 = arith.constant 2 : index
    %c3_185 = arith.constant 3 : index
    %c0_186 = arith.constant 0 : index
    %c0_187 = arith.constant 0 : index
    %176 = vector.load %arg8[%c2_184, %c3_185, %c0_186, %c0_187] : memref<3x9x128x128xbf16, #tpu.memory_space<vmem>>, vector<1x1x128x128xbf16>
    %177 = vector.shape_cast %176 : vector<1x1x128x128xbf16> to vector<128x128xbf16>
    %cst_188 = arith.constant dense<0.000000e+00> : vector<80x128xf32>
    %178 = tpu.matmul %175, %177, %cst_188 {dimension_numbers = #tpu.dot_dimension_numbers<[1], [0], [0], [1], [0, 0, 1, 1], [], []>} : vector<80x128xbf16>, vector<128x128xbf16>, vector<80x128xf32> -> vector<80x128xf32>
    %179 = arith.addf %174, %178 : vector<80x128xf32>
    %c11_189 = arith.constant 11 : index
    %c0_190 = arith.constant 0 : index
    %180 = vector.load %arg13[%c11_189, %c0_190] : memref<104x128xbf16, #tpu.memory_space<vmem>>, vector<80x128xbf16>
    %c2_191 = arith.constant 2 : index
    %c4_192 = arith.constant 4 : index
    %c0_193 = arith.constant 0 : index
    %c0_194 = arith.constant 0 : index
    %181 = vector.load %arg8[%c2_191, %c4_192, %c0_193, %c0_194] : memref<3x9x128x128xbf16, #tpu.memory_space<vmem>>, vector<1x1x128x128xbf16>
    %182 = vector.shape_cast %181 : vector<1x1x128x128xbf16> to vector<128x128xbf16>
    %cst_195 = arith.constant dense<0.000000e+00> : vector<80x128xf32>
    %183 = tpu.matmul %180, %182, %cst_195 {dimension_numbers = #tpu.dot_dimension_numbers<[1], [0], [0], [1], [0, 0, 1, 1], [], []>} : vector<80x128xbf16>, vector<128x128xbf16>, vector<80x128xf32> -> vector<80x128xf32>
    %184 = arith.addf %179, %183 : vector<80x128xf32>
    %c12_196 = arith.constant 12 : index
    %c0_197 = arith.constant 0 : index
    %185 = vector.load %arg13[%c12_196, %c0_197] : memref<104x128xbf16, #tpu.memory_space<vmem>>, vector<80x128xbf16>
    %c2_198 = arith.constant 2 : index
    %c5_199 = arith.constant 5 : index
    %c0_200 = arith.constant 0 : index
    %c0_201 = arith.constant 0 : index
    %186 = vector.load %arg8[%c2_198, %c5_199, %c0_200, %c0_201] : memref<3x9x128x128xbf16, #tpu.memory_space<vmem>>, vector<1x1x128x128xbf16>
    %187 = vector.shape_cast %186 : vector<1x1x128x128xbf16> to vector<128x128xbf16>
    %cst_202 = arith.constant dense<0.000000e+00> : vector<80x128xf32>
    %188 = tpu.matmul %185, %187, %cst_202 {dimension_numbers = #tpu.dot_dimension_numbers<[1], [0], [0], [1], [0, 0, 1, 1], [], []>} : vector<80x128xbf16>, vector<128x128xbf16>, vector<80x128xf32> -> vector<80x128xf32>
    %189 = arith.addf %184, %188 : vector<80x128xf32>
    %c20_203 = arith.constant 20 : index
    %c0_204 = arith.constant 0 : index
    %190 = vector.load %arg13[%c20_203, %c0_204] : memref<104x128xbf16, #tpu.memory_space<vmem>>, vector<80x128xbf16>
    %c2_205 = arith.constant 2 : index
    %c6_206 = arith.constant 6 : index
    %c0_207 = arith.constant 0 : index
    %c0_208 = arith.constant 0 : index
    %191 = vector.load %arg8[%c2_205, %c6_206, %c0_207, %c0_208] : memref<3x9x128x128xbf16, #tpu.memory_space<vmem>>, vector<1x1x128x128xbf16>
    %192 = vector.shape_cast %191 : vector<1x1x128x128xbf16> to vector<128x128xbf16>
    %cst_209 = arith.constant dense<0.000000e+00> : vector<80x128xf32>
    %193 = tpu.matmul %190, %192, %cst_209 {dimension_numbers = #tpu.dot_dimension_numbers<[1], [0], [0], [1], [0, 0, 1, 1], [], []>} : vector<80x128xbf16>, vector<128x128xbf16>, vector<80x128xf32> -> vector<80x128xf32>
    %194 = arith.addf %189, %193 : vector<80x128xf32>
    %c21_210 = arith.constant 21 : index
    %c0_211 = arith.constant 0 : index
    %195 = vector.load %arg13[%c21_210, %c0_211] : memref<104x128xbf16, #tpu.memory_space<vmem>>, vector<80x128xbf16>
    %c2_212 = arith.constant 2 : index
    %c7_213 = arith.constant 7 : index
    %c0_214 = arith.constant 0 : index
    %c0_215 = arith.constant 0 : index
    %196 = vector.load %arg8[%c2_212, %c7_213, %c0_214, %c0_215] : memref<3x9x128x128xbf16, #tpu.memory_space<vmem>>, vector<1x1x128x128xbf16>
    %197 = vector.shape_cast %196 : vector<1x1x128x128xbf16> to vector<128x128xbf16>
    %cst_216 = arith.constant dense<0.000000e+00> : vector<80x128xf32>
    %198 = tpu.matmul %195, %197, %cst_216 {dimension_numbers = #tpu.dot_dimension_numbers<[1], [0], [0], [1], [0, 0, 1, 1], [], []>} : vector<80x128xbf16>, vector<128x128xbf16>, vector<80x128xf32> -> vector<80x128xf32>
    %199 = arith.addf %194, %198 : vector<80x128xf32>
    %c22_217 = arith.constant 22 : index
    %c0_218 = arith.constant 0 : index
    %200 = vector.load %arg13[%c22_217, %c0_218] : memref<104x128xbf16, #tpu.memory_space<vmem>>, vector<80x128xbf16>
    %c2_219 = arith.constant 2 : index
    %c8_220 = arith.constant 8 : index
    %c0_221 = arith.constant 0 : index
    %c0_222 = arith.constant 0 : index
    %201 = vector.load %arg8[%c2_219, %c8_220, %c0_221, %c0_222] : memref<3x9x128x128xbf16, #tpu.memory_space<vmem>>, vector<1x1x128x128xbf16>
    %202 = vector.shape_cast %201 : vector<1x1x128x128xbf16> to vector<128x128xbf16>
    %cst_223 = arith.constant dense<0.000000e+00> : vector<80x128xf32>
    %203 = tpu.matmul %200, %202, %cst_223 {dimension_numbers = #tpu.dot_dimension_numbers<[1], [0], [0], [1], [0, 0, 1, 1], [], []>} : vector<80x128xbf16>, vector<128x128xbf16>, vector<80x128xf32> -> vector<80x128xf32>
    %204 = arith.addf %199, %203 : vector<80x128xf32>
    %c0_224 = arith.constant 0 : index
    %c0_225 = arith.constant 0 : index
    %205 = vector.load %arg9[%c0_224, %c0_225] : memref<1x128xf32, #tpu.memory_space<vmem>>, vector<1x128xf32>
    %206 = vector.broadcast %205 : vector<1x128xf32> to vector<80x128xf32>
    %207 = arith.addf %204, %206 : vector<80x128xf32>
    %cst_226 = arith.constant 0.000000e+00 : f32
    %208 = vector.broadcast %cst_226 : f32 to vector<80x128xf32>
    %209 = arith.maximumf %207, %208 : vector<80x128xf32>
    %210 = arith.truncf %209 : vector<80x128xf32> to vector<80x128xbf16>
    %c0_227 = arith.constant 0 : index
    %c0_228 = arith.constant 0 : index
    %211 = vector.load %arg10[%c0_227, %c0_228] : memref<128x128xbf16, #tpu.memory_space<vmem>>, vector<128x128xbf16>
    %cst_229 = arith.constant dense<0.000000e+00> : vector<80x128xf32>
    %212 = tpu.matmul %210, %211, %cst_229 {dimension_numbers = #tpu.dot_dimension_numbers<[1], [0], [0], [1], [0, 0, 1, 1], [], []>} : vector<80x128xbf16>, vector<128x128xbf16>, vector<80x128xf32> -> vector<80x128xf32>
    %c0_230 = arith.constant 0 : index
    %c0_231 = arith.constant 0 : index
    %213 = vector.load %arg11[%c0_230, %c0_231] : memref<1x128xf32, #tpu.memory_space<vmem>>, vector<1x128xf32>
    %214 = vector.broadcast %213 : vector<1x128xf32> to vector<80x128xf32>
    %215 = arith.addf %212, %214 : vector<80x128xf32>
    %c0_232 = arith.constant 0 : index
    %c0_233 = arith.constant 0 : index
    %c11_234 = arith.constant 11 : index
    %c0_235 = arith.constant 0 : index
    %216 = vector.load %arg3[%c0_232, %c0_233, %c11_234, %c0_235] : memref<1x1x104x128xbf16, #tpu.memory_space<vmem>>, vector<1x1x80x128xbf16>
    %217 = vector.shape_cast %216 : vector<1x1x80x128xbf16> to vector<80x128xbf16>
    %218 = arith.extf %217 : vector<80x128xbf16> to vector<80x128xf32>
    %219 = arith.addf %215, %218 : vector<80x128xf32>
    %cst_236 = arith.constant 0.000000e+00 : f32
    %220 = vector.broadcast %cst_236 : f32 to vector<80x128xf32>
    %221 = arith.maximumf %219, %220 : vector<80x128xf32>
    %c0_237 = arith.constant 0 : index
    %c0_238 = arith.constant 0 : index
    %222 = vector.load %arg14[%c0_237, %c0_238] : memref<80x128xf32, #tpu.memory_space<vmem>>, vector<80x128xf32>
    tpu.vector_store %arg14[%c0_237, %c0_238], %221 {strides = array<i32>} : memref<80x128xf32, #tpu.memory_space<vmem>>, vector<80x128xf32>,
    %c0_239 = arith.constant 0 : index
    %c0_240 = arith.constant 0 : index
    %223 = vector.load %arg14[%c0_239, %c0_240] : memref<80x128xf32, #tpu.memory_space<vmem>>, vector<8x128xf32>
    %224 = arith.truncf %223 : vector<8x128xf32> to vector<8x128xbf16>
    %c0_241 = arith.constant 0 : index
    %c0_242 = arith.constant 0 : index
    %c0_243 = arith.constant 0 : index
    %c0_244 = arith.constant 0 : index
    %225 = vector.load %arg12[%c0_241, %c0_242, %c0_243, %c0_244] : memref<1x1x64x128xbf16, #tpu.memory_space<vmem>>, vector<1x1x8x128xbf16>
    %226 = vector.shape_cast %225 : vector<1x1x8x128xbf16> to vector<8x128xbf16>
    %227 = vector.shape_cast %224 : vector<8x128xbf16> to vector<1x1x8x128xbf16>
    tpu.vector_store %arg12[%c0_241, %c0_242, %c0_243, %c0_244], %227 {strides = array<i32>} : memref<1x1x64x128xbf16, #tpu.memory_space<vmem>>, vector<1x1x8x128xbf16>,
    %c10_245 = arith.constant 10 : index
    %c0_246 = arith.constant 0 : index
    %228 = vector.load %arg14[%c10_245, %c0_246] : memref<80x128xf32, #tpu.memory_space<vmem>>, vector<8x128xf32>
    %229 = arith.truncf %228 : vector<8x128xf32> to vector<8x128xbf16>
    %c0_247 = arith.constant 0 : index
    %c0_248 = arith.constant 0 : index
    %c8_249 = arith.constant 8 : index
    %c0_250 = arith.constant 0 : index
    %230 = vector.load %arg12[%c0_247, %c0_248, %c8_249, %c0_250] : memref<1x1x64x128xbf16, #tpu.memory_space<vmem>>, vector<1x1x8x128xbf16>
    %231 = vector.shape_cast %230 : vector<1x1x8x128xbf16> to vector<8x128xbf16>
    %232 = vector.shape_cast %229 : vector<8x128xbf16> to vector<1x1x8x128xbf16>
    tpu.vector_store %arg12[%c0_247, %c0_248, %c8_249, %c0_250], %232 {strides = array<i32>} : memref<1x1x64x128xbf16, #tpu.memory_space<vmem>>, vector<1x1x8x128xbf16>,
    %c20_251 = arith.constant 20 : index
    %c0_252 = arith.constant 0 : index
    %233 = vector.load %arg14[%c20_251, %c0_252] : memref<80x128xf32, #tpu.memory_space<vmem>>, vector<8x128xf32>
    %234 = arith.truncf %233 : vector<8x128xf32> to vector<8x128xbf16>
    %c0_253 = arith.constant 0 : index
    %c0_254 = arith.constant 0 : index
    %c16 = arith.constant 16 : index
    %c0_255 = arith.constant 0 : index
    %235 = vector.load %arg12[%c0_253, %c0_254, %c16, %c0_255] : memref<1x1x64x128xbf16, #tpu.memory_space<vmem>>, vector<1x1x8x128xbf16>
    %236 = vector.shape_cast %235 : vector<1x1x8x128xbf16> to vector<8x128xbf16>
    %237 = vector.shape_cast %234 : vector<8x128xbf16> to vector<1x1x8x128xbf16>
    tpu.vector_store %arg12[%c0_253, %c0_254, %c16, %c0_255], %237 {strides = array<i32>} : memref<1x1x64x128xbf16, #tpu.memory_space<vmem>>, vector<1x1x8x128xbf16>,
    %c30 = arith.constant 30 : index
    %c0_256 = arith.constant 0 : index
    %238 = vector.load %arg14[%c30, %c0_256] : memref<80x128xf32, #tpu.memory_space<vmem>>, vector<8x128xf32>
    %239 = arith.truncf %238 : vector<8x128xf32> to vector<8x128xbf16>
    %c0_257 = arith.constant 0 : index
    %c0_258 = arith.constant 0 : index
    %c24 = arith.constant 24 : index
    %c0_259 = arith.constant 0 : index
    %240 = vector.load %arg12[%c0_257, %c0_258, %c24, %c0_259] : memref<1x1x64x128xbf16, #tpu.memory_space<vmem>>, vector<1x1x8x128xbf16>
    %241 = vector.shape_cast %240 : vector<1x1x8x128xbf16> to vector<8x128xbf16>
    %242 = vector.shape_cast %239 : vector<8x128xbf16> to vector<1x1x8x128xbf16>
    tpu.vector_store %arg12[%c0_257, %c0_258, %c24, %c0_259], %242 {strides = array<i32>} : memref<1x1x64x128xbf16, #tpu.memory_space<vmem>>, vector<1x1x8x128xbf16>,
    %c40 = arith.constant 40 : index
    %c0_260 = arith.constant 0 : index
    %243 = vector.load %arg14[%c40, %c0_260] : memref<80x128xf32, #tpu.memory_space<vmem>>, vector<8x128xf32>
    %244 = arith.truncf %243 : vector<8x128xf32> to vector<8x128xbf16>
    %c0_261 = arith.constant 0 : index
    %c0_262 = arith.constant 0 : index
    %c32 = arith.constant 32 : index
    %c0_263 = arith.constant 0 : index
    %245 = vector.load %arg12[%c0_261, %c0_262, %c32, %c0_263] : memref<1x1x64x128xbf16, #tpu.memory_space<vmem>>, vector<1x1x8x128xbf16>
    %246 = vector.shape_cast %245 : vector<1x1x8x128xbf16> to vector<8x128xbf16>
    %247 = vector.shape_cast %244 : vector<8x128xbf16> to vector<1x1x8x128xbf16>
    tpu.vector_store %arg12[%c0_261, %c0_262, %c32, %c0_263], %247 {strides = array<i32>} : memref<1x1x64x128xbf16, #tpu.memory_space<vmem>>, vector<1x1x8x128xbf16>,
    %c50 = arith.constant 50 : index
    %c0_264 = arith.constant 0 : index
    %248 = vector.load %arg14[%c50, %c0_264] : memref<80x128xf32, #tpu.memory_space<vmem>>, vector<8x128xf32>
    %249 = arith.truncf %248 : vector<8x128xf32> to vector<8x128xbf16>
    %c0_265 = arith.constant 0 : index
    %c0_266 = arith.constant 0 : index
    %c40_267 = arith.constant 40 : index
    %c0_268 = arith.constant 0 : index
    %250 = vector.load %arg12[%c0_265, %c0_266, %c40_267, %c0_268] : memref<1x1x64x128xbf16, #tpu.memory_space<vmem>>, vector<1x1x8x128xbf16>
    %251 = vector.shape_cast %250 : vector<1x1x8x128xbf16> to vector<8x128xbf16>
    %252 = vector.shape_cast %249 : vector<8x128xbf16> to vector<1x1x8x128xbf16>
    tpu.vector_store %arg12[%c0_265, %c0_266, %c40_267, %c0_268], %252 {strides = array<i32>} : memref<1x1x64x128xbf16, #tpu.memory_space<vmem>>, vector<1x1x8x128xbf16>,
    %c60 = arith.constant 60 : index
    %c0_269 = arith.constant 0 : index
    %253 = vector.load %arg14[%c60, %c0_269] : memref<80x128xf32, #tpu.memory_space<vmem>>, vector<8x128xf32>
    %254 = arith.truncf %253 : vector<8x128xf32> to vector<8x128xbf16>
    %c0_270 = arith.constant 0 : index
    %c0_271 = arith.constant 0 : index
    %c48 = arith.constant 48 : index
    %c0_272 = arith.constant 0 : index
    %255 = vector.load %arg12[%c0_270, %c0_271, %c48, %c0_272] : memref<1x1x64x128xbf16, #tpu.memory_space<vmem>>, vector<1x1x8x128xbf16>
    %256 = vector.shape_cast %255 : vector<1x1x8x128xbf16> to vector<8x128xbf16>
    %257 = vector.shape_cast %254 : vector<8x128xbf16> to vector<1x1x8x128xbf16>
    tpu.vector_store %arg12[%c0_270, %c0_271, %c48, %c0_272], %257 {strides = array<i32>} : memref<1x1x64x128xbf16, #tpu.memory_space<vmem>>, vector<1x1x8x128xbf16>,
    %c70 = arith.constant 70 : index
    %c0_273 = arith.constant 0 : index
    %258 = vector.load %arg14[%c70, %c0_273] : memref<80x128xf32, #tpu.memory_space<vmem>>, vector<8x128xf32>
    %259 = arith.truncf %258 : vector<8x128xf32> to vector<8x128xbf16>
    %c0_274 = arith.constant 0 : index
    %c0_275 = arith.constant 0 : index
    %c56 = arith.constant 56 : index
    %c0_276 = arith.constant 0 : index
    %260 = vector.load %arg12[%c0_274, %c0_275, %c56, %c0_276] : memref<1x1x64x128xbf16, #tpu.memory_space<vmem>>, vector<1x1x8x128xbf16>
    %261 = vector.shape_cast %260 : vector<1x1x8x128xbf16> to vector<8x128xbf16>
    %262 = vector.shape_cast %259 : vector<8x128xbf16> to vector<1x1x8x128xbf16>
    tpu.vector_store %arg12[%c0_274, %c0_275, %c56, %c0_276], %262 {strides = array<i32>} : memref<1x1x64x128xbf16, #tpu.memory_space<vmem>>, vector<1x1x8x128xbf16>,
    return
  }
  func.func @transform_0(%arg0: i32, %arg1: i32) -> (i32, i32, i32, i32) {
    %c0_i32 = arith.constant 0 : i32
    %c0_i32_0 = arith.constant 0 : i32
    %c0_i32_1 = arith.constant 0 : i32
    return %arg0, %arg1, %c0_i32, %c0_i32_0 : i32, i32, i32, i32
  }
  func.func @transform_1(%arg0: i32, %arg1: i32) -> (i32, i32, i32, i32) {
    %c1_i32 = arith.constant 1 : i32
    %0 = arith.addi %arg1, %c1_i32 : i32
    %c0_i32 = arith.constant 0 : i32
    %c0_i32_0 = arith.constant 0 : i32
    %c0_i32_1 = arith.constant 0 : i32
    return %arg0, %0, %c0_i32, %c0_i32_0 : i32, i32, i32, i32
  }
  func.func @transform_2(%arg0: i32, %arg1: i32) -> (i32, i32, i32, i32) {
    %c2_i32 = arith.constant 2 : i32
    %0 = arith.addi %arg1, %c2_i32 : i32
    %c0_i32 = arith.constant 0 : i32
    %c0_i32_0 = arith.constant 0 : i32
    %c0_i32_1 = arith.constant 0 : i32
    return %arg0, %0, %c0_i32, %c0_i32_0 : i32, i32, i32, i32
  }
  func.func @transform_3(%arg0: i32, %arg1: i32) -> (i32, i32) {
    %c0_i32 = arith.constant 0 : i32
    %c0_i32_0 = arith.constant 0 : i32
    %c0_i32_1 = arith.constant 0 : i32
    return %c0_i32, %c0_i32_0 : i32, i32
  }
  func.func @transform_4(%arg0: i32, %arg1: i32) -> (i32, i32) {
    %c0_i32 = arith.constant 0 : i32
    %c0_i32_0 = arith.constant 0 : i32
    %c0_i32_1 = arith.constant 0 : i32
    return %c0_i32, %c0_i32_0 : i32, i32
  }
  func.func @transform_5(%arg0: i32, %arg1: i32) -> (i32, i32) {
    %c0_i32 = arith.constant 0 : i32
    %c0_i32_0 = arith.constant 0 : i32
    %c0_i32_1 = arith.constant 0 : i32
    return %c0_i32, %c0_i32_0 : i32, i32
  }
  func.func @transform_6(%arg0: i32, %arg1: i32) -> (i32, i32, i32, i32) {
    %c0_i32 = arith.constant 0 : i32
    %c0_i32_0 = arith.constant 0 : i32
    %c0_i32_1 = arith.constant 0 : i32
    %c0_i32_2 = arith.constant 0 : i32
    %c0_i32_3 = arith.constant 0 : i32
    return %c0_i32, %c0_i32_0, %c0_i32_1, %c0_i32_2 : i32, i32, i32, i32
  }
  func.func @transform_7(%arg0: i32, %arg1: i32) -> (i32, i32) {
    %c0_i32 = arith.constant 0 : i32
    %c0_i32_0 = arith.constant 0 : i32
    %c0_i32_1 = arith.constant 0 : i32
    return %c0_i32, %c0_i32_0 : i32, i32
  }
  func.func @transform_8(%arg0: i32, %arg1: i32) -> (i32, i32) {
    %c0_i32 = arith.constant 0 : i32
    %c0_i32_0 = arith.constant 0 : i32
    %c0_i32_1 = arith.constant 0 : i32
    return %c0_i32, %c0_i32_0 : i32, i32
  }
  func.func @transform_9(%arg0: i32, %arg1: i32) -> (i32, i32) {
    %c0_i32 = arith.constant 0 : i32
    %c0_i32_0 = arith.constant 0 : i32
    %c0_i32_1 = arith.constant 0 : i32
    return %c0_i32, %c0_i32_0 : i32, i32
  }
  func.func @transform_10(%arg0: i32, %arg1: i32) -> (i32, i32, i32, i32) {
    %c0_i32 = arith.constant 0 : i32
    %c0_i32_0 = arith.constant 0 : i32
    %c0_i32_1 = arith.constant 0 : i32
    return %arg0, %arg1, %c0_i32, %c0_i32_0 : i32, i32, i32, i32
  }
}

</mosaic_0001>

<bundles_post_ra>
// kernel: bottleneck_forward.1
= control target key start
LH: loop header
LB: loop body
LE: loop exit
PB: predicated region body
PF: predicated region fallthrough
CT: control target
= control target key end

     0   :  { %s10402_s13 = smov 0   ;;  %s10404_s14 = smov 0   ;;  %s12924_s0 = inlined_call_operand.vmem [shape: bf16[2,10,104,128], index: 0, kind: input, shape index: {}, may-alias: {0,1,2}]   ;;  %s12925_s1 = inlined_call_operand.vmem [shape: bf16[2,10,104,128], index: 1, kind: input, shape index: {}, may-alias: {0,1,2}]   ;;  %s12926_s2 = inlined_call_operand.vmem [shape: bf16[2,10,104,128], index: 2, kind: input, shape index: {}, may-alias: {0,1,2}]   ;;  %s12927_s3 = inlined_call_operand.vmem [shape: f32[104,1], index: 3, kind: input, shape index: {}]   ;;  %s12928_s4 = inlined_call_operand.vmem [shape: bf16[128,128], index: 4, kind: input, shape index: {}]   ;;  %s12929_s5 = inlined_call_operand.vmem [shape: f32[1,128], index: 5, kind: input, shape index: {}]   ;;  %s12930_s6 = inlined_call_operand.vmem [shape: bf16[3,9,128,128], index: 6, kind: input, shape index: {}]   ;;  %s12931_s7 = inlined_call_operand.vmem [shape: f32[1,128], index: 7, kind: input, shape index: {}]   ;;  %s12932_s8 = inlined_call_operand.vmem [shape: bf16[128,128], index: 8, kind: input, shape index: {}]   ;;  %s12933_s9 = inlined_call_operand.vmem [shape: f32[1,128], index: 9, kind: input, shape index: {}]   ;;  %s12934_s10 = inlined_call_operand.vmem [shape: bf16[2,8,64,128], index: 10, kind: output, shape index: {}]  }
   0x1   :  { %s10406_s15 = smov 0   ;;  %s10408_s16 = smov 0  }
   0x2   :  { %s10410_s17 = smov 0  }
   0x3 LB: > { %s29_s18 = sadd.s32 1, %s10334_s15  ;;  %s32_s19 = sadd.s32 1, %s10338_s16  ;;  %s10342_s17 = sphi %s10410_s17, %s20_s17   ;;  %s10338_s16 = sphi %s10408_s16, %s12942_s16   ;;  %s10334_s15 = sphi %s10406_s15, %s12941_s15   ;;  %s10330_s14 = sphi %s10404_s14, %s12940_s14   ;;  %s10326_s13 = sphi %s10402_s13, %s12939_s13  }
   0x4   : > { %p30_p0 = scmp.ge.s32.totalorder %s29_s18, 8  ;;  %p7335_p1 = scmp.ge.s32.totalorder %s10342_s17, 1 }
   0x5   : > { %p372_p2 = scmp.lt.s32.totalorder %s10342_s17, 17 }
   0x6   : > { %s12944_s18 = smov (%p30_p0, %s29_s18), 0  ;;  %s12946_s19 = smov (!%p30_p0, %s32_s19), %s10338_s16 }
   0x7   : > { %p373_p3 = pnand %p7335_p1, %p372_p2  ;;  %p34_p4 = scmp.ge.s32.totalorder %s12946_s19, 2 }
   0x8   : > { %v9956_v0 = vld [vmem:[%s12928_s4] sm:$0xff] (!%p373_p3)   ;;  %v10344_v1 = vmov (!%p373_p3), 0.0   ;;  %v9957_v2 = vld [vmem:[%s12928_s4 + $0x8] sm:$0xff] (!%p373_p3)   ;;  %vm10345_vm0 = vmmov (!%p373_p3), 0   ;;  %p438_p5 = scmp.lt.s32.totalorder (!%p373_p3), %s10330_s14, 1  ;;  %p440_p6 = scmp.lt.s32.totalorder (!%p373_p3), %s10326_s13, 9 }
   0x9   : > { %s12948_s19 = smov (%p34_p4, %s12946_s19), 0  ;;  %376 = sbr.rel (%p373_p3) target bundleno = 1792 (0x700), region = 60 }
   0xa   : > { %8751 = vmatprep.subr.bf16.mxu0 (!%p373_p3), %v10344_v1  ;;  %8795 = vmatprep.subr.bf16.mxu1 (!%p373_p3), %v10344_v1  ;;  %v9958_v3 = vld [vmem:[%s12928_s4 + $0x10] sm:$0xff] (!%p373_p3)   ;;  %p508_p7 = scmp.ge.s32.totalorder (!%p373_p3), %s10326_s13, 1  ;;  %p509_p8 = scmp.le.s32.totalorder (!%p373_p3), %s10326_s13, 8  ;;  %v10346_v4 = vmov (!%p373_p3), 0   ;;  %v9959_v5 = vld [vmem:[%s12928_s4 + $0x18] sm:$0xff] (!%p373_p3)   ;;  %v9960_v6 = vld [vmem:[%s12928_s4 + $0x20] sm:$0xff] (!%p373_p3)  }
   0xb   : > { %8752 = vmatpush3.bf16.msra.mxu0 (!%p373_p3), %v9956_v0  ;;  %8767 = vmatprep.mubr.msk.bf16.mxu0 (!%p373_p3), %vm10345_vm0, %v10344_v1  ;;  %s447_s30 = sadd.s32 (!%p373_p3), 1, %s10326_s13  ;;  %v10478_v7 = vld [vmem:[%s12927_s3] sm:$0xff] (!%p373_p3)  ;;  %v10487_v8 = vld [vmem:[%s12927_s3 + $0x10] sm:$0xff] (!%p373_p3)  ;;  %s10490_s22 = sadd.s32 (!%p373_p3), 2, %s10326_s13  ;;  %v9961_v9 = vld [vmem:[%s12928_s4 + $0x28] sm:$0xff] (!%p373_p3)   ;;  %vm1271_vm1 = vcmask (!%p373_p3), 1046528  }
   0xc   : > { %8753 = vmatprep.subr.bf16.mxu0 (!%p373_p3), %v10344_v1  ;;  %8811 = vmatprep.mubr.msk.bf16.mxu1 (!%p373_p3), %vm10345_vm0, %v10344_v1  ;;  %p510_p9 = pnand (!%p373_p3), %p509_p8, %p508_p7  ;;  %p2615_p10 = scmp.ge.s32.totalorder (!%p373_p3), %s447_s30, 1  ;;  %v10498_v11 = vld [vmem:[%s12927_s3 + $0x8] sm:$0xff] (!%p373_p3)  ;;  %v10503_v12 = vld [vmem:[%s12927_s3 + $0x18] sm:$0xff] (!%p373_p3)  ;;  %v9962_v15 = vld [vmem:[%s12928_s4 + $0x30] sm:$0xff] (!%p373_p3)   ;;  %vm953_vm2 = vsmask.f32 (!%p373_p3), 7424 }
   0xd   : > { %9954 = vset.pattern.permute.xlu0 (!%p373_p3), %v10346_v4  ;;  %9955 = vset.pattern.permute.xlu1 (!%p373_p3), %v10346_v4  ;;  %p2616_p11 = scmp.le.s32.totalorder (!%p373_p3), %s447_s30, 8  ;;  %p450_p12 = scmp.lt.s32.totalorder (!%p373_p3), %s447_s30, 9  ;;  %v10517_v16 = vld [vmem:[%s12927_s3 + $0x20] sm:$0xff] (!%p373_p3)  ;;  %v10528_v19 = vld [vmem:[%s12927_s3 + $0x28] sm:$0xff] (!%p373_p3)  ;;  %v9963_v20 = vld [vmem:[%s12928_s4 + $0x38] sm:$0xff] (!%p373_p3)   ;;  %vm1854_vm4 = vcmask (!%p373_p3), 1045504  }
   0xe   : > { %p4772_p0 = scmp.ge.s32.totalorder (!%p373_p3), %s10490_s22, 1  ;;  %p4773_p1 = scmp.le.s32.totalorder (!%p373_p3), %s10490_s22, 8  ;;  %v10541_v21 = vld [vmem:[%s12927_s3 + $0x30] sm:$0xff] (!%p373_p3)  ;;  %v10549_v24 = vld [vmem:[%s12927_s3 + $0x38] sm:$0xff] (!%p373_p3)  ;;  %v10558_v26 = vld [vmem:[%s12927_s3 + $0x40] sm:$0xff] (!%p373_p3)  ;;  %vm2437_vm5 = vcmask (!%p373_p3), 1044480  }
   0xf   : > { %8754 = vmatpush3.bf16.msra.mxu0 (!%p373_p3), %v9957_v2  ;;  %p10480_p13 = pnand (!%p373_p3), %p2616_p11, %p2615_p10  ;;  %v10564_v28 = vld [vmem:[%s12927_s3 + $0x48] sm:$0xff] (!%p373_p3)  ;;  %v10571_v30 = vld [vmem:[%s12927_s3 + $0x50] sm:$0xff] (!%p373_p3)  ;;  %v10577_v32 = vld [vmem:[%s12927_s3 + $0x58] sm:$0xff] (!%p373_p3)  ;;  %vm1643_vm3 = vsmask.f32 (!%p373_p3), 6400  ;;  %p461_p3 = scmp.lt.s32.totalorder (!%p373_p3), %s10490_s22, 9 }
  0x10   : > { %s12950_s14 = smov (!%p438_p5, %s10330_s14), 1  ;;  %8755 = vmatprep.subr.bf16.mxu0 %v10344_v1  ;;  %s12952_s30 = smov (!%p450_p12, %s447_s30), 9  ;;  %v10586_v35 = vld [vmem:[%s12927_s3 + $0x60] sm:$0xff]  ;;  %vm2226_vm6 = vsmask.f32 5376 }
  0x11   : > { %s441_s24 = scalar_select %p440_p6, %s10326_s13, 9 }
  0x12   : > { %s10455_s27 = smul.u32 130, %s12950_s14  ;;  %p10530_p2 = pnand %p4773_p1, %p4772_p0 }
  0x13   : > { %s9907_s28 = smul.u32 13, %s441_s24  ;;  %8756 = vmatpush3.bf16.msra.mxu0 %v9958_v3  ;;  %s12954_s22 = smov (!%p461_p3, %s10490_s22), 9 }
  0x14   : > { %8757 = vmatprep.subr.bf16.mxu0 %v10344_v1  ;;  %s7342_s26 = scalar_select %p510_p9, 0, 1 }
  0x15   : > { %s444_s29 = sadd.s32 %s10455_s27, %s9907_s28  ;;  %p471_p4 = scmp.lt.s32.totalorder %s10326_s13, 7 }
  0x16   : > { %s7336_s20 = sshll.u32 %s444_s29, 2  ;;  %s513_s12 = scvt.s32.f32 %s7342_s26 }
  0x17   : > { %s10469_s23 = scalar_lea.vmem %s12924_s0, %s7336_s20  ;;  %8758 = vmatpush3.bf16.msra.mxu0 %v9959_v5  ;;  %s9910_s29 = smul.u32 13, %s12954_s22 }
  0x18   : > { %8759 = vmatprep.subr.bf16.mxu0 %v10344_v1  ;;  %v723_v10 = vstv %s513_s12  ;;  %s9909_s12 = smul.u32 13, %s12952_s30  ;;  %v9964_v25 = vld [vmem:[%s10469_s23] sm:$0xff]   ;;  %v9965_v34 = vld [vmem:[%s10469_s23 + $0x8] sm:$0xff]   ;;  %v9966_v41 = vld [vmem:[%s10469_s23 + $0x10] sm:$0xff]   ;;  %s12956_s13 = smov (!%p471_p4, %s10326_s13), 7 }
  0x19   : > { %v724_v13 = vmul.f32 %v723_v10, %v10478_v7  ;;  %v726_v14 = vmul.f32 %v723_v10, %v10487_v8  ;;  %v725_v17 = vmul.f32 %v723_v10, %v10498_v11  ;;  %v727_v18 = vmul.f32 %v723_v10, %v10503_v12  ;;  %s7869_s25 = scalar_select %p10530_p2, 0, 1  ;;  %v9967_v46 = vld [vmem:[%s10469_s23 + $0x18] sm:$0xff]   ;;  %v9968_v51 = vld [vmem:[%s10469_s23 + $0x20] sm:$0xff]   ;;  %v9969_v57 = vld [vmem:[%s10469_s23 + $0x28] sm:$0xff]  }
  0x1a   : > { %s10523_s26 = sadd.s32 %s9909_s12, %s10455_s27  ;;  %v728_v22 = vmul.f32 %v723_v10, %v10517_v16  ;;  %v729_v23 = vmul.f32 %v723_v10, %v10528_v19  ;;  %v730_v27 = vmul.f32 %v723_v10, %v10541_v21  ;;  %v731_v29 = vmul.f32 %v723_v10, %v10549_v24  ;;  %v9970_v62 = vld [vmem:[%s10469_s23 + $0x30] ss:$0 sps:$4 sm:$0xff]  }
  0x1b   : > { %8760 = vmatpush3.bf16.msra.mxu0 %v9960_v6  ;;  %739 = vperm.xlu0 %9954, %v724_v13   ;;  %v732_v31 = vmul.f32 %v723_v10, %v10558_v26  ;;  %v733_v33 = vmul.f32 %v723_v10, %v10564_v28  ;;  %v734_v36 = vmul.f32 %v723_v10, %v10571_v30  ;;  %s12937_s21 = scalar_select %p10480_p13, 0, 1  ;;  %v9975_v13 = vld [vmem:[%s12930_s6 + $0x90] sm:$0xff]  }
  0x1c   : > { %8761 = vmatprep.subr.bf16.mxu0 %v10344_v1  ;;  %749 = vperm.xlu1 %9955, %v726_v14   ;;  %v735_v37 = vmul.f32 %v723_v10, %v10577_v32  ;;  %v736_v38 = vmul.f32 %v723_v10, %v10586_v35  ;;  %s4777_s11 = scvt.s32.f32 %s7869_s25  ;;  %s12938_s24 = sshll.u32 %s10523_s26, 2  ;;  %v9972_v10 = vld [vmem:[%s12930_s6 + $0x40] sm:$0xff]   ;;  %v9976_v14 = vld [vmem:[%s12930_s6 + $0x50] sm:$0xff]  }
  0x1d   : > { %s2620_s20 = scvt.s32.f32 %s12937_s21  ;;  %s10629_s12 = scalar_lea.vmem %s12925_s1, %s12938_s24  ;;  %8796 = vmatpush3.bf16.msra.mxu1 %v9972_v10 }
  0x1e   : > { %v4987_v55 = vstv %s4777_s11  ;;  %8797 = vmatprep.subr.bf16.mxu1 %v10344_v1  ;;  %s7340_s26 = sshll.u32 %s12950_s14, 6 }
  0x1f   : > { %8762 = vmatpush3.bf16.msra.mxu0 %v9961_v9  ;;  %744 = vperm.xlu0 %9954, %v725_v17   ;;  %v2830_v39 = vstv %s2620_s20  ;;  %v4988_v58 = vmul.f32 %v4987_v55, %v10478_v7  ;;  %v4989_v59 = vmul.f32 %v4987_v55, %v10498_v11  ;;  %v4990_v60 = vmul.f32 %v4987_v55, %v10487_v8  ;;  %v9971_v9 = vld [vmem:[%s12930_s6 + $0x80] sm:$0xff]   ;;  %s465_s20 = sadd.s32 %s9910_s29, %s10455_s27  ;;  %s7339_s27 = sshll.u32 %s12956_s13, 3 }
  0x20   : > { %8763 = vmatprep.subr.bf16.mxu0 %v10344_v1  ;;  %754 = vperm.xlu1 %9955, %v727_v18   ;;  %v2831_v40 = vmul.f32 %v2830_v39, %v10478_v7  ;;  %v2832_v42 = vmul.f32 %v2830_v39, %v10498_v11  ;;  %v2833_v43 = vmul.f32 %v2830_v39, %v10487_v8  ;;  %v9973_v11 = vld [vmem:[%s12930_s6 + $0x88] sm:$0xff]   ;;  %v9979_v17 = vld [vmem:[%s12930_s6 + $0xa0] sm:$0xff]   ;;  %s7338_s22 = sshll.u32 %s465_s20, 2 }
  0x21   : > { %v2834_v44 = vmul.f32 %v2830_v39, %v10503_v12  ;;  %v2835_v45 = vmul.f32 %v2830_v39, %v10517_v16  ;;  %v2836_v47 = vmul.f32 %v2830_v39, %v10528_v19  ;;  %v2837_v48 = vmul.f32 %v2830_v39, %v10541_v21  ;;  %v9980_v18 = vld [vmem:[%s12930_s6 + $0x60] sm:$0xff]   ;;  %s11721_s23 = scalar_lea.vmem %s12926_s2, %s7338_s22 }
  0x22   : > { %v2838_v49 = vmul.f32 %v2830_v39, %v10549_v24  ;;  %v2839_v50 = vmul.f32 %v2830_v39, %v10558_v26  ;;  %v2840_v52 = vmul.f32 %v2830_v39, %v10564_v28  ;;  %v2841_v53 = vmul.f32 %v2830_v39, %v10571_v30 }
  0x23   : > { %8764 = vmatpush3.bf16.msra.mxu0 %v9962_v15  ;;  %759 = vperm.xlu0 %9954, %v728_v22   ;;  %v2842_v54 = vmul.f32 %v2830_v39, %v10577_v32  ;;  %v2843_v56 = vmul.f32 %v2830_v39, %v10586_v35  ;;  %v4991_v61 = vmul.f32 %v4987_v55, %v10503_v12  ;;  %v9974_v12 = vld [vmem:[%s12930_s6 + $0x48] sm:$0xff]   ;;  %v9977_v15 = vld [vmem:[%s12930_s6 + $0x98] sm:$0xff]   ;;  %v9984_v22 = vld [vmem:[%s12930_s6 + $0x70] sm:$0xff]  }
  0x24   : > { %8765 = vmatprep.subr.bf16.mxu0 %v10344_v1  ;;  %764 = vperm.xlu1 %9955, %v729_v23   ;;  %v4992_v63 = vmul.f32 %v4987_v55, %v10517_v16  ;;  %v4993_v0 = vmul.f32 %v4987_v55, %v10528_v19  ;;  %v4994_v2 = vmul.f32 %v4987_v55, %v10541_v21  ;;  %v9978_v16 = vld [vmem:[%s12930_s6 + $0x58] sm:$0xff]   ;;  %v9981_v19 = vld [vmem:[%s12930_s6 + $0xa8] sm:$0xff]   ;;  %v9983_v21 = vld [vmem:[%s12930_s6 + $0xb0] sm:$0xff]  }
  0x25   : > { %v4995_v3 = vmul.f32 %v4987_v55, %v10549_v24  ;;  %v4996_v4 = vmul.f32 %v4987_v55, %v10558_v26  ;;  %v4997_v5 = vmul.f32 %v4987_v55, %v10564_v28  ;;  %v4998_v6 = vmul.f32 %v4987_v55, %v10571_v30  ;;  %8798 = vmatpush3.bf16.msra.mxu1 %v9974_v12  ;;  %v9985_v23 = vld [vmem:[%s12930_s6 + $0xb8] sm:$0xff]  }
  0x26   : > { %v4999_v7 = vmul.f32 %v4987_v55, %v10577_v32  ;;  %v5000_v8 = vmul.f32 %v4987_v55, %v10586_v35  ;;  %8799 = vmatprep.subr.bf16.mxu1 %v10344_v1  ;;  %v9986_v24 = vld [vmem:[%s12930_s6 + $0x78] sm:$0xff]  }
  0x27   : > { %8766 = vmatpush3.bf16.msra.mxu0 %v9963_v20  ;;  %769 = vperm.xlu0 %9954, %v730_v27   ;;  %v9982_v20 = vld [vmem:[%s12930_s6 + $0x68] sm:$0xff]  }
  0x28   : > { %8867 = vmatprep.subr.bf16.mxu0 %v10344_v1  ;;  %774 = vperm.xlu1 %9955, %v731_v29  }
  0x29   : > { %8800 = vmatpush3.bf16.msra.mxu1 %v9976_v14 }
  0x2a   : > { %8768 = vmatmul.mubr.bf16.vlgmr.msra.gmra.mrb[0].mxu0 %v9964_v25  ;;  %8801 = vmatprep.subr.bf16.mxu1 %v10344_v1  ;;  %v10714_v25 = vld [vmem:[%s12929_s5] ss:$0 sm:$0xff] }
  0x2b   : > { %8771 = vmatprep.mubr.msk.bf16.mxu0 %vm10345_vm0, %v10344_v1  ;;  %779 = vperm.xlu0 %9954, %v732_v31  }
  0x2c   : > { %784 = vperm.xlu1 %9955, %v733_v33   ;;  %8868 = vmatpush3.bf16.msra.mxu0 %v9971_v9 }
  0x2d   : > { %8869 = vmatprep.subr.bf16.mxu0 %v10344_v1  ;;  %8802 = vmatpush3.bf16.msra.mxu1 %v9978_v16 }
  0x2e   : > { %8803 = vmatprep.subr.bf16.mxu1 %v10344_v1 }
  0x2f   : > { %789 = vperm.xlu0 %9954, %v734_v36  }
  0x30   : > { %794 = vperm.xlu1 %9955, %v735_v37   ;;  %8870 = vmatpush3.bf16.msra.mxu0 %v9973_v11 }
  0x31   : > { %8871 = vmatprep.subr.bf16.mxu0 %v10344_v1  ;;  %8804 = vmatpush3.bf16.msra.mxu1 %v9980_v18 }
  0x32   : > { %8772 = vmatmul.mubr.bf16.gmra.mrb[4].mxu0 %v9965_v34  ;;  %8805 = vmatprep.subr.bf16.mxu1 %v10344_v1 }
  0x33   : > { %8775 = vmatprep.mubr.msk.bf16.mxu0 %vm10345_vm0, %v10344_v1  ;;  %799 = vperm.xlu0 %9954, %v736_v38  }
  0x34   : > { %2846 = vperm.xlu1 %9955, %v2831_v40   ;;  %8872 = vmatpush3.bf16.msra.mxu0 %v9975_v13 }
  0x35   : > { %8873 = vmatprep.subr.bf16.mxu0 %v10344_v1  ;;  %8806 = vmatpush3.bf16.msra.mxu1 %v9982_v20 }
  0x36   : > { %8807 = vmatprep.subr.bf16.mxu1 %v10344_v1 }
  0x37   : > { %2851 = vperm.xlu0 %9954, %v2832_v42  }
  0x38   : > { %2856 = vperm.xlu1 %9955, %v2833_v43   ;;  %8874 = vmatpush3.bf16.msra.mxu0 %v9977_v15 }
  0x39   : > { %8875 = vmatprep.subr.bf16.mxu0 %v10344_v1  ;;  %8808 = vmatpush3.bf16.msra.mxu1 %v9984_v22 }
  0x3a   : > { %8776 = vmatmul.mubr.bf16.gmra.mrb[8].mxu0 %v9966_v41  ;;  %8809 = vmatprep.subr.bf16.mxu1 %v10344_v1 }
  0x3b   : > { %8779 = vmatprep.mubr.msk.bf16.mxu0 %vm10345_vm0, %v10344_v1  ;;  %2861 = vperm.xlu0 %9954, %v2834_v44  }
  0x3c   : > { %2866 = vperm.xlu1 %9955, %v2835_v45   ;;  %8876 = vmatpush3.bf16.msra.mxu0 %v9979_v17 }
  0x3d   : > { %8877 = vmatprep.subr.bf16.mxu0 %v10344_v1  ;;  %8810 = vmatpush3.bf16.msra.mxu1 %v9986_v24 }
  0x3e   : > { %8831 = vmatprep.subr.bf16.mxu1 %v10344_v1 }
  0x3f   : > { %2871 = vperm.xlu0 %9954, %v2836_v47  }
  0x40   : > { %2876 = vperm.xlu1 %9955, %v2837_v48   ;;  %8878 = vmatpush3.bf16.msra.mxu0 %v9981_v19 }
  0x41   : > { %8879 = vmatprep.subr.bf16.mxu0 %v10344_v1 }
  0x42   : > { %8780 = vmatmul.mubr.bf16.gmra.mrb[12].mxu0 %v9967_v46 }
  0x43   : > { %8783 = vmatprep.mubr.msk.bf16.mxu0 %vm10345_vm0, %v10344_v1  ;;  %2881 = vperm.xlu0 %9954, %v2838_v49  }
  0x44   : > { %2886 = vperm.xlu1 %9955, %v2839_v50   ;;  %8880 = vmatpush3.bf16.msra.mxu0 %v9983_v21  ;;  %v9993_v21 = vld [vmem:[%s12930_s6 + $0x100] sm:$0xff]  }
  0x45   : > { %8881 = vmatprep.subr.bf16.mxu0 %v10344_v1 }
  0x47   : > { %2891 = vperm.xlu0 %9954, %v2840_v52  }
  0x48   : > { %2896 = vperm.xlu1 %9955, %v2841_v53   ;;  %8882 = vmatpush3.bf16.msra.mxu0 %v9985_v23 }
  0x49   : > { %8939 = vmatprep.subr.bf16.mxu0 %v10344_v1 }
  0x4a   : > { %8784 = vmatmul.mubr.bf16.gmra.mrb[16].mxu0 %v9968_v51 }
  0x4b   : > { %8787 = vmatprep.mubr.msk.bf16.mxu0 %vm10345_vm0, %v10344_v1  ;;  %2901 = vperm.xlu0 %9954, %v2842_v54  }
  0x4c   : > { %2906 = vperm.xlu1 %9955, %v2843_v56  }
  0x4f   : > { %5003 = vperm.xlu0 %9954, %v4988_v58  }
  0x50   : > { %5008 = vperm.xlu1 %9955, %v4989_v59  }
  0x52   : > { %8788 = vmatmul.mubr.bf16.gmra.mrb[20].mxu0 %v9969_v57 }
  0x53   : > { %8791 = vmatprep.mubr.msk.bf16.mxu0 %vm10345_vm0, %v10344_v1  ;;  %5013 = vperm.xlu0 %9954, %v4990_v60  }
  0x54   : > { %5018 = vperm.xlu1 %9955, %v4991_v61  }
  0x57   : > { %5023 = vperm.xlu0 %9954, %v4992_v63  }
  0x58   : > { %5028 = vperm.xlu1 %9955, %v4993_v0  }
  0x5a   : > { %8792 = vmatmul.mubr.bf16.gmra.mrb[24].mxu0 %v9970_v62 }
  0x5b   : > { %8883 = vmatprep.mubr.msk.bf16.mxu0 %vm10345_vm0, %v10344_v1  ;;  %5033 = vperm.xlu0 %9954, %v4994_v2  }
  0x5c   : > { %5038 = vperm.xlu1 %9955, %v4995_v3  }
  0x5f   : > { %5043 = vperm.xlu0 %9954, %v4996_v4  }
  0x60   : > { %5048 = vperm.xlu1 %9955, %v4997_v5  }
  0x63   : > { %5053 = vperm.xlu0 %9954, %v4998_v6  }
  0x64   : > { %5058 = vperm.xlu1 %9955, %v4999_v7  }
  0x67   : > { %5063 = vperm.xlu0 %9954, %v5000_v8  }
  0x9a   : > { %v740_v26 = vpop.permute.xlu0 %739 }
  0x9b   : > { %v750_v38 = vpop.permute.xlu1 %749 }
  0x9e   : > { %v745_v35 = vpop.permute.xlu0 %744 }
  0x9f   : > { %v755_v48 = vpop.permute.xlu1 %754 }
  0xa2   : > { %v760_v0 = vpop.permute.xlu0 %759 }
  0xa3   : > { %v765_v2 = vpop.permute.xlu1 %764 }
  0xa6   : > { %v770_v23 = vpop.permute.xlu0 %769 }
  0xa7   : > { %v775_v24 = vpop.permute.xlu1 %774 }
  0xfd   : > { %v643_v27 = vpop.f32.mrb[0].mxu0 }
  0xfe   : > { %v644_v28 = vadd.f32 %v10714_v25, %v643_v27  ;;  %v8769_v29 = vpop.f32.mrb[1].mxu0 }
  0xff   : > { %v646_v30 = vpop.f32.mrb[2].mxu0  ;;  %v9990_v29 = vld [vmem:[%s12930_s6] sm:$0xff]  }
 0x100   : > { %v697_v31 = vmax.f32 %v644_v28, 0.0  ;;  %v647_v32 = vadd.f32 %v10714_v25, %v646_v30  ;;  %v8770_v33 = vpop.f32.mrb[3].mxu0 }
 0x102   : > { %v698_v34 = vmax.f32 %v647_v32, 0.0  ;;  %v802_v36 = vmul.f32 %v740_v26, %v697_v31 }
 0x104   : > { %v803_v37 = vmul.f32 %v745_v35, %v698_v34  ;;  %v9995_v34 = vld [vmem:[%s12930_s6 + $0x108] sm:$0xff]  }
 0x105   : > { %v651_v39 = vpop.f32.mrb[4].mxu0 }
 0x106   : > { %v8197_v40 = vpack.c.bf16 %v803_v37, %v802_v36  ;;  %v652_v41 = vadd.f32 %v10714_v25, %v651_v39  ;;  %v8773_v42 = vpop.f32.mrb[5].mxu0 }
 0x107   : > { %v654_v43 = vpop.f32.mrb[6].mxu0 }
 0x108   : > { %8198 = vst [vmem:[#allocation2] sm:$0xff] %v8197_v40   ;;  %v699_v44 = vmax.f32 %v652_v41, 0.0  ;;  %v655_v45 = vadd.f32 %v10714_v25, %v654_v43  ;;  %v8774_v46 = vpop.f32.mrb[7].mxu0 }
 0x10a   : > { %v700_v47 = vmax.f32 %v655_v45, 0.0  ;;  %v804_v49 = vmul.f32 %v750_v38, %v699_v44  ;;  %v9991_v38 = vld [vmem:[%s12930_s6 + $0x8] sm:$0xff]  }
 0x10c   : > { %v805_v50 = vmul.f32 %v755_v48, %v700_v47  ;;  %v9998_v47 = vld [vmem:[%s12930_s6 + $0x110] sm:$0xff]  }
 0x10d   : > { %v659_v51 = vpop.f32.mrb[8].mxu0 }
 0x10e   : > { %v8202_v52 = vpack.c.bf16 %v805_v50, %v804_v49  ;;  %v660_v53 = vadd.f32 %v10714_v25, %v659_v51  ;;  %v8777_v54 = vpop.f32.mrb[9].mxu0  ;;  %v780_v49 = vpop.permute.xlu0 %779 }
 0x10f   : > { %v662_v55 = vpop.f32.mrb[10].mxu0  ;;  %v882_v56 = vld [vmem:[#allocation2 + $0x4] sm:$0xf]  ;;  %v881_v60 = vld [vmem:[#allocation2] sm:$0xf]  ;;  %v785_v50 = vpop.permute.xlu1 %784  ;;  %v9994_v54 = vld [vmem:[%s12930_s6 + $0x10] sm:$0xff]  }
 0x110   : > { %8320 = vst [vmem:[#allocation2 + $0x8] sm:$0xff] %v8202_v52   ;;  %v701_v57 = vmax.f32 %v660_v53, 0.0  ;;  %v663_v58 = vadd.f32 %v10714_v25, %v662_v55  ;;  %v8778_v59 = vpop.f32.mrb[11].mxu0  ;;  %v10722_v61 = vcombine.low %v881_v60, %v882_v56  ;;  %v1250_v63 = vld [vmem:[#allocation2] sm:$0xe] }
 0x111   : > { %v7426_v7 = vcombine.low %v1250_v63, %v882_v56  ;;  %v9999_v59 = vld [vmem:[%s12930_s6 + $0x118] sm:$0xff]  }
 0x112   : > { %v702_v62 = vmax.f32 %v663_v58, 0.0  ;;  %v957_v3 = vshll.u32 %v10722_v61, 16  ;;  %v806_v4 = vmul.f32 %v760_v0, %v701_v57  ;;  %v955_v19 = vshrl.u32 %v10722_v61, 16  ;;  %v9997_v0 = vld [vmem:[%s12930_s6 + $0x18] sm:$0xff]  }
 0x113   : > { %v1272_v17 = vrot.slane %v7426_v7, 1 }
 0x114   : > { %v807_v5 = vmul.f32 %v765_v2, %v702_v62  ;;  %v959_v11 = vrot.slane %v957_v3, 1 }
 0x115   : > { %v667_v6 = vpop.f32.mrb[12].mxu0 }
 0x116   : > { %v8207_v8 = vpack.c.bf16 %v807_v5, %v806_v4  ;;  %v668_v9 = vadd.f32 %v10714_v25, %v667_v6  ;;  %v8781_v10 = vpop.f32.mrb[13].mxu0  ;;  %v960_v27 = vor.u32 %v959_v11, %v955_v19 }
 0x117   : > { %v670_v12 = vpop.f32.mrb[14].mxu0  ;;  %v10726_v13 = vld [vmem:[#allocation2 + $0x8] sm:$0xff]   ;;  %v10002_v10 = vld [vmem:[%s12930_s6 + $0x120] sm:$0xff]  }
 0x118   : > { %8321 = vst [vmem:[#allocation2 + $0x10] sm:$0xff] %v8207_v8   ;;  %v703_v14 = vmax.f32 %v668_v9, 0.0  ;;  %v671_v15 = vadd.f32 %v10714_v25, %v670_v12  ;;  %v8782_v16 = vpop.f32.mrb[15].mxu0  ;;  %v1273_v18 = vrot.slane %v10726_v13, 1  ;;  %v962_v20 = vshll.u32 %v10726_v13, 16  ;;  %v790_v12 = vpop.permute.xlu0 %789 }
 0x119   : > { %v966_v45 = vshrl.u32 %v10726_v13, 16 }
 0x11a   : > { %v704_v22 = vmax.f32 %v671_v15, 0.0  ;;  %v1274_v26 = vsel %vm1271_vm1, %v1272_v17, %v1273_v18  ;;  %v964_v28 = vrot.slane %v962_v20, 1  ;;  %v808_v30 = vmul.f32 %v770_v23, %v703_v14  ;;  %v795_v14 = vpop.permute.xlu1 %794  ;;  %v10004_v23 = vld [vmem:[%s12930_s6 + $0x128] sm:$0xff]  }
 0x11b   : > { %8884 = vmatmul.mubr.bf16.vlgmr.msra.gmra.mrb[28].mxu0 %v1274_v26 }
 0x11c   : > { %v809_v31 = vmul.f32 %v775_v24, %v704_v22  ;;  %v965_v33 = vsel %vm953_vm2, %v960_v27, %v964_v28  ;;  %8887 = vmatprep.mubr.msk.bf16.mxu0 %vm10345_vm0, %v10344_v1  ;;  %8940 = vmatpush3.bf16.msra.mxu0 %v9993_v21  ;;  %v968_v52 = vor.u32 %v966_v45, %v964_v28  ;;  %v10003_v27 = vld [vmem:[%s12930_s6 + $0x28] sm:$0xff]   ;;  %v10005_v45 = vld [vmem:[%s12930_s6 + $0x30] sm:$0xff]  }
 0x11d   : > { %v675_v32 = vpop.f32.mrb[16].mxu0  ;;  %8812 = vmatmul.mubr.bf16.vlgmr.msra.gmra.mrb[0].mxu1 %v965_v33  ;;  %8941 = vmatprep.subr.bf16.mxu0 %v10344_v1  ;;  %v10808_v28 = vld [vmem:[#allocation2 + $0x8] sm:$0xf] }
 0x11e   : > { %v8212_v35 = vpack.c.bf16 %v809_v31, %v808_v30  ;;  %v676_v36 = vadd.f32 %v10714_v25, %v675_v32  ;;  %v8785_v37 = vpop.f32.mrb[17].mxu0  ;;  %8832 = vmatpush3.bf16.msra.mxu1 %v9990_v29  ;;  %8815 = vmatprep.mubr.msk.bf16.mxu1 %vm10345_vm0, %v10344_v1  ;;  %v1419_v31 = vld [vmem:[#allocation2 + $0x4] sm:$0xe] }
 0x11f   : > { %v678_v39 = vpop.f32.mrb[18].mxu0  ;;  %v10750_v40 = vld [vmem:[#allocation2 + $0x10] sm:$0xff]   ;;  %8833 = vmatprep.subr.bf16.mxu1 %v10344_v1 }
 0x120   : > { %8322 = vst [vmem:[#allocation2 + $0x18] sm:$0xff] %v8212_v35   ;;  %v705_v41 = vmax.f32 %v676_v36, 0.0  ;;  %v679_v42 = vadd.f32 %v10714_v25, %v678_v39  ;;  %v8786_v43 = vpop.f32.mrb[19].mxu0  ;;  %v1275_v44 = vrot.slane %v10750_v40, 1  ;;  %v970_v46 = vshll.u32 %v10750_v40, 16  ;;  %8942 = vmatpush3.bf16.msra.mxu0 %v9995_v34  ;;  %v10007_v36 = vld [vmem:[%s12930_s6 + $0x130] sm:$0xff]  }
 0x121   : > { %8943 = vmatprep.subr.bf16.mxu0 %v10344_v1  ;;  %v974_v8 = vshrl.u32 %v10750_v40, 16  ;;  %v10825_v39 = vld [vmem:[#allocation2 + $0xc] sm:$0xff]  }
 0x122   : > { %v706_v48 = vmax.f32 %v679_v42, 0.0  ;;  %8834 = vmatpush3.bf16.msra.mxu1 %v9991_v38  ;;  %v1276_v51 = vsel %vm1271_vm1, %v1273_v18, %v1275_v44  ;;  %v972_v53 = vrot.slane %v970_v46, 1  ;;  %v810_v55 = vmul.f32 %v780_v49, %v705_v41  ;;  %v10000_v18 = vld [vmem:[%s12930_s6 + $0x20] sm:$0xff]   ;;  %v10009_v49 = vld [vmem:[%s12930_s6 + $0x138] sm:$0xff]  }
 0x123   : > { %8888 = vmatmul.mubr.bf16.gmra.mrb[32].mxu0 %v1276_v51  ;;  %8835 = vmatprep.subr.bf16.mxu1 %v10344_v1  ;;  %v10823_v38 = vcombine.low %v1419_v31, %v10808_v28  ;;  %v10021_v31 = vld [vmem:[%s12930_s6 + $0x198] sm:$0xff]  }
 0x124   : > { %v811_v56 = vmul.f32 %v785_v50, %v706_v48  ;;  %v973_v58 = vsel %vm953_vm2, %v968_v52, %v972_v53  ;;  %8891 = vmatprep.mubr.msk.bf16.mxu0 %vm10345_vm0, %v10344_v1  ;;  %8944 = vmatpush3.bf16.msra.mxu0 %v9998_v47  ;;  %v976_v16 = vor.u32 %v974_v8, %v972_v53  ;;  %v10008_v50 = vld [vmem:[%s12930_s6 + $0x38] sm:$0xff]   ;;  %v1653_v52 = vshrl.u32 %v10825_v39, 16 }
 0x125   : > { %v683_v57 = vpop.f32.mrb[20].mxu0  ;;  %8816 = vmatmul.mubr.bf16.gmra.mrb[4].mxu1 %v973_v58  ;;  %8945 = vmatprep.subr.bf16.mxu0 %v10344_v1  ;;  %v1645_v51 = vshrl.u32 %v10823_v38, 16  ;;  %v1648_v58 = vshll.u32 %v10823_v38, 16 }
 0x126   : > { %v8217_v60 = vpack.c.bf16 %v811_v56, %v810_v55  ;;  %v684_v62 = vadd.f32 %v10714_v25, %v683_v57  ;;  %v8789_v63 = vpop.f32.mrb[21].mxu0  ;;  %8836 = vmatpush3.bf16.msra.mxu1 %v9994_v54  ;;  %8819 = vmatprep.mubr.msk.bf16.mxu1 %vm10345_vm0, %v10344_v1  ;;  %v1656_v54 = vshll.u32 %v10825_v39, 16 }
 0x127   : > { %v686_v2 = vpop.f32.mrb[22].mxu0  ;;  %v10779_v3 = vld [vmem:[#allocation2 + $0x18] sm:$0xff]   ;;  %8837 = vmatprep.subr.bf16.mxu1 %v10344_v1 }
 0x128   : > { %8323 = vst [vmem:[#allocation2 + $0x20] sm:$0xff] %v8217_v60   ;;  %v707_v4 = vmax.f32 %v684_v62, 0.0  ;;  %v687_v5 = vadd.f32 %v10714_v25, %v686_v2  ;;  %v8790_v6 = vpop.f32.mrb[23].mxu0  ;;  %v1277_v7 = vrot.slane %v10779_v3, 1  ;;  %v978_v9 = vshll.u32 %v10779_v3, 16  ;;  %8946 = vmatpush3.bf16.msra.mxu0 %v9999_v59  ;;  %v10852_v2 = vld [vmem:[#allocation2 + $0x14] sm:$0xff]  }
 0x129   : > { %8947 = vmatprep.subr.bf16.mxu0 %v10344_v1  ;;  %v982_v34 = vshrl.u32 %v10779_v3, 16  ;;  %v1655_v59 = vrot.slane %v1653_v52, 1  ;;  %v1650_v6 = vrot.slane %v1648_v58, 2  ;;  %v1662_v8 = vshrl.u32 %v10852_v2, 16  ;;  %v10031_v52 = vld [vmem:[%s12930_s6 + $0x1b8] sm:$0xff]  }
 0x12a   : > { %v708_v11 = vmax.f32 %v687_v5, 0.0  ;;  %v1278_v15 = vsel %vm1271_vm1, %v1275_v44, %v1277_v7  ;;  %8838 = vmatpush3.bf16.msra.mxu1 %v9997_v0  ;;  %v980_v17 = vrot.slane %v978_v9, 1  ;;  %v812_v19 = vmul.f32 %v790_v12, %v707_v4 }
 0x12b   : > { %8892 = vmatmul.mubr.bf16.gmra.mrb[36].mxu0 %v1278_v15  ;;  %8839 = vmatprep.subr.bf16.mxu1 %v10344_v1  ;;  %v1658_v0 = vrot.slane %v1656_v54, 2  ;;  %v1647_v5 = vrot.slane %v1645_v51, 1  ;;  %v1665_v9 = vshll.u32 %v10852_v2, 16  ;;  %v1664_v15 = vrot.slane %v1662_v8, 1  ;;  %v10030_v54 = vld [vmem:[%s12930_s6 + $0xf8] sm:$0xff]  }
 0x12c   : > { %v813_v20 = vmul.f32 %v795_v14, %v708_v11  ;;  %v981_v22 = vsel %vm953_vm2, %v976_v16, %v980_v17  ;;  %8895 = vmatprep.mubr.msk.bf16.mxu0 %vm10345_vm0, %v10344_v1  ;;  %8948 = vmatpush3.bf16.msra.mxu0 %v10002_v10  ;;  %v984_v43 = vor.u32 %v982_v34, %v980_v17  ;;  %v10015_v11 = vld [vmem:[%s12930_s6 + $0x180] sm:$0xff]  }
 0x12d   : > { %v691_v21 = vpop.f32.mrb[24].mxu0  ;;  %8820 = vmatmul.mubr.bf16.gmra.mrb[8].mxu1 %v981_v22  ;;  %8949 = vmatprep.subr.bf16.mxu0 %v10344_v1  ;;  %v1651_v10 = vor.u32 %v1650_v6, %v1647_v5  ;;  %v10012_v14 = vld [vmem:[%s12930_s6 + $0xc0] sm:$0xff]   ;;  %v1667_v16 = vrot.slane %v1665_v9, 2  ;;  %v10986_v5 = vld [vmem:[#allocation2 + $0x18] sm:$0xff]   ;;  %v1478_v9 = vrot.slane %v10852_v2, 1 }
 0x12e   : > { %v8222_v24 = vpack.c.bf16 %v813_v20, %v812_v19  ;;  %v692_v26 = vadd.f32 %v10714_v25, %v691_v21  ;;  %v8793_v29 = vpop.f32.mrb[25].mxu0  ;;  %8840 = vmatpush3.bf16.msra.mxu1 %v10000_v18  ;;  %8823 = vmatprep.mubr.msk.bf16.mxu1 %vm10345_vm0, %v10344_v1  ;;  %v800_v25 = vpop.permute.xlu0 %799  ;;  %v10017_v18 = vld [vmem:[%s12930_s6 + $0x188] sm:$0xff]   ;;  %v2061_v8 = vrot.slane %v10986_v5, 2 }
 0x12f   : > { %v10810_v30 = vld [vmem:[#allocation2 + $0x20] sm:$0xff]   ;;  %8841 = vmatprep.subr.bf16.mxu1 %v10344_v1  ;;  %v694_v41 = vpop.f32.mrb[26].mxu0  ;;  %v10013_v19 = vld [vmem:[%s12930_s6 + $0xc8] sm:$0xff]   ;;  %v1668_v20 = vor.u32 %v1667_v16, %v1664_v15  ;;  %v10043_v16 = vld [vmem:[%s12930_s6 + $0x218] sm:$0xff]  }
 0x130   : > { %8324 = vst [vmem:[#allocation2 + $0x28] sm:$0xff] %v8222_v24   ;;  %v709_v32 = vmax.f32 %v692_v26, 0.0  ;;  %v1279_v33 = vrot.slane %v10810_v30, 1  ;;  %v986_v35 = vshll.u32 %v10810_v30, 16  ;;  %8950 = vmatpush3.bf16.msra.mxu0 %v10004_v23  ;;  %v8794_v46 = vpop.f32.mrb[27].mxu0  ;;  %v990_v56 = vshrl.u32 %v10810_v30, 16 }
 0x131   : > { %8951 = vmatprep.subr.bf16.mxu0 %v10344_v1  ;;  %v10869_v17 = vld [vmem:[#allocation2 + $0x1c] sm:$0xff]   ;;  %v10016_v24 = vld [vmem:[%s12930_s6 + $0xd0] sm:$0xff]  }
 0x132   : > { %v814_v37 = vmul.f32 %v800_v25, %v709_v32  ;;  %v1280_v42 = vsel %vm1271_vm1, %v1277_v7, %v1279_v33  ;;  %v988_v44 = vrot.slane %v986_v35, 1  ;;  %8842 = vmatpush3.bf16.msra.mxu1 %v10003_v27  ;;  %v1659_v7 = vor.u32 %v1658_v0, %v1655_v59  ;;  %v10019_v25 = vld [vmem:[%s12930_s6 + $0xd8] sm:$0xff]  }
 0x133   : > { %8896 = vmatmul.mubr.bf16.gmra.mrb[40].mxu0 %v1280_v42  ;;  %8843 = vmatprep.subr.bf16.mxu1 %v10344_v1  ;;  %v1671_v21 = vshrl.u32 %v10869_v17, 16  ;;  %v1674_v22 = vshll.u32 %v10869_v17, 16 }
 0x134   : > { %v8167_v47 = vpack.c.bf16 %v814_v37, %v814_v37  ;;  %v989_v48 = vsel %vm953_vm2, %v984_v43, %v988_v44  ;;  %8899 = vmatprep.mubr.msk.bf16.mxu0 %vm10345_vm0, %v10344_v1  ;;  %8952 = vmatpush3.bf16.msra.mxu0 %v10007_v36  ;;  %v992_v62 = vor.u32 %v990_v56, %v988_v44  ;;  %v10022_v36 = vld [vmem:[%s12930_s6 + $0xe0] sm:$0xff]   ;;  %v10026_v43 = vld [vmem:[%s12930_s6 + $0x1a8] sm:$0xff]  }
 0x135   : > { %8824 = vmatmul.mubr.bf16.gmra.mrb[12].mxu1 %v989_v48  ;;  %8953 = vmatprep.subr.bf16.mxu0 %v10344_v1  ;;  %v1660_v12 = vsel %vm1643_vm3, %v1651_v10, %v1659_v7  ;;  %v1669_v23 = vsel %vm1643_vm3, %v1659_v7, %v1668_v20  ;;  %v1673_v26 = vrot.slane %v1671_v21, 1  ;;  %v1676_v27 = vrot.slane %v1674_v22, 2  ;;  %v10960_v56 = vld [vmem:[#allocation2 + $0xc] sm:$0xf]  ;;  %v10042_v10 = vld [vmem:[%s12930_s6 + $0x210] sm:$0xff]   ;;  %v10046_v21 = vld [vmem:[%s12930_s6 + $0x220] sm:$0xff]  }
 0x136   : > { %880 = vst [vmem:[#allocation2 + $0x30] sm:$0xf] %v8167_v47  ;;  %8844 = vmatpush3.bf16.msra.mxu1 %v10005_v45  ;;  %8827 = vmatprep.mubr.msk.bf16.mxu1 %vm10345_vm0, %v10344_v1  ;;  %v10025_v45 = vld [vmem:[%s12930_s6 + $0xe8] sm:$0xff]  }
 0x137   : > { %v10006_v53 = vld [vmem:[#allocation2 + $0x28] ss:$0 sps:$4 sm:$0x11]   ;;  %8845 = vmatprep.subr.bf16.mxu1 %v10344_v1  ;;  %v1677_v32 = vor.u32 %v1676_v27, %v1673_v26  ;;  %v10920_v42 = vld [vmem:[#allocation2 + $0x2c] ss:$0 sps:$4 sm:$0x33]  }
 0x138   : > { %v1281_v55 = vrot.slane %v10006_v53, 1  ;;  %v994_v57 = vshll.u32 %v10006_v53, 16  ;;  %8954 = vmatpush3.bf16.msra.mxu0 %v10009_v49  ;;  %v10894_v29 = vld [vmem:[#allocation2 + $0x24] sm:$0xff]   ;;  %v1689_v46 = vshrl.u32 %v10920_v42, 16  ;;  %v1692_v47 = vshll.u32 %v10920_v42, 16  ;;  %v10027_v49 = vld [vmem:[%s12930_s6 + $0xf0] sm:$0xff]  }
 0x139   : > { %9011 = vmatprep.subr.bf16.mxu0 %v10344_v1  ;;  %v1683_v34 = vshll.u32 %v10894_v29, 16  ;;  %v1678_v35 = vsel %vm1643_vm3, %v1668_v20, %v1677_v32  ;;  %v10039_v7 = vld [vmem:[%s12930_s6 + $0x208] sm:$0xff]   ;;  %v1480_v20 = vrot.slane %v10869_v17, 1 }
 0x13a   : > { %v1282_v60 = vsel %vm1271_vm1, %v1279_v33, %v1281_v55  ;;  %v996_v63 = vrot.slane %v994_v57, 1  ;;  %8846 = vmatpush3.bf16.msra.mxu1 %v10008_v50  ;;  %v1680_v33 = vshrl.u32 %v10894_v29, 16  ;;  %v1691_v50 = vrot.slane %v1689_v46, 1  ;;  %v2002_v55 = vld [vmem:[#allocation2 + $0x8] sm:$0xc]  ;;  %v10964_v57 = vld [vmem:[#allocation2 + $0x10] sm:$0xff]  }
 0x13b   : > { %8900 = vmatmul.mubr.bf16.gmra.mrb[44].mxu0 %v1282_v60  ;;  %8903 = vmatprep.subr.bf16.mxu1 %v10344_v1  ;;  %v1685_v41 = vrot.slane %v1683_v34, 2  ;;  %v1694_v51 = vrot.slane %v1692_v47, 2  ;;  %v10970_v58 = vcombine.low %v2002_v55, %v10960_v56  ;;  %v2059_v59 = vrot.slane %v10964_v57, 2  ;;  %v10048_v26 = vld [vmem:[%s12930_s6 + $0x228] sm:$0xff]   ;;  %v10049_v34 = vld [vmem:[%s12930_s6 + $0x170] sm:$0xff]   ;;  %v10057_v55 = vld [vmem:[%s12930_s6 + $0x1c0] sm:$0xff]  }
 0x13c   : > { %v997_v4 = vsel %vm953_vm2, %v992_v62, %v996_v63  ;;  %8955 = vmatprep.mubr.msk.bf16.mxu0 %vm10345_vm0, %v10344_v1  ;;  %v1682_v37 = vrot.slane %v1680_v33, 1  ;;  %v1476_v62 = vrot.slane %v10825_v39, 1  ;;  %v10037_v63 = vld [vmem:[%s12930_s6 + $0x200] sm:$0xff]  }
 0x13d   : > { %8828 = vmatmul.mubr.bf16.gmra.mrb[16].mxu1 %v997_v4  ;;  %v1695_v53 = vor.u32 %v1694_v51, %v1691_v50  ;;  %v2058_v60 = vrot.slane %v10970_v58, 2  ;;  %v1475_v4 = vrot.slane %v10823_v38, 1  ;;  %v10035_v38 = vld [vmem:[%s12930_s6 + $0x148] sm:$0xff]  }
 0x13e   : > { %8847 = vmatprep.mubr.msk.bf16.mxu1 %vm10345_vm0, %v10344_v1  ;;  %v1686_v44 = vor.u32 %v1685_v41, %v1682_v37  ;;  %v1479_v15 = vsel %vm1271_vm1, %v1476_v62, %v1478_v9  ;;  %v10054_v37 = vld [vmem:[%s12930_s6 + $0x238] sm:$0xff]  }
 0x13f   : > { %v2060_v0 = vsel %vm1854_vm4, %v2058_v60, %v2059_v59  ;;  %v1477_v6 = vsel %vm1271_vm1, %v1475_v4, %v1476_v62  ;;  %v10059_v60 = vld [vmem:[%s12930_s6 + $0x1d0] sm:$0xff]  }
 0x140   : > { %v1687_v48 = vsel %vm1643_vm3, %v1677_v32, %v1686_v44  ;;  %v1482_v32 = vrot.slane %v10894_v29, 1 }
 0x143   : > { %8956 = vmatmul.mubr.bf16.vlgmr.msra.gmra.mrb[48].mxu0 %v1660_v12  ;;  %v10038_v12 = vld [vmem:[%s12930_s6 + $0x150] sm:$0xff]  }
 0x144   : > { %8959 = vmatprep.mubr.msk.bf16.mxu0 %vm10345_vm0, %v10344_v1  ;;  %9012 = vmatpush3.bf16.msra.mxu0 %v10015_v11  ;;  %v2062_v11 = vsel %vm1854_vm4, %v2059_v59, %v2061_v8 }
 0x145   : > { %8848 = vmatmul.mubr.bf16.vlgmr.msra.gmra.mrb[20].mxu1 %v10722_v61  ;;  %9013 = vmatprep.subr.bf16.mxu0 %v10344_v1  ;;  %v10020_v61 = vld [vmem:[%s12930_s6 + $0x190] sm:$0xff]  }
 0x146   : > { %8904 = vmatpush3.bf16.msra.mxu1 %v10012_v14  ;;  %8851 = vmatprep.mubr.msk.bf16.mxu1 %vm10345_vm0, %v10344_v1  ;;  %v11011_v14 = vld [vmem:[#allocation2 + $0x20] sm:$0xff]  }
 0x147   : > { %8905 = vmatprep.subr.bf16.mxu1 %v10344_v1 }
 0x148   : > { %9014 = vmatpush3.bf16.msra.mxu0 %v10017_v18  ;;  %v2063_v18 = vrot.slane %v11011_v14, 2 }
 0x149   : > { %9015 = vmatprep.subr.bf16.mxu0 %v10344_v1 }
 0x14a   : > { %8906 = vmatpush3.bf16.msra.mxu1 %v10013_v19  ;;  %v10041_v19 = vld [vmem:[%s12930_s6 + $0x158] sm:$0xff]   ;;  %v2064_v22 = vsel %vm1854_vm4, %v2061_v8, %v2063_v18 }
 0x14b   : > { %8960 = vmatmul.mubr.bf16.gmra.mrb[52].mxu0 %v1669_v23  ;;  %8907 = vmatprep.subr.bf16.mxu1 %v10344_v1  ;;  %v11037_v23 = vld [vmem:[#allocation2 + $0x28] sm:$0xff]  }
 0x14c   : > { %8963 = vmatprep.mubr.msk.bf16.mxu0 %vm10345_vm0, %v10344_v1  ;;  %9016 = vmatpush3.bf16.msra.mxu0 %v10020_v61  ;;  %v10044_v61 = vld [vmem:[%s12930_s6 + $0x160] sm:$0xff]   ;;  %v2065_v27 = vrot.slane %v11037_v23, 2 }
 0x14d   : > { %8852 = vmatmul.mubr.bf16.gmra.mrb[24].mxu1 %v10726_v13  ;;  %9017 = vmatprep.subr.bf16.mxu0 %v10344_v1  ;;  %v10024_v13 = vld [vmem:[%s12930_s6 + $0x1a0] sm:$0xff]  }
 0x14e   : > { %8908 = vmatpush3.bf16.msra.mxu1 %v10016_v24  ;;  %8855 = vmatprep.mubr.msk.bf16.mxu1 %vm10345_vm0, %v10344_v1  ;;  %v1481_v24 = vsel %vm1271_vm1, %v1478_v9, %v1480_v20  ;;  %v2066_v33 = vsel %vm1854_vm4, %v2063_v18, %v2065_v27  ;;  %v10063_v9 = vld [vmem:[%s12930_s6 + $0x1f0] sm:$0xff]   ;;  %v2239_v18 = vshll.u32 %v10964_v57, 16 }
 0x14f   : > { %8909 = vmatprep.subr.bf16.mxu1 %v10344_v1 }
 0x150   : > { %9018 = vmatpush3.bf16.msra.mxu0 %v10021_v31  ;;  %v10047_v31 = vld [vmem:[%s12930_s6 + $0x168] sm:$0xff]  }
 0x151   : > { %9019 = vmatprep.subr.bf16.mxu0 %v10344_v1 }
 0x152   : > { %8910 = vmatpush3.bf16.msra.mxu1 %v10019_v25  ;;  %v10051_v25 = vld [vmem:[%s12930_s6 + $0x230] sm:$0xff]  }
 0x153   : > { %8964 = vmatmul.mubr.bf16.gmra.mrb[56].mxu0 %v1678_v35  ;;  %8911 = vmatprep.subr.bf16.mxu1 %v10344_v1  ;;  %v1483_v35 = vsel %vm1271_vm1, %v1480_v20, %v1482_v32  ;;  %v2228_v20 = vshrl.u32 %v10970_v58, 16 }
 0x154   : > { %8967 = vmatprep.mubr.msk.bf16.mxu0 %vm10345_vm0, %v10344_v1  ;;  %9020 = vmatpush3.bf16.msra.mxu0 %v10024_v13  ;;  %v10050_v13 = vld [vmem:[#allocation2 + $0x30] ss:$0 sps:$4 sm:$0x33]  }
 0x155   : > { %8856 = vmatmul.mubr.bf16.gmra.mrb[28].mxu1 %v10750_v40  ;;  %9021 = vmatprep.subr.bf16.mxu0 %v10344_v1  ;;  %v10029_v40 = vld [vmem:[%s12930_s6 + $0x1b0] sm:$0xff]   ;;  %v2067_v41 = vrot.slane %v10050_v13, 2  ;;  %v10067_v13 = vld [vmem:[%s12928_s4 + $0x8] sm:$0xff]  }
 0x156   : > { %8912 = vmatpush3.bf16.msra.mxu1 %v10022_v36  ;;  %8859 = vmatprep.mubr.msk.bf16.mxu1 %vm10345_vm0, %v10344_v1  ;;  %v10052_v36 = vld [vmem:[#allocation2 + $0x2c] ss:$0 sps:$4 sm:$0x11]  }
 0x157   : > { %8913 = vmatprep.subr.bf16.mxu1 %v10344_v1  ;;  %v2068_v46 = vsel %vm1854_vm4, %v2065_v27, %v2067_v41  ;;  %v2245_v27 = vshrl.u32 %v10986_v5, 16 }
 0x158   : > { %9022 = vmatpush3.bf16.msra.mxu0 %v10026_v43  ;;  %v10053_v43 = vld [vmem:[%s12930_s6 + $0x178] sm:$0xff]  }
 0x159   : > { %9023 = vmatprep.subr.bf16.mxu0 %v10344_v1 }
 0x15a   : > { %8914 = vmatpush3.bf16.msra.mxu1 %v10025_v45  ;;  %v2416_v45 = vld [vmem:[#allocation2 + $0x8] sm:$0x8] }
 0x15b   : > { %8968 = vmatmul.mubr.bf16.gmra.mrb[60].mxu0 %v1687_v48  ;;  %8915 = vmatprep.subr.bf16.mxu1 %v10344_v1  ;;  %v1833_v48 = vld [vmem:[#allocation2 + $0x4] sm:$0xc] }
 0x15c   : > { %8971 = vmatprep.mubr.msk.bf16.mxu0 %vm10345_vm0, %v10344_v1  ;;  %9024 = vmatpush3.bf16.msra.mxu0 %v10029_v40  ;;  %v7586_v40 = vcombine.low %v2416_v45, %v10960_v56  ;;  %v7506_v50 = vcombine.low %v1833_v48, %v10808_v28  ;;  %v10058_v28 = vld [vmem:[%s12930_s6 + $0x1c8] sm:$0xff]  }
 0x15d   : > { %8860 = vmatmul.mubr.bf16.gmra.mrb[32].mxu1 %v10779_v3  ;;  %9025 = vmatprep.subr.bf16.mxu0 %v10344_v1  ;;  %v1696_v3 = vsel %vm1643_vm3, %v1686_v44, %v1695_v53  ;;  %v1484_v44 = vrot.slane %v10052_v36, 1  ;;  %v2257_v36 = vshll.u32 %v11011_v14, 16 }
 0x15e   : > { %8916 = vmatpush3.bf16.msra.mxu1 %v10027_v49  ;;  %8863 = vmatprep.mubr.msk.bf16.mxu1 %vm10345_vm0, %v10344_v1  ;;  %v2439_v49 = vrot.slane %v10964_v57, 3  ;;  %v2438_v51 = vrot.slane %v7586_v40, 3  ;;  %v10070_v40 = vld [vmem:[%s12928_s4 + $0x20] sm:$0xff]  }
 0x15f   : > { %8917 = vmatprep.subr.bf16.mxu1 %v10344_v1  ;;  %v1485_v47 = vsel %vm1271_vm1, %v1482_v32, %v1484_v44  ;;  %v10066_v32 = vld [vmem:[%s12928_s4] sm:$0xff]   ;;  %v2259_v44 = vrot.slane %v2257_v36, 3 }
 0x160   : > { %9026 = vmatpush3.bf16.msra.mxu0 %v10031_v52  ;;  %v1856_v52 = vrot.slane %v10825_v39, 2  ;;  %v2440_v53 = vsel %vm2437_vm5, %v2438_v51, %v2439_v49  ;;  %v2441_v39 = vrot.slane %v10986_v5, 3 }
 0x161   : > { %9083 = vmatprep.subr.bf16.mxu0 %v10344_v1 }
 0x162   : > { %8918 = vmatpush3.bf16.msra.mxu1 %v10030_v54  ;;  %v1855_v54 = vrot.slane %v7506_v50, 2  ;;  %v2442_v59 = vsel %vm2437_vm5, %v2439_v49, %v2441_v39 }
 0x163   : > { %8972 = vmatmul.mubr.bf16.gmra.mrb[64].mxu0 %v1696_v3  ;;  %8975 = vmatprep.subr.bf16.mxu1 %v10344_v1  ;;  %v1858_v3 = vrot.slane %v10852_v2, 2  ;;  %v10060_v2 = vld [vmem:[%s12930_s6 + $0x1d8] sm:$0xff]  }
 0x164   : > { %9027 = vmatprep.mubr.msk.bf16.mxu0 %vm10345_vm0, %v10344_v1  ;;  %v1857_v56 = vsel %vm1854_vm4, %v1855_v54, %v1856_v52  ;;  %v10072_v54 = vld [vmem:[%s12928_s4 + $0x30] sm:$0xff]  }
 0x165   : > { %8864 = vmatmul.mubr.bf16.gmra.mrb[36].mxu1 %v10810_v30  ;;  %v10034_v30 = vld [vmem:[%s12930_s6 + $0x140] sm:$0xff]   ;;  %v1859_v62 = vsel %vm1854_vm4, %v1856_v52, %v1858_v3 }
 0x166   : > { %8919 = vmatprep.mubr.msk.bf16.mxu1 %vm10345_vm0, %v10344_v1 }
 0x16b   : > { %9028 = vmatmul.mubr.bf16.vlgmr.msra.gmra.mrb[68].mxu0 %v2060_v0  ;;  %v1860_v0 = vrot.slane %v10869_v17, 2  ;;  %v10062_v17 = vld [vmem:[%s12930_s6 + $0x1e8] sm:$0xff]  }
 0x16c   : > { %9031 = vmatprep.mubr.msk.bf16.mxu0 %vm10345_vm0, %v10344_v1  ;;  %9084 = vmatpush3.bf16.msra.mxu0 %v10037_v63  ;;  %v2443_v63 = vrot.slane %v11011_v14, 3 }
 0x16d   : > { %8920 = vmatmul.mubr.bf16.vlgmr.msra.gmra.mrb[40].mxu1 %v1477_v6  ;;  %9085 = vmatprep.subr.bf16.mxu0 %v10344_v1  ;;  %v1861_v6 = vsel %vm1854_vm4, %v1858_v3, %v1860_v0 }
 0x16e   : > { %8976 = vmatpush3.bf16.msra.mxu1 %v10034_v30  ;;  %8923 = vmatprep.mubr.msk.bf16.mxu1 %vm10345_vm0, %v10344_v1  ;;  %v2444_v4 = vsel %vm2437_vm5, %v2441_v39, %v2443_v63  ;;  %v10061_v30 = vld [vmem:[%s12930_s6 + $0x1e0] sm:$0xff]   ;;  %v10073_v39 = vld [vmem:[%s12928_s4 + $0x38] sm:$0xff]  }
 0x16f   : > { %8977 = vmatprep.subr.bf16.mxu1 %v10344_v1 }
 0x170   : > { %9086 = vmatpush3.bf16.msra.mxu0 %v10039_v7  ;;  %v2445_v7 = vrot.slane %v11037_v23, 3 }
 0x171   : > { %9087 = vmatprep.subr.bf16.mxu0 %v10344_v1 }
 0x172   : > { %8978 = vmatpush3.bf16.msra.mxu1 %v10035_v38  ;;  %v1862_v38 = vrot.slane %v10894_v29, 2  ;;  %v2446_v8 = vsel %vm2437_vm5, %v2443_v63, %v2445_v7 }
 0x173   : > { %9032 = vmatmul.mubr.bf16.gmra.mrb[72].mxu0 %v2062_v11  ;;  %8979 = vmatprep.subr.bf16.mxu1 %v10344_v1 }
 0x174   : > { %9035 = vmatprep.mubr.msk.bf16.mxu0 %vm10345_vm0, %v10344_v1  ;;  %9088 = vmatpush3.bf16.msra.mxu0 %v10042_v10  ;;  %v11140_v10 = vld [vmem:[#allocation2 + $0x30] ss:$0 sps:$4 sm:$0x77]   ;;  %v1863_v11 = vsel %vm1854_vm4, %v1860_v0, %v1862_v38 }
 0x175   : > { %8924 = vmatmul.mubr.bf16.gmra.mrb[44].mxu1 %v1479_v15  ;;  %9089 = vmatprep.subr.bf16.mxu0 %v10344_v1  ;;  %v2447_v29 = vrot.slane %v11140_v10, 3  ;;  %v1864_v15 = vrot.slane %v10920_v42, 2  ;;  %v2230_v42 = vrot.slane %v2228_v20, 2  ;;  %v2272_v52 = vshrl.u32 %v11140_v10, 16 }
 0x176   : > { %8980 = vmatpush3.bf16.msra.mxu1 %v10038_v12  ;;  %8927 = vmatprep.mubr.msk.bf16.mxu1 %vm10345_vm0, %v10344_v1  ;;  %v10065_v12 = vld [vmem:[%s12930_s6 + $0x1f8] sm:$0xff]  }
 0x177   : > { %8981 = vmatprep.subr.bf16.mxu1 %v10344_v1 }
 0x178   : > { %9090 = vmatpush3.bf16.msra.mxu0 %v10043_v16  ;;  %v2236_v16 = vshrl.u32 %v10964_v57, 16 }
 0x179   : > { %9091 = vmatprep.subr.bf16.mxu0 %v10344_v1 }
 0x17a   : > { %8982 = vmatpush3.bf16.msra.mxu1 %v10041_v19  ;;  %v2448_v19 = vsel %vm2437_vm5, %v2445_v7, %v2447_v29  ;;  %v10076_v7 = vld [vmem:[%s10629_s12 + $0x10] sm:$0xff]  }
 0x17b   : > { %9036 = vmatmul.mubr.bf16.gmra.mrb[76].mxu0 %v2064_v22  ;;  %8983 = vmatprep.subr.bf16.mxu1 %v10344_v1  ;;  %v1865_v22 = vsel %vm1854_vm4, %v1862_v38, %v1864_v15  ;;  %v10077_v15 = vld [vmem:[%s10629_s12 + $0x18] sm:$0xff]  }
 0x17c   : > { %9039 = vmatprep.mubr.msk.bf16.mxu0 %vm10345_vm0, %v10344_v1  ;;  %9092 = vmatpush3.bf16.msra.mxu0 %v10046_v21  ;;  %v2231_v21 = vshll.u32 %v10970_v58, 16  ;;  %v2248_v58 = vshll.u32 %v10986_v5, 16 }
 0x17d   : > { %8928 = vmatmul.mubr.bf16.gmra.mrb[48].mxu1 %v1481_v24  ;;  %9093 = vmatprep.subr.bf16.mxu0 %v10344_v1  ;;  %v2241_v24 = vrot.slane %v2239_v18, 3 }
 0x17e   : > { %8984 = vmatpush3.bf16.msra.mxu1 %v10044_v61  ;;  %8931 = vmatprep.mubr.msk.bf16.mxu1 %vm10345_vm0, %v10344_v1  ;;  %v2238_v61 = vrot.slane %v2236_v16, 2  ;;  %v2233_v57 = vrot.slane %v2231_v21, 3 }
 0x17f   : > { %8985 = vmatprep.subr.bf16.mxu1 %v10344_v1 }
 0x180   : > { %9094 = vmatpush3.bf16.msra.mxu0 %v10048_v26  ;;  %v2242_v26 = vor.u32 %v2241_v24, %v2238_v61 }
 0x181   : > { %9095 = vmatprep.subr.bf16.mxu0 %v10344_v1 }
 0x182   : > { %8986 = vmatpush3.bf16.msra.mxu1 %v10047_v31  ;;  %v2234_v31 = vor.u32 %v2233_v57, %v2230_v42  ;;  %v10078_v42 = vld [vmem:[%s10629_s12 + $0x20] sm:$0xff]  }
 0x183   : > { %9040 = vmatmul.mubr.bf16.gmra.mrb[80].mxu0 %v2066_v33  ;;  %8987 = vmatprep.subr.bf16.mxu1 %v10344_v1  ;;  %v2247_v33 = vrot.slane %v2245_v27, 2 }
 0x184   : > { %9043 = vmatprep.mubr.msk.bf16.mxu0 %vm10345_vm0, %v10344_v1  ;;  %9096 = vmatpush3.bf16.msra.mxu0 %v10051_v25  ;;  %v2243_v25 = vsel %vm2226_vm6, %v2234_v31, %v2242_v26 }
 0x185   : > { %8932 = vmatmul.mubr.bf16.gmra.mrb[52].mxu1 %v1483_v35  ;;  %9097 = vmatprep.subr.bf16.mxu0 %v10344_v1  ;;  %v2254_v35 = vshrl.u32 %v11011_v14, 16  ;;  %v10069_v14 = vld [vmem:[%s12928_s4 + $0x18] sm:$0xff]  }
 0x186   : > { %8988 = vmatpush3.bf16.msra.mxu1 %v10049_v34  ;;  %8935 = vmatprep.mubr.msk.bf16.mxu1 %vm10345_vm0, %v10344_v1  ;;  %v2250_v34 = vrot.slane %v2248_v58, 3 }
 0x187   : > { %8989 = vmatprep.subr.bf16.mxu1 %v10344_v1 }
 0x188   : > { %9098 = vmatpush3.bf16.msra.mxu0 %v10054_v37  ;;  %v2251_v5 = vor.u32 %v2250_v34, %v2247_v33  ;;  %v10068_v37 = vld [vmem:[%s12928_s4 + $0x10] sm:$0xff]   ;;  %v10079_v34 = vld [vmem:[%s10629_s12 + $0x28] sm:$0xff]  }
 0x189   : > { %9163 = vmatprep.subr.bf16.mxu0 %v10344_v1 }
 0x18a   : > { %8990 = vmatpush3.bf16.msra.mxu1 %v10053_v43  ;;  %v2252_v41 = vsel %vm2226_vm6, %v2242_v26, %v2251_v5  ;;  %v2256_v43 = vrot.slane %v2254_v35, 2 }
 0x18b   : > { %9044 = vmatmul.mubr.bf16.gmra.mrb[84].mxu0 %v2068_v46  ;;  %9047 = vmatprep.subr.bf16.mxu1 %v10344_v1  ;;  %v2263_v46 = vshrl.u32 %v11037_v23, 16 }
 0x18c   : > { %9099 = vmatprep.mubr.msk.bf16.mxu0 %vm10345_vm0, %v10344_v1  ;;  %v2260_v45 = vor.u32 %v2259_v44, %v2256_v43 }
 0x18d   : > { %8936 = vmatmul.mubr.bf16.gmra.mrb[56].mxu1 %v1485_v47  ;;  %v2266_v47 = vshll.u32 %v11037_v23, 16  ;;  %v2265_v49 = vrot.slane %v2263_v46, 2  ;;  %v10071_v23 = vld [vmem:[%s12928_s4 + $0x28] sm:$0xff]  }
 0x18e   : > { %8991 = vmatprep.mubr.msk.bf16.mxu1 %vm10345_vm0, %v10344_v1  ;;  %v2261_v48 = vsel %vm2226_vm6, %v2251_v5, %v2260_v45 }
 0x18f   : > { %v2268_v50 = vrot.slane %v2266_v47, 3 }
 0x191   : > { %v2269_v51 = vor.u32 %v2268_v50, %v2265_v49 }
 0x193   : > { %9100 = vmatmul.mubr.bf16.vlgmr.msra.gmra.mrb[88].mxu0 %v2440_v53  ;;  %v2275_v53 = vshll.u32 %v11140_v10, 16 }
 0x194   : > { %9103 = vmatprep.mubr.msk.bf16.mxu0 %vm10345_vm0, %v10344_v1 }
 0x195   : > { %8992 = vmatmul.mubr.bf16.vlgmr.msra.gmra.mrb[60].mxu1 %v1857_v56  ;;  %v2274_v56 = vrot.slane %v2272_v52, 2 }
 0x196   : > { %9048 = vmatpush3.bf16.msra.mxu1 %v10057_v55  ;;  %8995 = vmatprep.mubr.msk.bf16.mxu1 %vm10345_vm0, %v10344_v1  ;;  %v2270_v55 = vsel %vm2226_vm6, %v2260_v45, %v2269_v51 }
 0x197   : > { %9049 = vmatprep.subr.bf16.mxu1 %v10344_v1 }
 0x19a   : > { %9050 = vmatpush3.bf16.msra.mxu1 %v10058_v28  ;;  %v2277_v28 = vrot.slane %v2275_v53, 3 }
 0x19b   : > { %9104 = vmatmul.mubr.bf16.gmra.mrb[92].mxu0 %v2442_v59  ;;  %9051 = vmatprep.subr.bf16.mxu1 %v10344_v1 }
 0x19c   : > { %9107 = vmatprep.mubr.msk.bf16.mxu0 %vm10345_vm0, %v10344_v1  ;;  %v2278_v3 = vor.u32 %v2277_v28, %v2274_v56 }
 0x19d   : > { %8996 = vmatmul.mubr.bf16.gmra.mrb[64].mxu1 %v1859_v62  ;;  %v10075_v62 = vld [vmem:[%s10629_s12 + $0x8] sm:$0xff]  }
 0x19e   : > { %9052 = vmatpush3.bf16.msra.mxu1 %v10059_v60  ;;  %8999 = vmatprep.mubr.msk.bf16.mxu1 %vm10345_vm0, %v10344_v1  ;;  %v2279_v59 = vsel %vm2226_vm6, %v2269_v51, %v2278_v3  ;;  %v10074_v60 = vld [vmem:[%s10629_s12] sm:$0xff]  }
 0x19f   : > { %9053 = vmatprep.subr.bf16.mxu1 %v10344_v1 }
 0x1a2   : > { %9054 = vmatpush3.bf16.msra.mxu1 %v10060_v2 }
 0x1a3   : > { %9108 = vmatmul.mubr.bf16.gmra.mrb[96].mxu0 %v2444_v4  ;;  %9055 = vmatprep.subr.bf16.mxu1 %v10344_v1 }
 0x1a4   : > { %9111 = vmatprep.mubr.msk.bf16.mxu0 %vm10345_vm0, %v10344_v1 }
 0x1a5   : > { %9000 = vmatmul.mubr.bf16.gmra.mrb[68].mxu1 %v1861_v6 }
 0x1a6   : > { %9056 = vmatpush3.bf16.msra.mxu1 %v10061_v30  ;;  %9003 = vmatprep.mubr.msk.bf16.mxu1 %vm10345_vm0, %v10344_v1 }
 0x1a7   : > { %9057 = vmatprep.subr.bf16.mxu1 %v10344_v1 }
 0x1aa   : > { %9058 = vmatpush3.bf16.msra.mxu1 %v10062_v17 }
 0x1ab   : > { %9112 = vmatmul.mubr.bf16.gmra.mrb[100].mxu0 %v2446_v8  ;;  %9059 = vmatprep.subr.bf16.mxu1 %v10344_v1 }
 0x1ac   : > { %9115 = vmatprep.mubr.msk.bf16.mxu0 %vm10345_vm0, %v10344_v1 }
 0x1ad   : > { %9004 = vmatmul.mubr.bf16.gmra.mrb[72].mxu1 %v1863_v11 }
 0x1ae   : > { %9060 = vmatpush3.bf16.msra.mxu1 %v10063_v9  ;;  %9007 = vmatprep.mubr.msk.bf16.mxu1 %vm10345_vm0, %v10344_v1 }
 0x1af   : > { %9061 = vmatprep.subr.bf16.mxu1 %v10344_v1 }
 0x1b2   : > { %9062 = vmatpush3.bf16.msra.mxu1 %v10065_v12 }
 0x1b3   : > { %9116 = vmatmul.mubr.bf16.gmra.mrb[104].mxu0 %v2448_v19  ;;  %9119 = vmatprep.subr.bf16.mxu1 %v10344_v1 }
 0x1b4   : > { %9179 = vmatprep.mubr.msk.bf16.mxu0 %vm10345_vm0, %v10344_v1 }
 0x1b5   : > { %9008 = vmatmul.mubr.bf16.gmra.mrb[76].mxu1 %v1865_v22 }
 0x1b6   : > { %9063 = vmatprep.mubr.msk.bf16.mxu1 %vm10345_vm0, %v10344_v1 }
 0x1bd   : > { %9064 = vmatmul.mubr.bf16.vlgmr.msra.gmra.mrb[80].mxu1 %v2243_v25 }
 0x1be   : > { %9120 = vmatpush3.bf16.msra.mxu1 %v10066_v32  ;;  %9067 = vmatprep.mubr.msk.bf16.mxu1 %vm10345_vm0, %v10344_v1 }
 0x1bf   : > { %9121 = vmatprep.subr.bf16.mxu1 %v10344_v1 }
 0x1c2   : > { %9122 = vmatpush3.bf16.msra.mxu1 %v10067_v13 }
 0x1c3   : > { %9123 = vmatprep.subr.bf16.mxu1 %v10344_v1 }
 0x1c5   : > { %9068 = vmatmul.mubr.bf16.gmra.mrb[84].mxu1 %v2252_v41 }
 0x1c6   : > { %9124 = vmatpush3.bf16.msra.mxu1 %v10068_v37  ;;  %9071 = vmatprep.mubr.msk.bf16.mxu1 %vm10345_vm0, %v10344_v1 }
 0x1c7   : > { %9125 = vmatprep.subr.bf16.mxu1 %v10344_v1 }
 0x1ca   : > { %9126 = vmatpush3.bf16.msra.mxu1 %v10069_v14  ;;  %v10080_v14 = vld [vmem:[%s10629_s12 + $0x30] ss:$0 sps:$4 sm:$0xff]  }
 0x1cb   : > { %9127 = vmatprep.subr.bf16.mxu1 %v10344_v1 }
 0x1cd   : > { %9072 = vmatmul.mubr.bf16.gmra.mrb[88].mxu1 %v2261_v48 }
 0x1ce   : > { %9128 = vmatpush3.bf16.msra.mxu1 %v10070_v40  ;;  %9075 = vmatprep.mubr.msk.bf16.mxu1 %vm10345_vm0, %v10344_v1 }
 0x1cf   : > { %9129 = vmatprep.subr.bf16.mxu1 %v10344_v1 }
 0x1d2   : > { %9130 = vmatpush3.bf16.msra.mxu1 %v10071_v23 }
 0x1d3   : > { %9131 = vmatprep.subr.bf16.mxu1 %v10344_v1 }
 0x1d5   : > { %9076 = vmatmul.mubr.bf16.gmra.mrb[92].mxu1 %v2270_v55 }
 0x1d6   : > { %9132 = vmatpush3.bf16.msra.mxu1 %v10072_v54  ;;  %9079 = vmatprep.mubr.msk.bf16.mxu1 %vm10345_vm0, %v10344_v1 }
 0x1d7   : > { %9133 = vmatprep.subr.bf16.mxu1 %v10344_v1 }
 0x1da   : > { %9134 = vmatpush3.bf16.msra.mxu1 %v10073_v39 }
 0x1db   : > { %9235 = vmatprep.subr.bf16.mxu1 %v10344_v1 }
 0x1dd   : > { %9080 = vmatmul.mubr.bf16.gmra.mrb[96].mxu1 %v2279_v59 }
 0x1de   : > { %9135 = vmatprep.mubr.msk.bf16.mxu1 %vm10345_vm0, %v10344_v1 }
 0x1e5   : > { %9136 = vmatmul.mubr.bf16.vlgmr.msra.gmra.mrb[100].mxu1 %v10074_v60 }
 0x1e6   : > { %9139 = vmatprep.mubr.msk.bf16.mxu1 %vm10345_vm0, %v10344_v1 }
 0x1ed   : > { %9140 = vmatmul.mubr.bf16.gmra.mrb[104].mxu1 %v10075_v62 }
 0x1ee   : > { %v11224_v63 = vpop.f32.mrb[28].mxu0  ;;  %9143 = vmatprep.mubr.msk.bf16.mxu1 %vm10345_vm0, %v10344_v1 }
 0x1ef   : > { %v8885_v2 = vpop.f32.mrb[29].mxu0 }
 0x1f0   : > { %v1085_v0 = vpop.f32.mrb[0].mxu1  ;;  %v11228_v4 = vpop.f32.mrb[30].mxu0 }
 0x1f1   : > { %v8813_v30 = vpop.f32.mrb[1].mxu1  ;;  %v8886_v6 = vpop.f32.mrb[31].mxu0 }
 0x1f2   : > { %v1088_v17 = vpop.f32.mrb[2].mxu1 }
 0x1f3   : > { %v8814_v38 = vpop.f32.mrb[3].mxu1 }
 0x1f5   : > { %9144 = vmatmul.mubr.bf16.gmra.mrb[108].mxu1 %v10076_v7 }
 0x1f6   : > { %v11231_v8 = vpop.f32.mrb[32].mxu0  ;;  %9147 = vmatprep.mubr.msk.bf16.mxu1 %vm10345_vm0, %v10344_v1 }
 0x1f7   : > { %v8889_v9 = vpop.f32.mrb[33].mxu0 }
 0x1f8   : > { %v1093_v10 = vpop.f32.mrb[4].mxu1  ;;  %v11235_v11 = vpop.f32.mrb[34].mxu0 }
 0x1f9   : > { %v8817_v29 = vpop.f32.mrb[5].mxu1  ;;  %v8890_v12 = vpop.f32.mrb[35].mxu0 }
 0x1fa   : > { %v1096_v16 = vpop.f32.mrb[6].mxu1 }
 0x1fb   : > { %v8818_v18 = vpop.f32.mrb[7].mxu1 }
 0x1fd   : > { %9148 = vmatmul.mubr.bf16.gmra.mrb[112].mxu1 %v10077_v15 }
 0x1fe   : > { %v11238_v19 = vpop.f32.mrb[36].mxu0  ;;  %9151 = vmatprep.mubr.msk.bf16.mxu1 %vm10345_vm0, %v10344_v1 }
 0x1ff   : > { %v8893_v20 = vpop.f32.mrb[37].mxu0 }
 0x200   : > { %v1101_v21 = vpop.f32.mrb[8].mxu1  ;;  %v11242_v22 = vpop.f32.mrb[38].mxu0 }
 0x201   : > { %v8821_v61 = vpop.f32.mrb[9].mxu1  ;;  %v8894_v24 = vpop.f32.mrb[39].mxu0 }
 0x202   : > { %v1104_v57 = vpop.f32.mrb[10].mxu1 }
 0x203   : > { %v8822_v26 = vpop.f32.mrb[11].mxu1 }
 0x205   : > { %9152 = vmatmul.mubr.bf16.gmra.mrb[116].mxu1 %v10078_v42 }
 0x206   : > { %v11245_v27 = vpop.f32.mrb[40].mxu0  ;;  %9155 = vmatprep.mubr.msk.bf16.mxu1 %vm10345_vm0, %v10344_v1 }
 0x207   : > { %v8897_v58 = vpop.f32.mrb[41].mxu0 }
 0x208   : > { %v11249_v31 = vpop.f32.mrb[12].mxu1  ;;  %v11251_v32 = vpop.f32.mrb[42].mxu0 }
 0x209   : > { %v8825_v25 = vpop.f32.mrb[13].mxu1  ;;  %v8898_v33 = vpop.f32.mrb[43].mxu0 }
 0x20a   : > { %v11254_v13 = vpop.f32.mrb[14].mxu1 }
 0x20b   : > { %v8826_v5 = vpop.f32.mrb[15].mxu1 }
 0x20d   : > { %9156 = vmatmul.mubr.bf16.gmra.mrb[120].mxu1 %v10079_v34 }
 0x20e   : > { %v11256_v35 = vpop.f32.mrb[44].mxu0  ;;  %9159 = vmatprep.mubr.msk.bf16.mxu1 %vm10345_vm0, %v10344_v1 }
 0x20f   : > { %v8901_v36 = vpop.f32.mrb[45].mxu0 }
 0x210   : > { %v11260_v37 = vpop.f32.mrb[16].mxu1  ;;  %v11262_v41 = vpop.f32.mrb[46].mxu0  ;;  %v10084_v36 = vld [vmem:[%s12930_s6 + $0x258] sm:$0xff]  }
 0x211   : > { %v8829_v43 = vpop.f32.mrb[17].mxu1  ;;  %v8902_v44 = vpop.f32.mrb[47].mxu0 }
 0x212   : > { %v11265_v45 = vpop.f32.mrb[18].mxu1 }
 0x213   : > { %v8830_v46 = vpop.f32.mrb[19].mxu1 }
 0x215   : > { %9160 = vmatmul.mubr.bf16.gmra.mrb[124].mxu1 %v10080_v14 }
 0x216   : > { %v11267_v47 = vpop.f32.mrb[48].mxu0  ;;  %9251 = vmatprep.mubr.msk.bf16.mxu1 %vm10345_vm0, %v10344_v1 }
 0x217   : > { %v8957_v40 = vpop.f32.mrb[49].mxu0 }
 0x218   : > { %v1211_v48 = vpop.f32.mrb[20].mxu1  ;;  %v11271_v49 = vpop.f32.mrb[50].mxu0 }
 0x219   : > { %v1212_v50 = vadd.f32 %v1211_v48, %v1085_v0  ;;  %v8849_v23 = vpop.f32.mrb[21].mxu1  ;;  %v8958_v51 = vpop.f32.mrb[51].mxu0 }
 0x21a   : > { %v1214_v52 = vpop.f32.mrb[22].mxu1 }
 0x21b   : > { %v1215_v53 = vadd.f32 %v1214_v52, %v1088_v17  ;;  %v8850_v54 = vpop.f32.mrb[23].mxu1  ;;  %v11274_v55 = vadd.f32 %v11224_v63, %v1212_v50  ;;  %v10081_v63 = vld [vmem:[%s12930_s6 + $0x240] sm:$0xff]  }
 0x21c   : > { %9164 = vmatpush3.bf16.msra.mxu0 %v10081_v63  ;;  %v10085_v52 = vld [vmem:[%s12930_s6 + $0x260] sm:$0xff]  }
 0x21d   : > { %v11277_v56 = vadd.f32 %v11228_v4, %v1215_v53  ;;  %9165 = vmatprep.subr.bf16.mxu0 %v10344_v1 }
 0x21e   : > { %v11279_v28 = vpop.f32.mrb[52].mxu0 }
 0x21f   : > { %v8961_v39 = vpop.f32.mrb[53].mxu0 }
 0x220   : > { %v1219_v3 = vpop.f32.mrb[24].mxu1  ;;  %v11281_v59 = vpop.f32.mrb[54].mxu0 }
 0x221   : > { %v1220_v60 = vadd.f32 %v1219_v3, %v1093_v10  ;;  %v8853_v62 = vpop.f32.mrb[25].mxu1  ;;  %v8962_v2 = vpop.f32.mrb[55].mxu0 }
 0x222   : > { %v1222_v0 = vpop.f32.mrb[26].mxu1 }
 0x223   : > { %v1223_v30 = vadd.f32 %v1222_v0, %v1096_v16  ;;  %v8854_v6 = vpop.f32.mrb[27].mxu1  ;;  %v11284_v7 = vadd.f32 %v11231_v8, %v1220_v60 }
 0x224   : > { %v10088_v6 = vld [vmem:[%s12930_s6 + $0x268] sm:$0xff]  }
 0x225   : > { %v11290_v4 = vadd.f32 %v11235_v11, %v1223_v30  ;;  %v10082_v11 = vld [vmem:[%s12930_s6 + $0x248] sm:$0xff]  }
 0x226   : > { %v11292_v17 = vpop.f32.mrb[56].mxu0  ;;  %9166 = vmatpush3.bf16.msra.mxu0 %v10082_v11  ;;  %v10087_v30 = vld [vmem:[%s12930_s6 + $0x2c8] sm:$0xff]   ;;  %v10090_v11 = vld [vmem:[%s12930_s6 + $0x270] sm:$0xff]  }
 0x227   : > { %v8965_v38 = vpop.f32.mrb[57].mxu0  ;;  %9167 = vmatprep.subr.bf16.mxu0 %v10344_v1 }
 0x228   : > { %v1227_v9 = vpop.f32.mrb[28].mxu1  ;;  %v11295_v10 = vpop.f32.mrb[58].mxu0 }
 0x229   : > { %v1228_v29 = vadd.f32 %v1227_v9, %v1101_v21  ;;  %v8857_v12 = vpop.f32.mrb[29].mxu1  ;;  %v8966_v8 = vpop.f32.mrb[59].mxu0  ;;  %v10083_v21 = vld [vmem:[%s12930_s6 + $0x250] sm:$0xff]  }
 0x22a   : > { %v1230_v15 = vpop.f32.mrb[30].mxu1  ;;  %9168 = vmatpush3.bf16.msra.mxu0 %v10083_v21 }
 0x22b   : > { %v1231_v16 = vadd.f32 %v1230_v15, %v1104_v57  ;;  %v8858_v18 = vpop.f32.mrb[31].mxu1  ;;  %v11298_v20 = vadd.f32 %v11238_v19, %v1228_v29  ;;  %9169 = vmatprep.subr.bf16.mxu0 %v10344_v1 }
 0x22d   : > { %v11304_v61 = vadd.f32 %v11242_v22, %v1231_v16 }
 0x22e   : > { %v11309_v24 = vpop.f32.mrb[60].mxu0  ;;  %9170 = vmatpush3.bf16.msra.mxu0 %v10084_v36 }
 0x22f   : > { %v8969_v42 = vpop.f32.mrb[61].mxu0  ;;  %9171 = vmatprep.subr.bf16.mxu0 %v10344_v1 }
 0x230   : > { %v1235_v57 = vpop.f32.mrb[32].mxu1  ;;  %v11312_v19 = vpop.f32.mrb[62].mxu0 }
 0x231   : > { %v1236_v26 = vadd.f32 %v1235_v57, %v11249_v31  ;;  %v8861_v58 = vpop.f32.mrb[33].mxu1  ;;  %v8970_v25 = vpop.f32.mrb[63].mxu0 }
 0x232   : > { %v1238_v22 = vpop.f32.mrb[34].mxu1  ;;  %9172 = vmatpush3.bf16.msra.mxu0 %v10085_v52 }
 0x233   : > { %v1239_v33 = vadd.f32 %v1238_v22, %v11254_v13  ;;  %v8862_v34 = vpop.f32.mrb[35].mxu1  ;;  %v11318_v5 = vadd.f32 %v11245_v27, %v1236_v26  ;;  %9173 = vmatprep.subr.bf16.mxu0 %v10344_v1 }
 0x235   : > { %v11324_v43 = vadd.f32 %v11251_v32, %v1239_v33 }
 0x236   : > { %v11326_v31 = vpop.f32.mrb[64].mxu0  ;;  %9174 = vmatpush3.bf16.msra.mxu0 %v10088_v6 }
 0x237   : > { %v8973_v44 = vpop.f32.mrb[65].mxu0  ;;  %9175 = vmatprep.subr.bf16.mxu0 %v10344_v1 }
 0x238   : > { %v1243_v14 = vpop.f32.mrb[36].mxu1  ;;  %v11329_v46 = vpop.f32.mrb[66].mxu0 }
 0x239   : > { %v1244_v13 = vadd.f32 %v1243_v14, %v11260_v37  ;;  %v8865_v27 = vpop.f32.mrb[37].mxu1  ;;  %v8974_v40 = vpop.f32.mrb[67].mxu0  ;;  %v10086_v37 = vld [vmem:[%s12930_s6 + $0x2c0] sm:$0xff]   ;;  %v10096_v14 = vld [vmem:[%s12930_s6 + $0x2e8] sm:$0xff]  }
 0x23a   : > { %v1246_v48 = vpop.f32.mrb[38].mxu1  ;;  %9236 = vmatpush3.bf16.msra.mxu1 %v10086_v37  ;;  %9176 = vmatpush3.bf16.msra.mxu0 %v10090_v11 }
 0x23b   : > { %v1247_v50 = vadd.f32 %v1246_v48, %v11265_v45  ;;  %v8866_v23 = vpop.f32.mrb[39].mxu1  ;;  %v11334_v32 = vadd.f32 %v11256_v35, %v1244_v13  ;;  %9237 = vmatprep.subr.bf16.mxu1 %v10344_v1  ;;  %9177 = vmatprep.subr.bf16.mxu0 %v10344_v1  ;;  %v10097_v13 = vld [vmem:[%s12930_s6 + $0x2f0] sm:$0xff]  }
 0x23d   : > { %v11337_v51 = vadd.f32 %v11262_v41, %v1247_v50 }
 0x23e   : > { %v11345_v53 = vpop.f32.mrb[68].mxu0  ;;  %9238 = vmatpush3.bf16.msra.mxu1 %v10087_v30 }
 0x23f   : > { %v9029_v54 = vpop.f32.mrb[69].mxu0  ;;  %9239 = vmatprep.subr.bf16.mxu1 %v10344_v1 }
 0x240   : > { %v1573_v45 = vpop.f32.mrb[40].mxu1  ;;  %v11347_v39 = vpop.f32.mrb[70].mxu0 }
 0x241   : > { %v1612_v35 = vadd.f32 %v1573_v45, %v11274_v55  ;;  %v8921_v41 = vpop.f32.mrb[41].mxu1  ;;  %v9030_v3 = vpop.f32.mrb[71].mxu0  ;;  %v10089_v55 = vld [vmem:[%s12930_s6 + $0x2d0] sm:$0xff]   ;;  %v10100_v45 = vld [vmem:[%s12930_s6 + $0x2f8] sm:$0xff]  }
 0x242   : > { %v1576_v60 = vpop.f32.mrb[42].mxu1  ;;  %9240 = vmatpush3.bf16.msra.mxu1 %v10089_v55 }
 0x243   : > { %v1613_v62 = vadd.f32 %v1576_v60, %v11277_v56  ;;  %v8922_v2 = vpop.f32.mrb[43].mxu1  ;;  %v11354_v0 = vadd.f32 %v11267_v47, %v1612_v35  ;;  %9241 = vmatprep.subr.bf16.mxu1 %v10344_v1 }
 0x245   : > { %v11363_v63 = vadd.f32 %v11271_v49, %v1613_v62 }
 0x246   : > { %v11368_v56 = vpop.f32.mrb[72].mxu0 }
 0x247   : > { %v9033_v47 = vpop.f32.mrb[73].mxu0 }
 0x248   : > { %v1581_v38 = vpop.f32.mrb[44].mxu1  ;;  %v11372_v9 = vpop.f32.mrb[74].mxu0 }
 0x249   : > { %v1614_v29 = vadd.f32 %v1581_v38, %v11284_v7  ;;  %v8925_v49 = vpop.f32.mrb[45].mxu1  ;;  %v9034_v12 = vpop.f32.mrb[75].mxu0  ;;  %v10091_v7 = vld [vmem:[%s12930_s6 + $0x2d8] sm:$0xff]  }
 0x24a   : > { %v1584_v8 = vpop.f32.mrb[46].mxu1  ;;  %9242 = vmatpush3.bf16.msra.mxu1 %v10091_v7 }
 0x24b   : > { %v1615_v15 = vadd.f32 %v1584_v8, %v11290_v4  ;;  %v8926_v16 = vpop.f32.mrb[47].mxu1  ;;  %v11378_v18 = vadd.f32 %v11279_v28, %v1614_v29  ;;  %v10092_v4 = vld [vmem:[%s12930_s6 + $0x278] sm:$0xff]   ;;  %v10093_v28 = vld [vmem:[%s12930_s6 + $0x2e0] sm:$0xff]   ;;  %9243 = vmatprep.subr.bf16.mxu1 %v10344_v1 }
 0x24c   : > { %9178 = vmatpush3.bf16.msra.mxu0 %v10092_v4 }
 0x24d   : > { %v11387_v21 = vadd.f32 %v11281_v59, %v1615_v15  ;;  %9199 = vmatprep.subr.bf16.mxu0 %v10344_v1 }
 0x24e   : > { %v11395_v42 = vpop.f32.mrb[76].mxu0  ;;  %9244 = vmatpush3.bf16.msra.mxu1 %v10093_v28 }
 0x24f   : > { %v9037_v57 = vpop.f32.mrb[77].mxu0  ;;  %9245 = vmatprep.subr.bf16.mxu1 %v10344_v1 }
 0x250   : > { %v1589_v26 = vpop.f32.mrb[48].mxu1  ;;  %v11399_v59 = vpop.f32.mrb[78].mxu0 }
 0x251   : > { %v1616_v58 = vadd.f32 %v1589_v26, %v11298_v20  ;;  %v8929_v25 = vpop.f32.mrb[49].mxu1  ;;  %v9038_v22 = vpop.f32.mrb[79].mxu0 }
 0x252   : > { %v1592_v33 = vpop.f32.mrb[50].mxu1  ;;  %9246 = vmatpush3.bf16.msra.mxu1 %v10096_v14 }
 0x253   : > { %v1617_v34 = vadd.f32 %v1592_v33, %v11304_v61  ;;  %v8930_v36 = vpop.f32.mrb[51].mxu1  ;;  %v11406_v44 = vadd.f32 %v11292_v17, %v1616_v58  ;;  %9247 = vmatprep.subr.bf16.mxu1 %v10344_v1 }
 0x255   : > { %v11412_v20 = vadd.f32 %v11295_v10, %v1617_v34 }
 0x256   : > { %v11417_v27 = vpop.f32.mrb[80].mxu0  ;;  %9248 = vmatpush3.bf16.msra.mxu1 %v10097_v13 }
 0x257   : > { %v9041_v61 = vpop.f32.mrb[81].mxu0  ;;  %9249 = vmatprep.subr.bf16.mxu1 %v10344_v1 }
 0x258   : > { %v1597_v40 = vpop.f32.mrb[52].mxu1  ;;  %v11420_v17 = vpop.f32.mrb[82].mxu0 }
 0x259   : > { %v1618_v48 = vadd.f32 %v1597_v40, %v11318_v5  ;;  %v8933_v50 = vpop.f32.mrb[53].mxu1  ;;  %v9042_v23 = vpop.f32.mrb[83].mxu0 }
 0x25a   : > { %v1600_v10 = vpop.f32.mrb[54].mxu1  ;;  %9250 = vmatpush3.bf16.msra.mxu1 %v10100_v45 }
 0x25b   : > { %v1619_v52 = vadd.f32 %v1600_v10, %v11324_v43  ;;  %v8934_v37 = vpop.f32.mrb[55].mxu1  ;;  %v1829_v54 = vadd.f32 %v11309_v24, %v1618_v48  ;;  %9307 = vmatprep.subr.bf16.mxu1 %v10344_v1 }
 0x25d   : > { %v1830_v35 = vadd.f32 %v11312_v19, %v1619_v52 }
 0x25e   : > { %v11430_v41 = vpop.f32.mrb[84].mxu0 }
 0x25f   : > { %v9045_v5 = vpop.f32.mrb[85].mxu0 }
 0x260   : > { %v1605_v3 = vpop.f32.mrb[56].mxu1  ;;  %v11433_v60 = vpop.f32.mrb[86].mxu0 }
 0x261   : > { %v1620_v43 = vadd.f32 %v1605_v3, %v11334_v32  ;;  %v8937_v62 = vpop.f32.mrb[57].mxu1  ;;  %v9046_v2 = vpop.f32.mrb[87].mxu0 }
 0x262   : > { %v1608_v24 = vpop.f32.mrb[58].mxu1 }
 0x263   : > { %v1621_v30 = vadd.f32 %v1608_v24, %v11337_v51  ;;  %v8938_v6 = vpop.f32.mrb[59].mxu1  ;;  %v1831_v55 = vadd.f32 %v11326_v31, %v1620_v43 }
 0x265   : > { %v1832_v19 = vadd.f32 %v11329_v46, %v1621_v30 }
 0x266   : > { %v11439_v47 = vpop.f32.mrb[88].mxu0 }
 0x267   : > { %v9101_v38 = vpop.f32.mrb[89].mxu0 }
 0x268   : > { %v1953_v29 = vpop.f32.mrb[60].mxu1  ;;  %v11441_v49 = vpop.f32.mrb[90].mxu0 }
 0x269   : > { %v1992_v12 = vadd.f32 %v1953_v29, %v11354_v0  ;;  %v8993_v8 = vpop.f32.mrb[61].mxu1  ;;  %v9102_v32 = vpop.f32.mrb[91].mxu0 }
 0x26a   : > { %v1956_v15 = vpop.f32.mrb[62].mxu1 }
 0x26b   : > { %v1993_v16 = vadd.f32 %v1956_v15, %v11363_v63  ;;  %v8994_v11 = vpop.f32.mrb[63].mxu1  ;;  %v2195_v51 = vadd.f32 %v11345_v53, %v1992_v12 }
 0x26d   : > { %v2196_v31 = vadd.f32 %v11347_v39, %v1993_v16 }
 0x26e   : > { %v2544_v7 = vpop.f32.mrb[92].mxu0 }
 0x26f   : > { %v9105_v46 = vpop.f32.mrb[93].mxu0 }
 0x270   : > { %v1961_v4 = vpop.f32.mrb[64].mxu1  ;;  %v2547_v28 = vpop.f32.mrb[94].mxu0 }
 0x271   : > { %v1994_v57 = vadd.f32 %v1961_v4, %v11378_v18  ;;  %v8997_v26 = vpop.f32.mrb[65].mxu1  ;;  %v9106_v58 = vpop.f32.mrb[95].mxu0 }
 0x272   : > { %v1964_v25 = vpop.f32.mrb[66].mxu1 }
 0x273   : > { %v1995_v0 = vadd.f32 %v1964_v25, %v11387_v21  ;;  %v8998_v22 = vpop.f32.mrb[67].mxu1  ;;  %v2197_v33 = vadd.f32 %v11368_v56, %v1994_v57 }
 0x275   : > { %v2198_v63 = vadd.f32 %v11372_v9, %v1995_v0 }
 0x276   : > { %v2552_v34 = vpop.f32.mrb[96].mxu0 }
 0x277   : > { %v9109_v53 = vpop.f32.mrb[97].mxu0 }
 0x278   : > { %v1969_v36 = vpop.f32.mrb[68].mxu1  ;;  %v2555_v39 = vpop.f32.mrb[98].mxu0 }
 0x279   : > { %v1996_v14 = vadd.f32 %v1969_v36, %v11406_v44  ;;  %v9001_v13 = vpop.f32.mrb[69].mxu1  ;;  %v9110_v61 = vpop.f32.mrb[99].mxu0 }
 0x27a   : > { %v1972_v40 = vpop.f32.mrb[70].mxu1 }
 0x27b   : > { %v1997_v18 = vadd.f32 %v1972_v40, %v11412_v20  ;;  %v9002_v48 = vpop.f32.mrb[71].mxu1  ;;  %v2199_v50 = vadd.f32 %v11395_v42, %v1996_v14 }
 0x27d   : > { %v2200_v21 = vadd.f32 %v11399_v59, %v1997_v18 }
 0x27e   : > { %v2560_v23 = vpop.f32.mrb[100].mxu0 }
 0x27f   : > { %v9113_v56 = vpop.f32.mrb[101].mxu0 }
 0x280   : > { %v1977_v10 = vpop.f32.mrb[72].mxu1  ;;  %v2563_v9 = vpop.f32.mrb[102].mxu0 }
 0x281   : > { %v1998_v52 = vadd.f32 %v1977_v10, %v1829_v54  ;;  %v9005_v37 = vpop.f32.mrb[73].mxu1  ;;  %v9114_v45 = vpop.f32.mrb[103].mxu0  ;;  %v11484_v10 = vld [vmem:[%s12929_s5] ss:$0 sm:$0xff] }
 0x282   : > { %v1980_v5 = vpop.f32.mrb[74].mxu1 }
 0x283   : > { %v1999_v3 = vadd.f32 %v1980_v5, %v1830_v35  ;;  %v9006_v44 = vpop.f32.mrb[75].mxu1  ;;  %v2201_v43 = vadd.f32 %v11417_v27, %v1998_v52 }
 0x285   : > { %v2202_v62 = vadd.f32 %v11420_v17, %v1999_v3 }
 0x286   : > { %v2568_v20 = vpop.f32.mrb[104].mxu0 }
 0x287   : > { %v9117_v2 = vpop.f32.mrb[105].mxu0 }
 0x288   : > { %v1985_v24 = vpop.f32.mrb[76].mxu1  ;;  %v2571_v42 = vpop.f32.mrb[106].mxu0 }
 0x289   : > { %v2000_v30 = vadd.f32 %v1985_v24, %v1831_v55  ;;  %v9009_v59 = vpop.f32.mrb[77].mxu1  ;;  %v9118_v6 = vpop.f32.mrb[107].mxu0 }
 0x28a   : > { %v1988_v38 = vpop.f32.mrb[78].mxu1 }
 0x28b   : > { %v2001_v29 = vadd.f32 %v1988_v38, %v1832_v19  ;;  %v9010_v12 = vpop.f32.mrb[79].mxu1  ;;  %v2203_v54 = vadd.f32 %v11430_v41, %v2000_v30 }
 0x28d   : > { %v2204_v8 = vadd.f32 %v11433_v60, %v2001_v29 }
 0x290   : > { %v2367_v35 = vpop.f32.mrb[80].mxu1 }
 0x291   : > { %v2406_v32 = vadd.f32 %v2367_v35, %v2195_v51  ;;  %v9065_v15 = vpop.f32.mrb[81].mxu1 }
 0x292   : > { %v2370_v27 = vpop.f32.mrb[82].mxu1 }
 0x293   : > { %v2407_v16 = vadd.f32 %v2370_v27, %v2196_v31  ;;  %v9066_v17 = vpop.f32.mrb[83].mxu1  ;;  %v11460_v11 = vadd.f32 %v11439_v47, %v2406_v32 }
 0x295   : > { %v11463_v55 = vadd.f32 %v11441_v49, %v2407_v16 }
 0x298   : > { %v2375_v46 = vpop.f32.mrb[84].mxu1 }
 0x299   : > { %v2408_v4 = vadd.f32 %v2375_v46, %v2197_v33  ;;  %v9069_v19 = vpop.f32.mrb[85].mxu1 }
 0x29a   : > { %v2378_v57 = vpop.f32.mrb[86].mxu1 }
 0x29b   : > { %v2409_v26 = vadd.f32 %v2378_v57, %v2198_v63  ;;  %v9070_v41 = vpop.f32.mrb[87].mxu1  ;;  %v11465_v58 = vadd.f32 %v2544_v7, %v2408_v4  ;;  %v10095_v4 = vld [vmem:[%s12930_s6 + $0x280] sm:$0xff]  }
 0x29d   : > { %v11467_v60 = vadd.f32 %v2547_v28, %v2409_v26 }
 0x2a0   : > { %v2383_v51 = vpop.f32.mrb[88].mxu1 }
 0x2a1   : > { %v2410_v25 = vadd.f32 %v2383_v51, %v2199_v50  ;;  %v9073_v31 = vpop.f32.mrb[89].mxu1 }
 0x2a2   : > { %v2386_v0 = vpop.f32.mrb[90].mxu1  ;;  %v10098_v31 = vld [vmem:[%s12930_s6 + $0x288] sm:$0xff]  }
 0x2a3   : > { %v2411_v22 = vadd.f32 %v2386_v0, %v2200_v21  ;;  %v9074_v47 = vpop.f32.mrb[91].mxu1  ;;  %v11469_v53 = vadd.f32 %v2552_v34, %v2410_v25 }
 0x2a5   : > { %v11471_v49 = vadd.f32 %v2555_v39, %v2411_v22 }
 0x2a8   : > { %v2391_v36 = vpop.f32.mrb[92].mxu1 }
 0x2a9   : > { %v2412_v33 = vadd.f32 %v2391_v36, %v2201_v43  ;;  %v9077_v14 = vpop.f32.mrb[93].mxu1  ;;  %v2852_v43 = vpop.permute.xlu0 %2851 }
 0x2aa   : > { %v2394_v13 = vpop.f32.mrb[94].mxu1 }
 0x2ab   : > { %v2413_v63 = vadd.f32 %v2394_v13, %v2202_v62  ;;  %v9078_v61 = vpop.f32.mrb[95].mxu1  ;;  %v11473_v7 = vadd.f32 %v2560_v23, %v2412_v33  ;;  %v2847_v62 = vpop.permute.xlu1 %2846 }
 0x2ad   : > { %v11475_v28 = vadd.f32 %v2563_v9, %v2413_v63 }
 0x2af   : > { %v2857_v35 = vpop.permute.xlu1 %2856 }
 0x2b0   : > { %v2399_v40 = vpop.f32.mrb[96].mxu1 }
 0x2b1   : > { %v2414_v18 = vadd.f32 %v2399_v40, %v2203_v54  ;;  %v9081_v48 = vpop.f32.mrb[97].mxu1 }
 0x2b2   : > { %v2402_v50 = vpop.f32.mrb[98].mxu1 }
 0x2b3   : > { %v2415_v21 = vadd.f32 %v2402_v50, %v2204_v8  ;;  %v9082_v56 = vpop.f32.mrb[99].mxu1  ;;  %v11477_v34 = vadd.f32 %v2568_v20, %v2414_v18  ;;  %v2862_v8 = vpop.permute.xlu0 %2861  ;;  %v10101_v18 = vld [vmem:[%s12930_s6 + $0x290] sm:$0xff]  }
 0x2b4   : > { %v2867_v22 = vpop.permute.xlu1 %2866 }
 0x2b5   : > { %v11479_v39 = vadd.f32 %v2571_v42, %v2415_v21 }
 0x2b7   : > { %v2872_v0 = vpop.permute.xlu0 %2871 }
 0x2b8   : > { %v2750_v52 = vpop.f32.mrb[100].mxu1 }
 0x2b9   : > { %v2751_v23 = vadd.f32 %v11484_v10, %v2750_v52  ;;  %v9137_v9 = vpop.f32.mrb[101].mxu1 }
 0x2ba   : > { %v2753_v37 = vpop.f32.mrb[102].mxu1 }
 0x2bb   : > { %v2804_v45 = vmax.f32 %v2751_v23, 0.0  ;;  %v2754_v5 = vadd.f32 %v11484_v10, %v2753_v37  ;;  %v9138_v3 = vpop.f32.mrb[103].mxu1 }
 0x2bc   : > { %v2877_v3 = vpop.permute.xlu1 %2876 }
 0x2bd   : > { %v2805_v44 = vmax.f32 %v2754_v5, 0.0  ;;  %v2909_v20 = vmul.f32 %v2847_v62, %v2804_v45  ;;  %v10104_v45 = vld [vmem:[%s12930_s6 + $0x298] sm:$0xff]   ;;  %v2882_v5 = vpop.permute.xlu0 %2881 }
 0x2bf   : > { %v2910_v2 = vmul.f32 %v2852_v43, %v2805_v44 }
 0x2c0   : > { %v2758_v24 = vpop.f32.mrb[104].mxu1 }
 0x2c1   : > { %v8227_v42 = vpack.c.bf16 %v2910_v2, %v2909_v20  ;;  %v2759_v30 = vadd.f32 %v11484_v10, %v2758_v24  ;;  %v9141_v59 = vpop.f32.mrb[105].mxu1  ;;  %v10108_v2 = vld [vmem:[%s12930_s6 + $0x340] sm:$0xff]  }
 0x2c2   : > { %v2761_v6 = vpop.f32.mrb[106].mxu1 }
 0x2c3   : > { %8228 = vst [vmem:[#allocation2] sm:$0xff] %v8227_v42   ;;  %v2806_v38 = vmax.f32 %v2759_v30, 0.0  ;;  %v2762_v29 = vadd.f32 %v11484_v10, %v2761_v6  ;;  %v9142_v12 = vpop.f32.mrb[107].mxu1 }
 0x2c5   : > { %v2807_v54 = vmax.f32 %v2762_v29, 0.0  ;;  %v2911_v32 = vmul.f32 %v2857_v35, %v2806_v38  ;;  %v10107_v38 = vld [vmem:[%s12930_s6 + $0x2a0] sm:$0xff]   ;;  %v10110_v29 = vld [vmem:[%s12930_s6 + $0x348] sm:$0xff]  }
 0x2c7   : > { %v2912_v15 = vmul.f32 %v2862_v8, %v2807_v54 }
 0x2c8   : > { %v2766_v27 = vpop.f32.mrb[108].mxu1 }
 0x2c9   : > { %v8232_v16 = vpack.c.bf16 %v2912_v15, %v2911_v32  ;;  %v2767_v17 = vadd.f32 %v11484_v10, %v2766_v27  ;;  %v9145_v46 = vpop.f32.mrb[109].mxu1 }
 0x2ca   : > { %v2769_v19 = vpop.f32.mrb[110].mxu1  ;;  %v10094_v57 = vld [vmem:[#allocation2] sm:$0xff]   ;;  %v2887_v46 = vpop.permute.xlu1 %2886 }
 0x2cb   : > { %8325 = vst [vmem:[#allocation2 + $0x8] sm:$0xff] %v8232_v16   ;;  %v2808_v26 = vmax.f32 %v2767_v17, 0.0  ;;  %v2770_v41 = vadd.f32 %v11484_v10, %v2769_v19  ;;  %v9146_v51 = vpop.f32.mrb[111].mxu1  ;;  %9180 = vmatmul.mubr.bf16.vlgmr.msra.gmra.mrb[108].mxu0 %v10094_v57  ;;  %v11501_v33 = vld [vmem:[#allocation2 + $0x4] sm:$0xf]  ;;  %v10111_v16 = vld [vmem:[%s12930_s6 + $0x2a8] sm:$0xff]   ;;  %v2892_v17 = vpop.permute.xlu0 %2891 }
 0x2cc   : > { %9200 = vmatpush3.bf16.msra.mxu0 %v10095_v4  ;;  %9183 = vmatprep.mubr.msk.bf16.mxu0 %vm10345_vm0, %v10344_v1  ;;  %v3412_v14 = vld [vmem:[#allocation2] sm:$0xe] }
 0x2cd   : > { %v2809_v25 = vmax.f32 %v2770_v41, 0.0  ;;  %9201 = vmatprep.subr.bf16.mxu0 %v10344_v1  ;;  %v2913_v47 = vmul.f32 %v2867_v22, %v2808_v26  ;;  %v7700_v21 = vcombine.low %v3412_v14, %v11501_v33  ;;  %v10113_v26 = vld [vmem:[%s12930_s6 + $0x350] sm:$0xff]  }
 0x2ce   : > { %v10114_v22 = vld [vmem:[%s12930_s6 + $0x2b0] sm:$0xff]  }
 0x2cf   : > { %v2914_v36 = vmul.f32 %v2872_v0, %v2809_v25  ;;  %v3433_v44 = vrot.slane %v7700_v21, 1 }
 0x2d0   : > { %v2774_v13 = vpop.f32.mrb[112].mxu1  ;;  %9202 = vmatpush3.bf16.msra.mxu0 %v10098_v31 }
 0x2d1   : > { %v8237_v63 = vpack.c.bf16 %v2914_v36, %v2913_v47  ;;  %v2775_v61 = vadd.f32 %v11484_v10, %v2774_v13  ;;  %v9149_v40 = vpop.f32.mrb[113].mxu1  ;;  %9203 = vmatprep.subr.bf16.mxu0 %v10344_v1  ;;  %v10116_v47 = vld [vmem:[%s12930_s6 + $0x358] sm:$0xff]   ;;  %v3176_v36 = vld [vmem:[#allocation2] sm:$0xf] }
 0x2d2   : > { %v2777_v48 = vpop.f32.mrb[114].mxu1  ;;  %v10099_v50 = vld [vmem:[#allocation2 + $0x8] sm:$0xff]   ;;  %v7670_v21 = vcombine.low %v3176_v36, %v11501_v33 }
 0x2d3   : > { %8326 = vst [vmem:[#allocation2 + $0x10] sm:$0xff] %v8237_v63   ;;  %v2810_v56 = vmax.f32 %v2775_v61, 0.0  ;;  %v2778_v52 = vadd.f32 %v11484_v10, %v2777_v48  ;;  %v9150_v23 = vpop.f32.mrb[115].mxu1  ;;  %9184 = vmatmul.mubr.bf16.gmra.mrb[112].mxu0 %v10099_v50  ;;  %v11510_v9 = vld [vmem:[#allocation2 + $0x8] sm:$0xff]   ;;  %v10117_v50 = vld [vmem:[%s12930_s6 + $0x2b8] sm:$0xff]  }
 0x2d4   : > { %9204 = vmatpush3.bf16.msra.mxu0 %v10101_v18  ;;  %9187 = vmatprep.mubr.msk.bf16.mxu0 %vm10345_vm0, %v10344_v1  ;;  %v3434_v43 = vrot.slane %v11510_v9, 1  ;;  %v10125_v36 = vld [vmem:[%s12930_s6 + $0x308] sm:$0xff]  }
 0x2d5   : > { %v2811_v37 = vmax.f32 %v2778_v52, 0.0  ;;  %9205 = vmatprep.subr.bf16.mxu0 %v10344_v1  ;;  %v2915_v62 = vmul.f32 %v2877_v3, %v2810_v56  ;;  %v2902_v56 = vpop.permute.xlu0 %2901  ;;  %v2897_v52 = vpop.permute.xlu1 %2896 }
 0x2d6   : > { %v3435_v42 = vsel %vm1271_vm1, %v3433_v44, %v3434_v43 }
 0x2d7   : > { %v2916_v20 = vmul.f32 %v2882_v5, %v2811_v37  ;;  %9252 = vmatmul.mubr.bf16.vlgmr.msra.gmra.mrb[128].mxu1 %v3435_v42  ;;  %v10119_v5 = vld [vmem:[%s12930_s6 + $0x360] sm:$0xff]   ;;  %v3240_v42 = vshll.u32 %v11510_v9, 16 }
 0x2d8   : > { %v2782_v24 = vpop.f32.mrb[116].mxu1  ;;  %9206 = vmatpush3.bf16.msra.mxu0 %v10104_v45  ;;  %9255 = vmatprep.mubr.msk.bf16.mxu1 %vm10345_vm0, %v10344_v1 }
 0x2d9   : > { %v8242_v30 = vpack.c.bf16 %v2916_v20, %v2915_v62  ;;  %v2783_v59 = vadd.f32 %v11484_v10, %v2782_v24  ;;  %v9153_v6 = vpop.f32.mrb[117].mxu1  ;;  %9207 = vmatprep.subr.bf16.mxu0 %v10344_v1  ;;  %9308 = vmatpush3.bf16.msra.mxu1 %v10108_v2  ;;  %v3235_v62 = vshll.u32 %v7670_v21, 16  ;;  %v10122_v20 = vld [vmem:[%s12930_s6 + $0x368] sm:$0xff]  }
 0x2da   : > { %v2785_v12 = vpop.f32.mrb[118].mxu1  ;;  %v10105_v54 = vld [vmem:[#allocation2 + $0x10] sm:$0xff]   ;;  %9309 = vmatprep.subr.bf16.mxu1 %v10344_v1 }
 0x2db   : > { %8327 = vst [vmem:[#allocation2 + $0x18] sm:$0xff] %v8242_v30   ;;  %v2812_v8 = vmax.f32 %v2783_v59, 0.0  ;;  %v2786_v35 = vadd.f32 %v11484_v10, %v2785_v12  ;;  %v9154_v32 = vpop.f32.mrb[119].mxu1  ;;  %9188 = vmatmul.mubr.bf16.gmra.mrb[116].mxu0 %v10105_v54  ;;  %v11534_v15 = vld [vmem:[#allocation2 + $0x10] sm:$0xff]  }
 0x2dc   : > { %9208 = vmatpush3.bf16.msra.mxu0 %v10107_v38  ;;  %9191 = vmatprep.mubr.msk.bf16.mxu0 %vm10345_vm0, %v10344_v1  ;;  %v3436_v4 = vrot.slane %v11534_v15, 1  ;;  %v10124_v32 = vld [vmem:[%s12930_s6 + $0x370] sm:$0xff]  }
 0x2dd   : > { %v2813_v27 = vmax.f32 %v2786_v35, 0.0  ;;  %9209 = vmatprep.subr.bf16.mxu0 %v10344_v1  ;;  %v2917_v19 = vmul.f32 %v2887_v46, %v2812_v8  ;;  %9310 = vmatpush3.bf16.msra.mxu1 %v10110_v29  ;;  %v3237_v29 = vrot.slane %v3235_v62, 1  ;;  %v3233_v8 = vshrl.u32 %v7670_v21, 16 }
 0x2de   : > { %v3437_v51 = vsel %vm1271_vm1, %v3434_v43, %v3436_v4  ;;  %9311 = vmatprep.subr.bf16.mxu1 %v10344_v1  ;;  %v3242_v35 = vrot.slane %v3240_v42, 1  ;;  %v3252_v62 = vshrl.u32 %v11534_v15, 16 }
 0x2df   : > { %v2918_v57 = vmul.f32 %v2892_v17, %v2813_v27  ;;  %9256 = vmatmul.mubr.bf16.gmra.mrb[132].mxu1 %v3437_v51  ;;  %v11594_v27 = vld [vmem:[#allocation2 + $0x8] sm:$0xf]  ;;  %v11597_v17 = vld [vmem:[#allocation2 + $0xc] sm:$0xff]   ;;  %v3248_v51 = vshll.u32 %v11534_v15, 16 }
 0x2e0   : > { %v2790_v41 = vpop.f32.mrb[120].mxu1  ;;  %9210 = vmatpush3.bf16.msra.mxu0 %v10111_v16  ;;  %9259 = vmatprep.mubr.msk.bf16.mxu1 %vm10345_vm0, %v10344_v1 }
 0x2e1   : > { %v8247_v25 = vpack.c.bf16 %v2918_v57, %v2917_v19  ;;  %v2791_v31 = vadd.f32 %v11484_v10, %v2790_v41  ;;  %v9157_v0 = vpop.f32.mrb[121].mxu1  ;;  %9211 = vmatprep.subr.bf16.mxu0 %v10344_v1  ;;  %9312 = vmatpush3.bf16.msra.mxu1 %v10113_v26  ;;  %v10121_v19 = vld [vmem:[%s12930_s6 + $0x300] sm:$0xff]   ;;  %v10126_v57 = vld [vmem:[%s12930_s6 + $0x378] sm:$0xff]  }
 0x2e2   : > { %v2793_v14 = vpop.f32.mrb[122].mxu1  ;;  %v10109_v13 = vld [vmem:[#allocation2 + $0x18] sm:$0xff]   ;;  %9313 = vmatprep.subr.bf16.mxu1 %v10344_v1  ;;  %v3580_v26 = vld [vmem:[#allocation2 + $0x4] sm:$0xe] }
 0x2e3   : > { %8328 = vst [vmem:[#allocation2 + $0x20] sm:$0xff] %v8247_v25   ;;  %v2814_v63 = vmax.f32 %v2791_v31, 0.0  ;;  %v2794_v61 = vadd.f32 %v11484_v10, %v2793_v14  ;;  %v9158_v40 = vpop.f32.mrb[123].mxu1  ;;  %9192 = vmatmul.mubr.bf16.gmra.mrb[120].mxu0 %v10109_v13  ;;  %v11560_v18 = vld [vmem:[#allocation2 + $0x18] sm:$0xff]   ;;  %v11611_v25 = vcombine.low %v3580_v26, %v11594_v27 }
 0x2e4   : > { %9212 = vmatpush3.bf16.msra.mxu0 %v10114_v22  ;;  %9195 = vmatprep.mubr.msk.bf16.mxu0 %vm10345_vm0, %v10344_v1  ;;  %v3438_v23 = vrot.slane %v11560_v18, 1  ;;  %v3813_v22 = vshrl.u32 %v11597_v17, 16  ;;  %v3250_v40 = vrot.slane %v3248_v51, 1  ;;  %v11628_v21 = vld [vmem:[#allocation2 + $0x14] sm:$0xff]  }
 0x2e5   : > { %v2815_v48 = vmax.f32 %v2794_v61, 0.0  ;;  %9213 = vmatprep.subr.bf16.mxu0 %v10344_v1  ;;  %v2919_v37 = vmul.f32 %v2897_v52, %v2814_v63  ;;  %9314 = vmatpush3.bf16.msra.mxu1 %v10116_v47  ;;  %v3816_v47 = vshll.u32 %v11597_v17, 16  ;;  %v3805_v13 = vshrl.u32 %v11611_v25, 16  ;;  %v10127_v52 = vld [vmem:[%s12930_s6 + $0x310] sm:$0xff]  }
 0x2e6   : > { %v3439_v44 = vsel %vm1271_vm1, %v3436_v4, %v3438_v23  ;;  %9315 = vmatprep.subr.bf16.mxu1 %v10344_v1  ;;  %v3238_v4 = vor.u32 %v3237_v29, %v3233_v8  ;;  %v3808_v63 = vshll.u32 %v11611_v25, 16  ;;  %v3244_v61 = vshrl.u32 %v11510_v9, 16 }
 0x2e7   : > { %v2920_v45 = vmul.f32 %v2902_v56, %v2815_v48  ;;  %9260 = vmatmul.mubr.bf16.gmra.mrb[136].mxu1 %v3439_v44  ;;  %v3815_v48 = vrot.slane %v3813_v22, 1  ;;  %v3807_v9 = vrot.slane %v3805_v13, 1  ;;  %v3825_v44 = vshll.u32 %v11628_v21, 16 }
 0x2e8   : > { %v2798_v3 = vpop.f32.mrb[124].mxu1  ;;  %9214 = vmatpush3.bf16.msra.mxu0 %v10117_v50  ;;  %9263 = vmatprep.mubr.msk.bf16.mxu1 %vm10345_vm0, %v10344_v1  ;;  %v3243_v31 = vsel %vm953_vm2, %v3238_v4, %v3242_v35  ;;  %v3818_v50 = vrot.slane %v3816_v47, 2  ;;  %v3246_v56 = vor.u32 %v3244_v61, %v3242_v35  ;;  %v10137_v4 = vld [vmem:[%s12930_s6 + $0x3d0] sm:$0xff]   ;;  %v10139_v47 = vld [vmem:[%s12930_s6 + $0x3d8] sm:$0xff]  }
 0x2e9   : > { %v8252_v43 = vpack.c.bf16 %v2920_v45, %v2919_v37  ;;  %v2799_v33 = vadd.f32 %v11484_v10, %v2798_v3  ;;  %v9161_v2 = vpop.f32.mrb[125].mxu1  ;;  %9271 = vmatprep.subr.bf16.mxu0 %v10344_v1  ;;  %9316 = vmatpush3.bf16.msra.mxu1 %v10119_v5  ;;  %v2907_v10 = vpop.permute.xlu1 %2906  ;;  %v3256_v45 = vshll.u32 %v11560_v18, 16  ;;  %v3822_v3 = vshrl.u32 %v11628_v21, 16 }
 0x2ea   : > { %v10115_v24 = vld [vmem:[#allocation2 + $0x20] sm:$0xff]   ;;  %9317 = vmatprep.subr.bf16.mxu1 %v10344_v1  ;;  %v2801_v16 = vpop.f32.mrb[126].mxu1  ;;  %v3251_v37 = vsel %vm953_vm2, %v3246_v56, %v3250_v40  ;;  %v3819_v5 = vor.u32 %v3818_v50, %v3815_v48 }
 0x2eb   : > { %8329 = vst [vmem:[#allocation2 + $0x28] sm:$0xff] %v8252_v43   ;;  %v2816_v30 = vmax.f32 %v2799_v33, 0.0  ;;  %v11584_v59 = vld [vmem:[#allocation2 + $0x20] sm:$0xff]   ;;  %9196 = vmatmul.mubr.bf16.gmra.mrb[124].mxu0 %v10115_v24  ;;  %v9162_v46 = vpop.f32.mrb[127].mxu1  ;;  %v10130_v43 = vld [vmem:[%s12930_s6 + $0x318] sm:$0xff]   ;;  %v3824_v42 = vrot.slane %v3822_v3, 1 }
 0x2ec   : > { %v3440_v38 = vrot.slane %v11584_v59, 1  ;;  %9215 = vmatprep.mubr.msk.bf16.mxu0 %vm10345_vm0, %v10344_v1  ;;  %v10133_v2 = vld [vmem:[%s12930_s6 + $0x3c0] sm:$0xff]   ;;  %v3264_v29 = vshll.u32 %v11584_v59, 16  ;;  %v3260_v16 = vshrl.u32 %v11560_v18, 16  ;;  %v10138_v18 = vld [vmem:[%s12930_s6 + $0x330] sm:$0xff]   ;;  %v3268_v61 = vshrl.u32 %v11584_v59, 16 }
 0x2ed   : > { %v2921_v6 = vmul.f32 %v2907_v10, %v2816_v30  ;;  %9318 = vmatpush3.bf16.msra.mxu1 %v10122_v20  ;;  %v3258_v20 = vrot.slane %v3256_v45, 1  ;;  %v3827_v30 = vrot.slane %v3825_v44, 2  ;;  %v11652_v10 = vld [vmem:[#allocation2 + $0x1c] sm:$0xff]   ;;  %v10144_v59 = vld [vmem:[%s12930_s6 + $0x3e8] sm:$0xff]   ;;  %v3637_v3 = vrot.slane %v11597_v17, 1  ;;  %v10146_v44 = vld [vmem:[%s12930_s6 + $0x3f0] sm:$0xff]  }
 0x2ee   : > { %v3441_v54 = vsel %vm1271_vm1, %v3438_v23, %v3440_v38  ;;  %9319 = vmatprep.subr.bf16.mxu1 %v10344_v1  ;;  %v3810_v23 = vrot.slane %v3808_v63, 2  ;;  %v3831_v8 = vshrl.u32 %v11652_v10, 16  ;;  %v3834_v35 = vshll.u32 %v11652_v10, 16  ;;  %v10142_v48 = vld [vmem:[%s12930_s6 + $0x3e0] sm:$0xff]  }
 0x2ef   : > { %v8180_v12 = vpack.c.bf16 %v2921_v6, %v2921_v6  ;;  %9264 = vmatmul.mubr.bf16.gmra.mrb[140].mxu1 %v3441_v54  ;;  %v3254_v6 = vor.u32 %v3252_v62, %v3250_v40  ;;  %v3828_v54 = vor.u32 %v3827_v30, %v3824_v42  ;;  %v3266_v46 = vrot.slane %v3264_v29, 1  ;;  %v10148_v42 = vld [vmem:[%s12930_s6 + $0x3f8] sm:$0xff]  }
 0x2f0   : > { %9267 = vmatprep.mubr.msk.bf16.mxu1 %vm10345_vm0, %v10344_v1  ;;  %v3811_v33 = vor.u32 %v3810_v23, %v3807_v9  ;;  %v3836_v26 = vrot.slane %v3834_v35, 2 }
 0x2f1   : > { %2987 = vst [vmem:[#allocation2 + $0x30] sm:$0xf] %v8180_v12  ;;  %9320 = vmatpush3.bf16.msra.mxu1 %v10124_v32  ;;  %v3259_v15 = vsel %vm953_vm2, %v3254_v6, %v3258_v20  ;;  %v10134_v12 = vld [vmem:[%s12930_s6 + $0x3c8] sm:$0xff]   ;;  %v3270_v9 = vor.u32 %v3268_v61, %v3266_v46  ;;  %v3639_v6 = vrot.slane %v11628_v21, 1  ;;  %v10160_v61 = vld [vmem:[%s12930_s6 + $0x3b0] sm:$0xff]  }
 0x2f2   : > { %v11607_v41 = vld [vmem:[#allocation2 + $0x28] ss:$0 sps:$4 sm:$0x11]   ;;  %9321 = vmatprep.subr.bf16.mxu1 %v10344_v1  ;;  %v3820_v24 = vsel %vm1643_vm3, %v3811_v33, %v3819_v5  ;;  %v11706_v63 = vld [vmem:[#allocation2 + $0x2c] ss:$0 sps:$4 sm:$0x33]  }
 0x2f3   : > { %9216 = vmatmul.mubr.bf16.vlgmr.msra.gmra.mrb[128].mxu0 %v3243_v31  ;;  %v3442_v0 = vrot.slane %v11607_v41, 1  ;;  %v10135_v32 = vld [vmem:[%s12930_s6 + $0x328] sm:$0xff]   ;;  %v3262_v31 = vor.u32 %v3260_v16, %v3258_v20  ;;  %v3272_v22 = vshll.u32 %v11607_v41, 16  ;;  %v10140_v41 = vld [vmem:[%s12930_s6 + $0x338] sm:$0xff]   ;;  %v3849_v23 = vshrl.u32 %v11706_v63, 16 }
 0x2f4   : > { %9272 = vmatpush3.bf16.msra.mxu0 %v10121_v19  ;;  %9219 = vmatprep.mubr.msk.bf16.mxu0 %vm10345_vm0, %v10344_v1  ;;  %v3829_v19 = vsel %vm1643_vm3, %v3819_v5, %v3828_v54  ;;  %v11681_v51 = vld [vmem:[#allocation2 + $0x24] sm:$0xff]   ;;  %v3636_v20 = vrot.slane %v11611_v25, 1  ;;  %v3640_v35 = vsel %vm1271_vm1, %v3637_v3, %v3639_v6  ;;  %v10152_v16 = vld [vmem:[%s12930_s6 + $0x398] sm:$0xff]  }
 0x2f5   : > { %v3443_v14 = vsel %vm1271_vm1, %v3440_v38, %v3442_v0  ;;  %9273 = vmatprep.subr.bf16.mxu0 %v10344_v1  ;;  %9322 = vmatpush3.bf16.msra.mxu1 %v10126_v57  ;;  %v10132_v38 = vld [vmem:[%s12930_s6 + $0x320] sm:$0xff]   ;;  %v3833_v57 = vrot.slane %v3831_v8, 1  ;;  %v3267_v0 = vsel %vm953_vm2, %v3262_v31, %v3266_v46  ;;  %v3843_v13 = vshll.u32 %v11681_v51, 16  ;;  %v10147_v25 = vld [vmem:[%s12930_s6 + $0x388] sm:$0xff]  }
 0x2f6   : > { %9379 = vmatprep.subr.bf16.mxu1 %v10344_v1  ;;  %v3274_v40 = vrot.slane %v3272_v22, 1  ;;  %v3851_v33 = vrot.slane %v3849_v23, 1  ;;  %v10154_v31 = vld [vmem:[%s12930_s6 + $0x3a0] sm:$0xff]  }
 0x2f7   : > { %9268 = vmatmul.mubr.bf16.gmra.mrb[144].mxu1 %v3443_v14  ;;  %v3840_v14 = vshrl.u32 %v11681_v51, 16 }
 0x2f8   : > { %9274 = vmatpush3.bf16.msra.mxu0 %v10125_v36  ;;  %9323 = vmatprep.mubr.msk.bf16.mxu1 %vm10345_vm0, %v10344_v1  ;;  %v3837_v36 = vor.u32 %v3836_v26, %v3833_v57  ;;  %v3275_v45 = vsel %vm953_vm2, %v3270_v9, %v3274_v40  ;;  %v11785_v26 = vld [vmem:[#allocation2 + $0x18] sm:$0xff]  }
 0x2f9   : > { %9275 = vmatprep.subr.bf16.mxu0 %v10344_v1  ;;  %v3842_v56 = vrot.slane %v3840_v14, 1  ;;  %v4220_v22 = vrot.slane %v11785_v26, 2  ;;  %v10159_v14 = vld [vmem:[%s12930_s6 + $0x450] sm:$0xff]  }
 0x2fa   : > { %v3838_v50 = vsel %vm1643_vm3, %v3828_v54, %v3837_v36  ;;  %v10149_v54 = vld [vmem:[%s12930_s6 + $0x390] sm:$0xff]  }
 0x2fb   : > { %9220 = vmatmul.mubr.bf16.gmra.mrb[132].mxu0 %v3251_v37  ;;  %v3852_v37 = vshll.u32 %v11706_v63, 16 }
 0x2fc   : > { %9276 = vmatpush3.bf16.msra.mxu0 %v10127_v52  ;;  %9223 = vmatprep.mubr.msk.bf16.mxu0 %vm10345_vm0, %v10344_v1  ;;  %v3845_v52 = vrot.slane %v3843_v13, 2 }
 0x2fd   : > { %9277 = vmatprep.subr.bf16.mxu0 %v10344_v1  ;;  %v3854_v62 = vrot.slane %v3852_v37, 2  ;;  %v11835_v37 = vld [vmem:[#allocation2 + $0x28] sm:$0xff]  }
 0x2fe   : > { %v3846_v5 = vor.u32 %v3845_v52, %v3842_v56  ;;  %v10163_v52 = vld [vmem:[%s12930_s6 + $0x3b8] sm:$0xff]  }
 0x2ff   : > { %9324 = vmatmul.mubr.bf16.vlgmr.msra.gmra.mrb[148].mxu1 %v3820_v24  ;;  %v3638_v24 = vsel %vm1271_vm1, %v3636_v20, %v3637_v3  ;;  %v3855_v30 = vor.u32 %v3854_v62, %v3851_v33  ;;  %v4224_v3 = vrot.slane %v11835_v37, 2  ;;  %v4015_v33 = vrot.slane %v11597_v17, 2  ;;  %v10170_v62 = vld [vmem:[%s12930_s6 + $0x470] sm:$0xff]   ;;  %v10172_v17 = vld [vmem:[%s12930_s6 + $0x478] sm:$0xff]  }
 0x300   : > { %9278 = vmatpush3.bf16.msra.mxu0 %v10130_v43  ;;  %9327 = vmatprep.mubr.msk.bf16.mxu1 %vm10345_vm0, %v10344_v1  ;;  %v3847_v43 = vsel %vm1643_vm3, %v3837_v36, %v3846_v5  ;;  %v3643_v36 = vrot.slane %v11681_v51, 1 }
 0x301   : > { %9279 = vmatprep.subr.bf16.mxu0 %v10344_v1  ;;  %9380 = vmatpush3.bf16.msra.mxu1 %v10133_v2  ;;  %v10143_v2 = vld [vmem:[%s12930_s6 + $0x380] sm:$0xff]   ;;  %v3856_v29 = vsel %vm1643_vm3, %v3846_v5, %v3855_v30  ;;  %v10168_v5 = vld [vmem:[%s12930_s6 + $0x468] sm:$0xff]  }
 0x302   : > { %9381 = vmatprep.subr.bf16.mxu1 %v10344_v1 }
 0x303   : > { %9224 = vmatmul.mubr.bf16.gmra.mrb[136].mxu0 %v3259_v15  ;;  %v11756_v15 = vld [vmem:[#allocation2 + $0xc] sm:$0xf] }
 0x304   : > { %9280 = vmatpush3.bf16.msra.mxu0 %v10132_v38  ;;  %9227 = vmatprep.mubr.msk.bf16.mxu0 %vm10345_vm0, %v10344_v1  ;;  %v4161_v38 = vld [vmem:[#allocation2 + $0x8] sm:$0xc] }
 0x305   : > { %9281 = vmatprep.subr.bf16.mxu0 %v10344_v1  ;;  %9382 = vmatpush3.bf16.msra.mxu1 %v10134_v12  ;;  %v11759_v12 = vld [vmem:[#allocation2 + $0x10] sm:$0xff]   ;;  %v11769_v8 = vcombine.low %v4161_v38, %v11756_v15  ;;  %v4574_v38 = vld [vmem:[#allocation2 + $0x8] sm:$0x8] }
 0x306   : > { %9383 = vmatprep.subr.bf16.mxu1 %v10344_v1 }
 0x307   : > { %9328 = vmatmul.mubr.bf16.gmra.mrb[152].mxu1 %v3829_v19  ;;  %v4217_v46 = vrot.slane %v11769_v8, 2  ;;  %v10155_v19 = vld [vmem:[%s12930_s6 + $0x440] sm:$0xff]  }
 0x308   : > { %9282 = vmatpush3.bf16.msra.mxu0 %v10135_v32  ;;  %9331 = vmatprep.mubr.msk.bf16.mxu1 %vm10345_vm0, %v10344_v1  ;;  %v4218_v32 = vrot.slane %v11759_v12, 2 }
 0x309   : > { %9283 = vmatprep.subr.bf16.mxu0 %v10344_v1  ;;  %9384 = vmatpush3.bf16.msra.mxu1 %v10137_v4  ;;  %v3641_v4 = vrot.slane %v11652_v10, 1 }
 0x30a   : > { %9385 = vmatprep.subr.bf16.mxu1 %v10344_v1  ;;  %v4219_v57 = vsel %vm1854_vm4, %v4217_v46, %v4218_v32  ;;  %v4221_v13 = vsel %vm1854_vm4, %v4218_v32, %v4220_v22  ;;  %v4596_v32 = vrot.slane %v11759_v12, 3 }
 0x30b   : > { %9228 = vmatmul.mubr.bf16.gmra.mrb[140].mxu0 %v3267_v0  ;;  %v10156_v0 = vld [vmem:[%s12930_s6 + $0x448] sm:$0xff]   ;;  %v3644_v40 = vsel %vm1271_vm1, %v3641_v4, %v3643_v36 }
 0x30c   : > { %9284 = vmatpush3.bf16.msra.mxu0 %v10138_v18  ;;  %9231 = vmatprep.mubr.msk.bf16.mxu0 %vm10345_vm0, %v10344_v1  ;;  %v3642_v18 = vsel %vm1271_vm1, %v3639_v6, %v3641_v4  ;;  %v4017_v6 = vrot.slane %v11628_v21, 2  ;;  %v4019_v4 = vrot.slane %v11652_v10, 2  ;;  %v10177_v10 = vld [vmem:[%s12930_s6 + $0x428] sm:$0xff]  }
 0x30d   : > { %9285 = vmatprep.subr.bf16.mxu0 %v10344_v1  ;;  %9386 = vmatpush3.bf16.msra.mxu1 %v10139_v47  ;;  %v10157_v47 = vld [vmem:[%s12930_s6 + $0x3a8] sm:$0xff]  }
 0x30e   : > { %9387 = vmatprep.subr.bf16.mxu1 %v10344_v1  ;;  %v4018_v21 = vsel %vm1854_vm4, %v4015_v33, %v4017_v6 }
 0x30f   : > { %9332 = vmatmul.mubr.bf16.gmra.mrb[156].mxu1 %v3838_v50  ;;  %v10162_v50 = vld [vmem:[%s12930_s6 + $0x458] sm:$0xff]  }
 0x310   : > { %9286 = vmatpush3.bf16.msra.mxu0 %v10140_v41  ;;  %9335 = vmatprep.mubr.msk.bf16.mxu1 %vm10345_vm0, %v10344_v1  ;;  %v11810_v41 = vld [vmem:[#allocation2 + $0x20] sm:$0xff]  }
 0x311   : > { %9343 = vmatprep.subr.bf16.mxu0 %v10344_v1  ;;  %9388 = vmatpush3.bf16.msra.mxu1 %v10142_v48  ;;  %v10161_v48 = vld [vmem:[#allocation2 + $0x2c] ss:$0 sps:$4 sm:$0x11]   ;;  %v4222_v56 = vrot.slane %v11810_v41, 2 }
 0x312   : > { %9389 = vmatprep.subr.bf16.mxu1 %v10344_v1  ;;  %v3645_v9 = vrot.slane %v10161_v48, 1  ;;  %v4386_v48 = vshrl.u32 %v11769_v8, 16 }
 0x313   : > { %9232 = vmatmul.mubr.bf16.gmra.mrb[144].mxu0 %v3275_v45  ;;  %v4223_v23 = vsel %vm1854_vm4, %v4220_v22, %v4222_v56  ;;  %v4225_v20 = vsel %vm1854_vm4, %v4222_v56, %v4224_v3  ;;  %v10178_v22 = vld [vmem:[%s12930_s6 + $0x430] sm:$0xff]  }
 0x314   : > { %9287 = vmatprep.mubr.msk.bf16.mxu0 %vm10345_vm0, %v10344_v1  ;;  %v3646_v45 = vsel %vm1271_vm1, %v3643_v36, %v3645_v9  ;;  %v4600_v36 = vrot.slane %v11810_v41, 3  ;;  %v4388_v9 = vrot.slane %v4386_v48, 2 }
 0x315   : > { %9390 = vmatpush3.bf16.msra.mxu1 %v10144_v59  ;;  %v10165_v59 = vld [vmem:[%s12930_s6 + $0x460] sm:$0xff]  }
 0x316   : > { %9391 = vmatprep.subr.bf16.mxu1 %v10344_v1 }
 0x317   : > { %9336 = vmatmul.mubr.bf16.gmra.mrb[160].mxu1 %v3847_v43 }
 0x318   : > { %9339 = vmatprep.mubr.msk.bf16.mxu1 %vm10345_vm0, %v10344_v1 }
 0x319   : > { %9392 = vmatpush3.bf16.msra.mxu1 %v10146_v44  ;;  %v3993_v44 = vld [vmem:[#allocation2 + $0x4] sm:$0xc] }
 0x31a   : > { %9393 = vmatprep.subr.bf16.mxu1 %v10344_v1  ;;  %v7780_v43 = vcombine.low %v3993_v44, %v11594_v27 }
 0x31b   : > { %9288 = vmatmul.mubr.bf16.vlgmr.msra.gmra.mrb[148].mxu0 %v3638_v24 }
 0x31c   : > { %9344 = vmatpush3.bf16.msra.mxu0 %v10143_v2  ;;  %9291 = vmatprep.mubr.msk.bf16.mxu0 %vm10345_vm0, %v10344_v1  ;;  %v10169_v2 = vld [vmem:[#allocation2 + $0x30] ss:$0 sps:$4 sm:$0x33]   ;;  %v4014_v24 = vrot.slane %v7780_v43, 2  ;;  %v10180_v43 = vld [vmem:[%s12928_s4] sm:$0xff]  }
 0x31d   : > { %9345 = vmatprep.subr.bf16.mxu0 %v10344_v1  ;;  %9394 = vmatpush3.bf16.msra.mxu1 %v10148_v42  ;;  %v10167_v42 = vld [vmem:[%s12930_s6 + $0x400] sm:$0xff]   ;;  %v4226_v30 = vrot.slane %v10169_v2, 2 }
 0x31e   : > { %9451 = vmatprep.subr.bf16.mxu1 %v10344_v1  ;;  %v4016_v27 = vsel %vm1854_vm4, %v4014_v24, %v4015_v33 }
 0x31f   : > { %9340 = vmatmul.mubr.bf16.gmra.mrb[164].mxu1 %v3856_v29  ;;  %v4227_v29 = vsel %vm1854_vm4, %v4224_v3, %v4226_v30  ;;  %v10181_v3 = vld [vmem:[#allocation2 + $0x30] ss:$0 sps:$4 sm:$0x77]  }
 0x320   : > { %9346 = vmatpush3.bf16.msra.mxu0 %v10147_v25  ;;  %9395 = vmatprep.mubr.msk.bf16.mxu1 %vm10345_vm0, %v10344_v1  ;;  %v10171_v25 = vld [vmem:[%s12930_s6 + $0x408] sm:$0xff]   ;;  %v4604_v2 = vrot.slane %v10181_v3, 3  ;;  %v10183_v30 = vld [vmem:[%s12928_s4 + $0x10] sm:$0xff]  }
 0x321   : > { %9347 = vmatprep.subr.bf16.mxu0 %v10344_v1 }
 0x323   : > { %9292 = vmatmul.mubr.bf16.gmra.mrb[152].mxu0 %v3640_v35  ;;  %v7860_v35 = vcombine.low %v4574_v38, %v11756_v15 }
 0x324   : > { %9348 = vmatpush3.bf16.msra.mxu0 %v10149_v54  ;;  %9295 = vmatprep.mubr.msk.bf16.mxu0 %vm10345_vm0, %v10344_v1  ;;  %v10173_v54 = vld [vmem:[%s12930_s6 + $0x410] sm:$0xff]  }
 0x325   : > { %9349 = vmatprep.subr.bf16.mxu0 %v10344_v1  ;;  %v4595_v46 = vrot.slane %v7860_v35, 3  ;;  %v4424_v35 = vshll.u32 %v11835_v37, 16 }
 0x327   : > { %9396 = vmatmul.mubr.bf16.vlgmr.msra.gmra.mrb[168].mxu1 %v4219_v57  ;;  %v4597_v15 = vsel %vm2437_vm5, %v4595_v46, %v4596_v32  ;;  %v4020_v57 = vsel %vm1854_vm4, %v4017_v6, %v4019_v4  ;;  %v4426_v46 = vrot.slane %v4424_v35, 3 }
 0x328   : > { %9350 = vmatpush3.bf16.msra.mxu0 %v10152_v16  ;;  %9399 = vmatprep.mubr.msk.bf16.mxu1 %vm10345_vm0, %v10344_v1  ;;  %v10175_v16 = vld [vmem:[%s12930_s6 + $0x418] sm:$0xff]  }
 0x329   : > { %9351 = vmatprep.subr.bf16.mxu0 %v10344_v1  ;;  %9452 = vmatpush3.bf16.msra.mxu1 %v10155_v19  ;;  %v10176_v19 = vld [vmem:[%s12930_s6 + $0x420] sm:$0xff]  }
 0x32a   : > { %9453 = vmatprep.subr.bf16.mxu1 %v10344_v1 }
 0x32b   : > { %9296 = vmatmul.mubr.bf16.gmra.mrb[156].mxu0 %v3642_v18  ;;  %v4021_v18 = vrot.slane %v11681_v51, 2  ;;  %v10179_v51 = vld [vmem:[%s12930_s6 + $0x438] sm:$0xff]  }
 0x32c   : > { %9352 = vmatpush3.bf16.msra.mxu0 %v10154_v31  ;;  %9299 = vmatprep.mubr.msk.bf16.mxu0 %vm10345_vm0, %v10344_v1  ;;  %v4598_v31 = vrot.slane %v11785_v26, 3 }
 0x32d   : > { %9353 = vmatprep.subr.bf16.mxu0 %v10344_v1  ;;  %9454 = vmatpush3.bf16.msra.mxu1 %v10156_v0 }
 0x32e   : > { %9455 = vmatprep.subr.bf16.mxu1 %v10344_v1  ;;  %v4599_v0 = vsel %vm2437_vm5, %v4596_v32, %v4598_v31 }
 0x32f   : > { %9400 = vmatmul.mubr.bf16.gmra.mrb[172].mxu1 %v4221_v13  ;;  %v4394_v13 = vshrl.u32 %v11759_v12, 16 }
 0x330   : > { %9354 = vmatpush3.bf16.msra.mxu0 %v10157_v47  ;;  %9403 = vmatprep.mubr.msk.bf16.mxu1 %vm10345_vm0, %v10344_v1  ;;  %v4022_v47 = vsel %vm1854_vm4, %v4019_v4, %v4021_v18 }
 0x331   : > { %9355 = vmatprep.subr.bf16.mxu0 %v10344_v1  ;;  %9456 = vmatpush3.bf16.msra.mxu1 %v10159_v14  ;;  %v4023_v14 = vrot.slane %v11706_v63, 2  ;;  %v4396_v63 = vrot.slane %v4394_v13, 2 }
 0x332   : > { %9457 = vmatprep.subr.bf16.mxu1 %v10344_v1 }
 0x333   : > { %9300 = vmatmul.mubr.bf16.gmra.mrb[160].mxu0 %v3644_v40  ;;  %v4601_v40 = vsel %vm2437_vm5, %v4598_v31, %v4600_v36  ;;  %v4024_v56 = vsel %vm1854_vm4, %v4021_v18, %v4023_v14 }
 0x334   : > { %9356 = vmatpush3.bf16.msra.mxu0 %v10160_v61  ;;  %9303 = vmatprep.mubr.msk.bf16.mxu0 %vm10345_vm0, %v10344_v1  ;;  %v4397_v61 = vshll.u32 %v11759_v12, 16  ;;  %v4602_v12 = vrot.slane %v11835_v37, 3 }
 0x335   : > { %9357 = vmatprep.subr.bf16.mxu0 %v10344_v1  ;;  %9458 = vmatpush3.bf16.msra.mxu1 %v10162_v50  ;;  %v4389_v50 = vshll.u32 %v11769_v8, 16  ;;  %v4403_v8 = vshrl.u32 %v11785_v26, 16 }
 0x336   : > { %9459 = vmatprep.subr.bf16.mxu1 %v10344_v1 }
 0x337   : > { %9404 = vmatmul.mubr.bf16.gmra.mrb[176].mxu1 %v4223_v23 }
 0x338   : > { %9358 = vmatpush3.bf16.msra.mxu0 %v10163_v52  ;;  %9407 = vmatprep.mubr.msk.bf16.mxu1 %vm10345_vm0, %v10344_v1  ;;  %v4399_v52 = vrot.slane %v4397_v61, 3 }
 0x339   : > { %9415 = vmatprep.subr.bf16.mxu0 %v10344_v1  ;;  %9460 = vmatpush3.bf16.msra.mxu1 %v10165_v59  ;;  %v4391_v59 = vrot.slane %v4389_v50, 3 }
 0x33a   : > { %9461 = vmatprep.subr.bf16.mxu1 %v10344_v1  ;;  %v4400_v23 = vor.u32 %v4399_v52, %v4396_v63 }
 0x33b   : > { %9304 = vmatmul.mubr.bf16.gmra.mrb[164].mxu0 %v3646_v45  ;;  %v4406_v45 = vshll.u32 %v11785_v26, 16  ;;  %v4392_v44 = vor.u32 %v4391_v59, %v4388_v9  ;;  %v10182_v26 = vld [vmem:[%s12928_s4 + $0x8] sm:$0xff]   ;;  %v10192_v9 = vld [vmem:[%s11721_s23 + $0x18] sm:$0xff]  }
 0x33c   : > { %9359 = vmatprep.mubr.msk.bf16.mxu0 %vm10345_vm0, %v10344_v1 }
 0x33d   : > { %9462 = vmatpush3.bf16.msra.mxu1 %v10168_v5  ;;  %v4603_v5 = vsel %vm2437_vm5, %v4600_v36, %v4602_v12  ;;  %v4401_v33 = vsel %vm2226_vm6, %v4392_v44, %v4400_v23  ;;  %v10189_v36 = vld [vmem:[%s11721_s23] sm:$0xff]  }
 0x33e   : > { %9463 = vmatprep.subr.bf16.mxu1 %v10344_v1 }
 0x33f   : > { %9408 = vmatmul.mubr.bf16.gmra.mrb[180].mxu1 %v4225_v20  ;;  %v4408_v20 = vrot.slane %v4406_v45, 3 }
 0x340   : > { %9411 = vmatprep.mubr.msk.bf16.mxu1 %vm10345_vm0, %v10344_v1 }
 0x341   : > { %9464 = vmatpush3.bf16.msra.mxu1 %v10170_v62  ;;  %v4405_v62 = vrot.slane %v4403_v8, 2 }
 0x342   : > { %9465 = vmatprep.subr.bf16.mxu1 %v10344_v1 }
 0x343   : > { %9360 = vmatmul.mubr.bf16.vlgmr.msra.gmra.mrb[168].mxu0 %v4016_v27  ;;  %v4409_v24 = vor.u32 %v4408_v20, %v4405_v62  ;;  %v4415_v27 = vshll.u32 %v11810_v41, 16 }
 0x344   : > { %9416 = vmatpush3.bf16.msra.mxu0 %v10167_v42  ;;  %9363 = vmatprep.mubr.msk.bf16.mxu0 %vm10345_vm0, %v10344_v1  ;;  %v4412_v42 = vshrl.u32 %v11810_v41, 16  ;;  %v10184_v41 = vld [vmem:[%s12928_s4 + $0x18] sm:$0xff]  }
 0x345   : > { %9417 = vmatprep.subr.bf16.mxu0 %v10344_v1  ;;  %9466 = vmatpush3.bf16.msra.mxu1 %v10172_v17  ;;  %v4605_v17 = vsel %vm2437_vm5, %v4602_v12, %v4604_v2  ;;  %v4417_v38 = vrot.slane %v4415_v27, 3 }
 0x346   : > { %9531 = vmatprep.subr.bf16.mxu1 %v10344_v1  ;;  %v4414_v6 = vrot.slane %v4412_v42, 2 }
 0x347   : > { %9412 = vmatmul.mubr.bf16.gmra.mrb[184].mxu1 %v4227_v29 }
 0x348   : > { %9418 = vmatpush3.bf16.msra.mxu0 %v10171_v25  ;;  %9467 = vmatprep.mubr.msk.bf16.mxu1 %vm10345_vm0, %v10344_v1  ;;  %v4410_v25 = vsel %vm2226_vm6, %v4400_v23, %v4409_v24  ;;  %v4418_v29 = vor.u32 %v4417_v38, %v4414_v6 }
 0x349   : > { %9419 = vmatprep.subr.bf16.mxu0 %v10344_v1 }
 0x34a   : > { %v4419_v32 = vsel %vm2226_vm6, %v4409_v24, %v4418_v29 }
 0x34b   : > { %9364 = vmatmul.mubr.bf16.gmra.mrb[172].mxu0 %v4018_v21  ;;  %v10185_v21 = vld [vmem:[%s12928_s4 + $0x20] sm:$0xff]  }
 0x34c   : > { %9420 = vmatpush3.bf16.msra.mxu0 %v10173_v54  ;;  %9367 = vmatprep.mubr.msk.bf16.mxu0 %vm10345_vm0, %v10344_v1  ;;  %v4421_v54 = vshrl.u32 %v11835_v37, 16  ;;  %v10186_v37 = vld [vmem:[%s12928_s4 + $0x28] sm:$0xff]  }
 0x34d   : > { %9421 = vmatprep.subr.bf16.mxu0 %v10344_v1 }
 0x34f   : > { %9468 = vmatmul.mubr.bf16.vlgmr.msra.gmra.mrb[188].mxu1 %v4597_v15  ;;  %v4430_v15 = vshrl.u32 %v10181_v3, 16 }
 0x350   : > { %9422 = vmatpush3.bf16.msra.mxu0 %v10175_v16  ;;  %9471 = vmatprep.mubr.msk.bf16.mxu1 %vm10345_vm0, %v10344_v1  ;;  %v4423_v16 = vrot.slane %v4421_v54, 2 }
 0x351   : > { %9423 = vmatprep.subr.bf16.mxu0 %v10344_v1 }
 0x352   : > { %v4427_v4 = vor.u32 %v4426_v46, %v4423_v16 }
 0x353   : > { %9368 = vmatmul.mubr.bf16.gmra.mrb[176].mxu0 %v4020_v57  ;;  %v10187_v57 = vld [vmem:[%s12928_s4 + $0x30] sm:$0xff]  }
 0x354   : > { %9424 = vmatpush3.bf16.msra.mxu0 %v10176_v19  ;;  %9371 = vmatprep.mubr.msk.bf16.mxu0 %vm10345_vm0, %v10344_v1  ;;  %v4433_v19 = vshll.u32 %v10181_v3, 16  ;;  %v4428_v31 = vsel %vm2226_vm6, %v4418_v29, %v4427_v4 }
 0x355   : > { %9425 = vmatprep.subr.bf16.mxu0 %v10344_v1 }
 0x356   : > { %v4435_v18 = vrot.slane %v4433_v19, 3 }
 0x357   : > { %9472 = vmatmul.mubr.bf16.gmra.mrb[192].mxu1 %v4599_v0  ;;  %v10188_v0 = vld [vmem:[%s12928_s4 + $0x38] sm:$0xff]  }
 0x358   : > { %9426 = vmatpush3.bf16.msra.mxu0 %v10177_v10  ;;  %9475 = vmatprep.mubr.msk.bf16.mxu1 %vm10345_vm0, %v10344_v1  ;;  %v4432_v10 = vrot.slane %v4430_v15, 2 }
 0x359   : > { %9427 = vmatprep.subr.bf16.mxu0 %v10344_v1 }
 0x35b   : > { %9372 = vmatmul.mubr.bf16.gmra.mrb[180].mxu0 %v4022_v47 }
 0x35c   : > { %9428 = vmatpush3.bf16.msra.mxu0 %v10178_v22  ;;  %9375 = vmatprep.mubr.msk.bf16.mxu0 %vm10345_vm0, %v10344_v1  ;;  %v4436_v22 = vor.u32 %v4435_v18, %v4432_v10 }
 0x35d   : > { %9429 = vmatprep.subr.bf16.mxu0 %v10344_v1 }
 0x35e   : > { %v4437_v47 = vsel %vm2226_vm6, %v4427_v4, %v4436_v22 }
 0x35f   : > { %9476 = vmatmul.mubr.bf16.gmra.mrb[196].mxu1 %v4601_v40  ;;  %v10191_v40 = vld [vmem:[%s11721_s23 + $0x10] sm:$0xff]  }
 0x360   : > { %9430 = vmatpush3.bf16.msra.mxu0 %v10179_v51  ;;  %9479 = vmatprep.mubr.msk.bf16.mxu1 %vm10345_vm0, %v10344_v1  ;;  %v10190_v51 = vld [vmem:[%s11721_s23 + $0x8] sm:$0xff]  }
 0x361   : > { %9487 = vmatprep.subr.bf16.mxu0 %v10344_v1 }
 0x363   : > { %9376 = vmatmul.mubr.bf16.gmra.mrb[184].mxu0 %v4024_v56 }
 0x364   : > { %9431 = vmatprep.mubr.msk.bf16.mxu0 %vm10345_vm0, %v10344_v1 }
 0x367   : > { %9480 = vmatmul.mubr.bf16.gmra.mrb[200].mxu1 %v4603_v5 }
 0x368   : > { %9483 = vmatprep.mubr.msk.bf16.mxu1 %vm10345_vm0, %v10344_v1 }
 0x36b   : > { %9432 = vmatmul.mubr.bf16.vlgmr.msra.gmra.mrb[188].mxu0 %v4401_v33 }
 0x36c   : > { %9488 = vmatpush3.bf16.msra.mxu0 %v10180_v43  ;;  %9435 = vmatprep.mubr.msk.bf16.mxu0 %vm10345_vm0, %v10344_v1  ;;  %v10193_v43 = vld [vmem:[%s11721_s23 + $0x20] sm:$0xff]  }
 0x36d   : > { %9489 = vmatprep.subr.bf16.mxu0 %v10344_v1 }
 0x36f   : > { %9484 = vmatmul.mubr.bf16.gmra.mrb[204].mxu1 %v4605_v17  ;;  %v10194_v17 = vld [vmem:[%s11721_s23 + $0x28] sm:$0xff]  }
 0x370   : > { %9490 = vmatpush3.bf16.msra.mxu0 %v10182_v26  ;;  %9547 = vmatprep.mubr.msk.bf16.mxu1 %vm10345_vm0, %v10344_v1 }
 0x371   : > { %9491 = vmatprep.subr.bf16.mxu0 %v10344_v1 }
 0x373   : > { %9436 = vmatmul.mubr.bf16.gmra.mrb[192].mxu0 %v4410_v25 }
 0x374   : > { %9492 = vmatpush3.bf16.msra.mxu0 %v10183_v30  ;;  %9439 = vmatprep.mubr.msk.bf16.mxu0 %vm10345_vm0, %v10344_v1 }
 0x375   : > { %9493 = vmatprep.subr.bf16.mxu0 %v10344_v1 }
 0x378   : > { %9494 = vmatpush3.bf16.msra.mxu0 %v10184_v41 }
 0x379   : > { %9495 = vmatprep.subr.bf16.mxu0 %v10344_v1 }
 0x37b   : > { %9440 = vmatmul.mubr.bf16.gmra.mrb[196].mxu0 %v4419_v32 }
 0x37c   : > { %9496 = vmatpush3.bf16.msra.mxu0 %v10185_v21  ;;  %9443 = vmatprep.mubr.msk.bf16.mxu0 %vm10345_vm0, %v10344_v1  ;;  %v10195_v21 = vld [vmem:[%s11721_s23 + $0x30] ss:$0 sps:$4 sm:$0xff]   ;;  %s475_s23 = sadd.s32 %s7340_s26, %s7339_s27 }
 0x37d   : > { %9497 = vmatprep.subr.bf16.mxu0 %v10344_v1  ;;  %s7341_s13 = sshll.u32 %s475_s23, 2 }
 0x37e   : > { %s12894_s30 = scalar_lea.vmem %s12934_s10, %s7341_s13 }
 0x380   : > { %9498 = vmatpush3.bf16.msra.mxu0 %v10186_v37 }
 0x381   : > { %9499 = vmatprep.subr.bf16.mxu0 %v10344_v1 }
 0x383   : > { %9444 = vmatmul.mubr.bf16.gmra.mrb[200].mxu0 %v4428_v31 }
 0x384   : > { %9500 = vmatpush3.bf16.msra.mxu0 %v10187_v57  ;;  %9447 = vmatprep.mubr.msk.bf16.mxu0 %vm10345_vm0, %v10344_v1 }
 0x385   : > { %9501 = vmatprep.subr.bf16.mxu0 %v10344_v1 }
 0x388   : > { %9502 = vmatpush3.bf16.msra.mxu0 %v10188_v0 }
 0x389   : > { %9603 = vmatprep.subr.bf16.mxu0 %v10344_v1 }
 0x38b   : > { %9448 = vmatmul.mubr.bf16.gmra.mrb[204].mxu0 %v4437_v47 }
 0x38c   : > { %9503 = vmatprep.mubr.msk.bf16.mxu0 %vm10345_vm0, %v10344_v1 }
 0x393   : > { %9504 = vmatmul.mubr.bf16.vlgmr.msra.gmra.mrb[208].mxu0 %v10189_v36 }
 0x394   : > { %9507 = vmatprep.mubr.msk.bf16.mxu0 %vm10345_vm0, %v10344_v1 }
 0x39b   : > { %9508 = vmatmul.mubr.bf16.gmra.mrb[212].mxu0 %v10190_v51 }
 0x39c   : > { %9511 = vmatprep.mubr.msk.bf16.mxu0 %vm10345_vm0, %v10344_v1 }
 0x39e   : > { %v3127_v14 = vpop.f32.mrb[108].mxu0 }
 0x39f   : > { %v3166_v13 = vadd.f32 %v3127_v14, %v11460_v11  ;;  %v9181_v61 = vpop.f32.mrb[109].mxu0 }
 0x3a0   : > { %v3130_v48 = vpop.f32.mrb[110].mxu0 }
 0x3a1   : > { %v3167_v50 = vadd.f32 %v3130_v48, %v11463_v55  ;;  %v9182_v56 = vpop.f32.mrb[111].mxu0 }
 0x3a3   : > { %9512 = vmatmul.mubr.bf16.gmra.mrb[216].mxu0 %v10191_v40 }
 0x3a4   : > { %9515 = vmatprep.mubr.msk.bf16.mxu0 %vm10345_vm0, %v10344_v1 }
 0x3a6   : > { %v3135_v63 = vpop.f32.mrb[112].mxu0 }
 0x3a7   : > { %v12006_v52 = vadd.f32 %v3135_v63, %v11465_v58  ;;  %v9185_v12 = vpop.f32.mrb[113].mxu0 }
 0x3a8   : > { %v3138_v59 = vpop.f32.mrb[114].mxu0 }
 0x3a9   : > { %v12010_v11 = vadd.f32 %v3138_v59, %v11467_v60  ;;  %v9186_v23 = vpop.f32.mrb[115].mxu0 }
 0x3aa   : > { %v3531_v8 = vpop.f32.mrb[128].mxu1 }
 0x3ab   : > { %9516 = vmatmul.mubr.bf16.gmra.mrb[220].mxu0 %v10192_v9  ;;  %v9253_v55 = vpop.f32.mrb[129].mxu1 }
 0x3ac   : > { %9519 = vmatprep.mubr.msk.bf16.mxu0 %vm10345_vm0, %v10344_v1  ;;  %v3534_v45 = vpop.f32.mrb[130].mxu1 }
 0x3ad   : > { %v9254_v5 = vpop.f32.mrb[131].mxu1 }
 0x3ae   : > { %v3143_v3 = vpop.f32.mrb[116].mxu0 }
 0x3af   : > { %v12015_v58 = vadd.f32 %v3143_v3, %v11469_v53  ;;  %v9189_v44 = vpop.f32.mrb[117].mxu0 }
 0x3b0   : > { %v3146_v33 = vpop.f32.mrb[118].mxu0 }
 0x3b1   : > { %v12019_v60 = vadd.f32 %v3146_v33, %v11471_v49  ;;  %v9190_v62 = vpop.f32.mrb[119].mxu0 }
 0x3b2   : > { %v3539_v20 = vpop.f32.mrb[132].mxu1 }
 0x3b3   : > { %9520 = vmatmul.mubr.bf16.gmra.mrb[224].mxu0 %v10193_v43  ;;  %v9257_v2 = vpop.f32.mrb[133].mxu1  ;;  %v10197_v43 = vld [vmem:[%s12930_s6 + $0x488] sm:$0xff]  }
 0x3b4   : > { %9523 = vmatprep.mubr.msk.bf16.mxu0 %vm10345_vm0, %v10344_v1  ;;  %v3542_v26 = vpop.f32.mrb[134].mxu1 }
 0x3b5   : > { %v9258_v24 = vpop.f32.mrb[135].mxu1 }
 0x3b6   : > { %v3151_v42 = vpop.f32.mrb[120].mxu0 }
 0x3b7   : > { %v12024_v53 = vadd.f32 %v3151_v42, %v11473_v7  ;;  %v9193_v27 = vpop.f32.mrb[121].mxu0 }
 0x3b8   : > { %v3154_v30 = vpop.f32.mrb[122].mxu0 }
 0x3b9   : > { %v12028_v49 = vadd.f32 %v3154_v30, %v11475_v28  ;;  %v9194_v25 = vpop.f32.mrb[123].mxu0 }
 0x3ba   : > { %v3547_v6 = vpop.f32.mrb[136].mxu1 }
 0x3bb   : > { %9524 = vmatmul.mubr.bf16.gmra.mrb[228].mxu0 %v10194_v17  ;;  %v9261_v38 = vpop.f32.mrb[137].mxu1 }
 0x3bc   : > { %9527 = vmatprep.mubr.msk.bf16.mxu0 %vm10345_vm0, %v10344_v1  ;;  %v3550_v41 = vpop.f32.mrb[138].mxu1 }
 0x3bd   : > { %v9262_v29 = vpop.f32.mrb[139].mxu1 }
 0x3be   : > { %v3159_v54 = vpop.f32.mrb[124].mxu0 }
 0x3bf   : > { %v12033_v35 = vadd.f32 %v3159_v54, %v11477_v34  ;;  %v9197_v7 = vpop.f32.mrb[125].mxu0 }
 0x3c0   : > { %v3162_v32 = vpop.f32.mrb[126].mxu0 }
 0x3c1   : > { %v12037_v16 = vadd.f32 %v3162_v32, %v11479_v39  ;;  %v9198_v28 = vpop.f32.mrb[127].mxu0 }
 0x3c2   : > { %v3555_v46 = vpop.f32.mrb[140].mxu1 }
 0x3c3   : > { %9528 = vmatmul.mubr.bf16.gmra.mrb[232].mxu0 %v10195_v21  ;;  %v9265_v37 = vpop.f32.mrb[141].mxu1 }
 0x3c4   : > { %9619 = vmatprep.mubr.msk.bf16.mxu0 %vm10345_vm0, %v10344_v1  ;;  %v3558_v4 = vpop.f32.mrb[142].mxu1 }
 0x3c5   : > { %v9266_v15 = vpop.f32.mrb[143].mxu1 }
 0x3c6   : > { %v3363_v19 = vpop.f32.mrb[128].mxu0 }
 0x3c7   : > { %v3402_v57 = vadd.f32 %v3363_v19, %v3166_v13  ;;  %v9217_v31 = vpop.f32.mrb[129].mxu0  ;;  %v10200_v19 = vld [vmem:[%s12930_s6 + $0x4a0] sm:$0xff]  }
 0x3c8   : > { %v3366_v34 = vpop.f32.mrb[130].mxu0 }
 0x3c9   : > { %v3403_v10 = vadd.f32 %v3366_v34, %v3167_v50  ;;  %v9218_v18 = vpop.f32.mrb[131].mxu0  ;;  %v12041_v0 = vadd.f32 %v3531_v8, %v3402_v57  ;;  %v10196_v50 = vld [vmem:[%s12930_s6 + $0x480] sm:$0xff]  }
 0x3ca   : > { %v3563_v22 = vpop.f32.mrb[144].mxu1  ;;  %9532 = vmatpush3.bf16.msra.mxu1 %v10196_v50  ;;  %v10201_v57 = vld [vmem:[%s12930_s6 + $0x500] sm:$0xff]  }
 0x3cb   : > { %v12043_v39 = vadd.f32 %v3534_v45, %v3403_v10  ;;  %v9269_v47 = vpop.f32.mrb[145].mxu1  ;;  %9533 = vmatprep.subr.bf16.mxu1 %v10344_v1  ;;  %9604 = vmatpush3.bf16.msra.mxu0 %v10201_v57 }
 0x3cc   : > { %v3566_v36 = vpop.f32.mrb[146].mxu1  ;;  %9605 = vmatprep.subr.bf16.mxu0 %v10344_v1 }
 0x3cd   : > { %v9270_v51 = vpop.f32.mrb[147].mxu1 }
 0x3ce   : > { %v3371_v14 = vpop.f32.mrb[132].mxu0  ;;  %9534 = vmatpush3.bf16.msra.mxu1 %v10197_v43 }
 0x3cf   : > { %v3404_v61 = vadd.f32 %v3371_v14, %v12006_v52  ;;  %v9221_v40 = vpop.f32.mrb[133].mxu0  ;;  %9535 = vmatprep.subr.bf16.mxu1 %v10344_v1  ;;  %v10202_v14 = vld [vmem:[%s12930_s6 + $0x508] sm:$0xff]  }
 0x3d0   : > { %v3374_v48 = vpop.f32.mrb[134].mxu0  ;;  %9606 = vmatpush3.bf16.msra.mxu0 %v10202_v14 }
 0x3d1   : > { %v3405_v56 = vadd.f32 %v3374_v48, %v12010_v11  ;;  %v9222_v13 = vpop.f32.mrb[135].mxu0  ;;  %v12047_v63 = vadd.f32 %v3539_v20, %v3404_v61  ;;  %v10203_v61 = vld [vmem:[%s12930_s6 + $0x4a8] sm:$0xff]   ;;  %9607 = vmatprep.subr.bf16.mxu0 %v10344_v1 }
 0x3d2   : > { %v12052_v12 = vpop.f32.mrb[148].mxu1 }
 0x3d3   : > { %v12054_v9 = vadd.f32 %v3542_v26, %v3405_v56  ;;  %v9325_v59 = vpop.f32.mrb[149].mxu1 }
 0x3d4   : > { %v12057_v52 = vpop.f32.mrb[150].mxu1 }
 0x3d5   : > { %v9326_v23 = vpop.f32.mrb[151].mxu1 }
 0x3d6   : > { %v3379_v8 = vpop.f32.mrb[136].mxu0 }
 0x3d7   : > { %v3406_v11 = vadd.f32 %v3379_v8, %v12015_v58  ;;  %v9225_v55 = vpop.f32.mrb[137].mxu0  ;;  %v10198_v58 = vld [vmem:[%s12930_s6 + $0x490] sm:$0xff]  }
 0x3d8   : > { %v3382_v45 = vpop.f32.mrb[138].mxu0  ;;  %9536 = vmatpush3.bf16.msra.mxu1 %v10198_v58  ;;  %v10205_v55 = vld [vmem:[%s12930_s6 + $0x4b0] sm:$0xff]  }
 0x3d9   : > { %v3407_v5 = vadd.f32 %v3382_v45, %v12019_v60  ;;  %v9226_v3 = vpop.f32.mrb[139].mxu0  ;;  %v12061_v44 = vadd.f32 %v3547_v6, %v3406_v11  ;;  %9537 = vmatprep.subr.bf16.mxu1 %v10344_v1  ;;  %v10199_v6 = vld [vmem:[%s12930_s6 + $0x498] sm:$0xff]  }
 0x3da   : > { %v12066_v33 = vpop.f32.mrb[152].mxu1  ;;  %v10206_v45 = vld [vmem:[%s12930_s6 + $0x518] sm:$0xff]   ;;  %v10208_v3 = vld [vmem:[%s12930_s6 + $0x520] sm:$0xff]  }
 0x3db   : > { %v12068_v62 = vadd.f32 %v3550_v41, %v3407_v5  ;;  %v9329_v20 = vpop.f32.mrb[153].mxu1 }
 0x3dc   : > { %v12074_v60 = vpop.f32.mrb[154].mxu1  ;;  %9538 = vmatpush3.bf16.msra.mxu1 %v10199_v6  ;;  %v10212_v6 = vld [vmem:[%s12930_s6 + $0x530] sm:$0xff]  }
 0x3dd   : > { %v9330_v2 = vpop.f32.mrb[155].mxu1  ;;  %9539 = vmatprep.subr.bf16.mxu1 %v10344_v1 }
 0x3de   : > { %v3387_v26 = vpop.f32.mrb[140].mxu0 }
 0x3df   : > { %v3408_v24 = vadd.f32 %v3387_v26, %v12024_v53  ;;  %v9229_v42 = vpop.f32.mrb[141].mxu0 }
 0x3e0   : > { %v3390_v27 = vpop.f32.mrb[142].mxu0  ;;  %9540 = vmatpush3.bf16.msra.mxu1 %v10200_v19 }
 0x3e1   : > { %v3409_v17 = vadd.f32 %v3390_v27, %v12028_v49  ;;  %v9230_v30 = vpop.f32.mrb[143].mxu0  ;;  %v12079_v25 = vadd.f32 %v3555_v46, %v3408_v24  ;;  %9541 = vmatprep.subr.bf16.mxu1 %v10344_v1 }
 0x3e2   : > { %v12084_v38 = vpop.f32.mrb[156].mxu1 }
 0x3e3   : > { %v12086_v41 = vadd.f32 %v3558_v4, %v3409_v17  ;;  %v9333_v53 = vpop.f32.mrb[157].mxu1  ;;  %v10211_v17 = vld [vmem:[%s12930_s6 + $0x528] sm:$0xff]  }
 0x3e4   : > { %v12089_v29 = vpop.f32.mrb[158].mxu1  ;;  %9542 = vmatpush3.bf16.msra.mxu1 %v10203_v61 }
 0x3e5   : > { %v9334_v54 = vpop.f32.mrb[159].mxu1  ;;  %9543 = vmatprep.subr.bf16.mxu1 %v10344_v1 }
 0x3e6   : > { %v3395_v7 = vpop.f32.mrb[144].mxu0 }
 0x3e7   : > { %v3410_v49 = vadd.f32 %v3395_v7, %v12033_v35  ;;  %v9233_v21 = vpop.f32.mrb[145].mxu0 }
 0x3e8   : > { %v3398_v32 = vpop.f32.mrb[146].mxu0  ;;  %9544 = vmatpush3.bf16.msra.mxu1 %v10205_v55 }
 0x3e9   : > { %v3411_v28 = vadd.f32 %v3398_v32, %v12037_v16  ;;  %v9234_v46 = vpop.f32.mrb[147].mxu0  ;;  %v12093_v37 = vadd.f32 %v3563_v22, %v3410_v49  ;;  %9545 = vmatprep.subr.bf16.mxu1 %v10344_v1 }
 0x3ea   : > { %v12095_v15 = vpop.f32.mrb[160].mxu1  ;;  %v10215_v46 = vld [vmem:[%s12930_s6 + $0x538] sm:$0xff]  }
 0x3eb   : > { %v12097_v4 = vadd.f32 %v3566_v36, %v3411_v28  ;;  %v9337_v35 = vpop.f32.mrb[161].mxu1 }
 0x3ec   : > { %v12105_v31 = vpop.f32.mrb[162].mxu1 }
 0x3ed   : > { %v9338_v16 = vpop.f32.mrb[163].mxu1 }
 0x3ee   : > { %v3734_v34 = vpop.f32.mrb[148].mxu0 }
 0x3ef   : > { %v3773_v10 = vadd.f32 %v3734_v34, %v12041_v0  ;;  %v9289_v18 = vpop.f32.mrb[149].mxu0 }
 0x3f0   : > { %v3737_v22 = vpop.f32.mrb[150].mxu0 }
 0x3f1   : > { %v3774_v47 = vadd.f32 %v3737_v22, %v12043_v39  ;;  %v9290_v36 = vpop.f32.mrb[151].mxu0  ;;  %v12112_v51 = vadd.f32 %v12052_v12, %v3773_v10  ;;  %v10204_v39 = vld [vmem:[%s12930_s6 + $0x510] sm:$0xff]  }
 0x3f2   : > { %v12120_v40 = vpop.f32.mrb[164].mxu1  ;;  %9608 = vmatpush3.bf16.msra.mxu0 %v10204_v39 }
 0x3f3   : > { %v12123_v0 = vadd.f32 %v12057_v52, %v3774_v47  ;;  %v9341_v48 = vpop.f32.mrb[165].mxu1  ;;  %9609 = vmatprep.subr.bf16.mxu0 %v10344_v1 }
 0x3f4   : > { %v12130_v56 = vpop.f32.mrb[166].mxu1 }
 0x3f5   : > { %v9342_v13 = vpop.f32.mrb[167].mxu1 }
 0x3f6   : > { %v3742_v50 = vpop.f32.mrb[152].mxu0  ;;  %9610 = vmatpush3.bf16.msra.mxu0 %v10206_v45 }
 0x3f7   : > { %v3775_v12 = vadd.f32 %v3742_v50, %v12047_v63  ;;  %v9293_v59 = vpop.f32.mrb[153].mxu0  ;;  %9611 = vmatprep.subr.bf16.mxu0 %v10344_v1 }
 0x3f8   : > { %v3745_v52 = vpop.f32.mrb[154].mxu0 }
 0x3f9   : > { %v3776_v23 = vadd.f32 %v3745_v52, %v12054_v9  ;;  %v9294_v8 = vpop.f32.mrb[155].mxu0  ;;  %v12136_v11 = vadd.f32 %v12066_v33, %v3775_v12  ;;  %v10207_v9 = vld [vmem:[%s12930_s6 + $0x4b8] sm:$0xff]  }
 0x3fa   : > { %v12144_v63 = vpop.f32.mrb[168].mxu1  ;;  %9546 = vmatpush3.bf16.msra.mxu1 %v10207_v9  ;;  %9612 = vmatpush3.bf16.msra.mxu0 %v10208_v3 }
 0x3fb   : > { %v12147_v5 = vadd.f32 %v12074_v60, %v3776_v23  ;;  %v9397_v43 = vpop.f32.mrb[169].mxu1  ;;  %9567 = vmatprep.subr.bf16.mxu1 %v10344_v1  ;;  %9613 = vmatprep.subr.bf16.mxu0 %v10344_v1 }
 0x3fc   : > { %v4318_v33 = vpop.f32.mrb[170].mxu1 }
 0x3fd   : > { %v9398_v58 = vpop.f32.mrb[171].mxu1 }
 0x3fe   : > { %v3750_v20 = vpop.f32.mrb[156].mxu0  ;;  %9614 = vmatpush3.bf16.msra.mxu0 %v10211_v17 }
 0x3ff   : > { %v3777_v60 = vadd.f32 %v3750_v20, %v12061_v44  ;;  %v9297_v2 = vpop.f32.mrb[157].mxu0  ;;  %9615 = vmatprep.subr.bf16.mxu0 %v10344_v1 }
 0x400   : > { %v3753_v26 = vpop.f32.mrb[158].mxu0 }
 0x401   : > { %v3778_v24 = vadd.f32 %v3753_v26, %v12068_v62  ;;  %v9298_v42 = vpop.f32.mrb[159].mxu0  ;;  %v12162_v27 = vadd.f32 %v12084_v38, %v3777_v60 }
 0x402   : > { %v4323_v30 = vpop.f32.mrb[172].mxu1  ;;  %9616 = vmatpush3.bf16.msra.mxu0 %v10212_v6 }
 0x403   : > { %v12168_v44 = vadd.f32 %v12089_v29, %v3778_v24  ;;  %v9401_v53 = vpop.f32.mrb[173].mxu1  ;;  %9617 = vmatprep.subr.bf16.mxu0 %v10344_v1 }
 0x404   : > { %v4326_v62 = vpop.f32.mrb[174].mxu1 }
 0x405   : > { %v9402_v54 = vpop.f32.mrb[175].mxu1 }
 0x406   : > { %v3758_v38 = vpop.f32.mrb[160].mxu0  ;;  %9618 = vmatpush3.bf16.msra.mxu0 %v10215_v46 }
 0x407   : > { %v3779_v7 = vadd.f32 %v3758_v38, %v12079_v25  ;;  %v9301_v49 = vpop.f32.mrb[161].mxu0  ;;  %9675 = vmatprep.subr.bf16.mxu0 %v10344_v1 }
 0x408   : > { %v3761_v21 = vpop.f32.mrb[162].mxu0 }
 0x409   : > { %v3780_v29 = vadd.f32 %v3761_v21, %v12086_v41  ;;  %v9302_v32 = vpop.f32.mrb[163].mxu0  ;;  %v3989_v28 = vadd.f32 %v12095_v15, %v3779_v7 }
 0x40a   : > { %v4331_v19 = vpop.f32.mrb[176].mxu1 }
 0x40b   : > { %v3990_v57 = vadd.f32 %v12105_v31, %v3780_v29  ;;  %v9405_v35 = vpop.f32.mrb[177].mxu1 }
 0x40c   : > { %v4334_v25 = vpop.f32.mrb[178].mxu1 }
 0x40d   : > { %v9406_v16 = vpop.f32.mrb[179].mxu1 }
 0x40e   : > { %v3766_v34 = vpop.f32.mrb[164].mxu0 }
 0x40f   : > { %v3781_v10 = vadd.f32 %v3766_v34, %v12093_v37  ;;  %v9305_v41 = vpop.f32.mrb[165].mxu0 }
 0x410   : > { %v3769_v18 = vpop.f32.mrb[166].mxu0 }
 0x411   : > { %v3782_v15 = vadd.f32 %v3769_v18, %v12097_v4  ;;  %v9306_v22 = vpop.f32.mrb[167].mxu0  ;;  %v3991_v47 = vadd.f32 %v12120_v40, %v3781_v10 }
 0x412   : > { %v4339_v36 = vpop.f32.mrb[180].mxu1 }
 0x413   : > { %v3992_v14 = vadd.f32 %v12130_v56, %v3782_v15  ;;  %v9409_v31 = vpop.f32.mrb[181].mxu1 }
 0x414   : > { %v4342_v61 = vpop.f32.mrb[182].mxu1 }
 0x415   : > { %v9410_v39 = vpop.f32.mrb[183].mxu1 }
 0x416   : > { %v4112_v48 = vpop.f32.mrb[168].mxu0 }
 0x417   : > { %v4151_v13 = vadd.f32 %v4112_v48, %v12112_v51  ;;  %v9361_v50 = vpop.f32.mrb[169].mxu0 }
 0x418   : > { %v4115_v12 = vpop.f32.mrb[170].mxu0 }
 0x419   : > { %v4152_v37 = vadd.f32 %v4115_v12, %v12123_v0  ;;  %v9362_v59 = vpop.f32.mrb[171].mxu0  ;;  %v4354_v52 = vadd.f32 %v12144_v63, %v4151_v13 }
 0x41a   : > { %v4347_v4 = vpop.f32.mrb[184].mxu1 }
 0x41b   : > { %v4355_v23 = vadd.f32 %v4318_v33, %v4152_v37  ;;  %v9413_v8 = vpop.f32.mrb[185].mxu1 }
 0x41c   : > { %v4350_v40 = vpop.f32.mrb[186].mxu1 }
 0x41d   : > { %v9414_v55 = vpop.f32.mrb[187].mxu1 }
 0x41e   : > { %v4120_v45 = vpop.f32.mrb[172].mxu0 }
 0x41f   : > { %v4153_v56 = vadd.f32 %v4120_v45, %v12136_v11  ;;  %v9365_v9 = vpop.f32.mrb[173].mxu0 }
 0x420   : > { %v4123_v3 = vpop.f32.mrb[174].mxu0 }
 0x421   : > { %v4154_v43 = vadd.f32 %v4123_v3, %v12147_v5  ;;  %v9366_v51 = vpop.f32.mrb[175].mxu0  ;;  %v4356_v58 = vadd.f32 %v4323_v30, %v4153_v56 }
 0x422   : > { %v4693_v20 = vpop.f32.mrb[188].mxu1 }
 0x423   : > { %v4357_v60 = vadd.f32 %v4326_v62, %v4154_v43  ;;  %v9469_v0 = vpop.f32.mrb[189].mxu1 }
 0x424   : > { %v4696_v2 = vpop.f32.mrb[190].mxu1 }
 0x425   : > { %v9470_v26 = vpop.f32.mrb[191].mxu1 }
 0x426   : > { %v4128_v63 = vpop.f32.mrb[176].mxu0 }
 0x427   : > { %v4155_v33 = vadd.f32 %v4128_v63, %v12162_v27  ;;  %v9369_v24 = vpop.f32.mrb[177].mxu0 }
 0x428   : > { %v4131_v42 = vpop.f32.mrb[178].mxu0 }
 0x429   : > { %v4156_v17 = vadd.f32 %v4131_v42, %v12168_v44  ;;  %v9370_v6 = vpop.f32.mrb[179].mxu0  ;;  %v4358_v11 = vadd.f32 %v4331_v19, %v4155_v33 }
 0x42a   : > { %v4701_v53 = vpop.f32.mrb[192].mxu1 }
 0x42b   : > { %v4359_v54 = vadd.f32 %v4334_v25, %v4156_v17  ;;  %v9473_v38 = vpop.f32.mrb[193].mxu1 }
 0x42c   : > { %v4704_v5 = vpop.f32.mrb[194].mxu1 }
 0x42d   : > { %v9474_v7 = vpop.f32.mrb[195].mxu1 }
 0x42e   : > { %v4136_v30 = vpop.f32.mrb[180].mxu0 }
 0x42f   : > { %v4157_v49 = vadd.f32 %v4136_v30, %v3989_v28  ;;  %v9373_v62 = vpop.f32.mrb[181].mxu0 }
 0x430   : > { %v4139_v21 = vpop.f32.mrb[182].mxu0 }
 0x431   : > { %v4158_v29 = vadd.f32 %v4139_v21, %v3990_v57  ;;  %v9374_v32 = vpop.f32.mrb[183].mxu0  ;;  %v4360_v46 = vadd.f32 %v4339_v36, %v4157_v49 }
 0x432   : > { %v4709_v35 = vpop.f32.mrb[196].mxu1  ;;  %v12217_v32 = vld [vmem:[%s12929_s5] ss:$0 sm:$0xff] }
 0x433   : > { %v4361_v27 = vadd.f32 %v4342_v61, %v4158_v29  ;;  %v9477_v16 = vpop.f32.mrb[197].mxu1 }
 0x434   : > { %v4712_v34 = vpop.f32.mrb[198].mxu1 }
 0x435   : > { %v9478_v10 = vpop.f32.mrb[199].mxu1 }
 0x436   : > { %v4144_v44 = vpop.f32.mrb[184].mxu0 }
 0x437   : > { %v4159_v41 = vadd.f32 %v4144_v44, %v3991_v47  ;;  %v9377_v19 = vpop.f32.mrb[185].mxu0 }
 0x438   : > { %v4147_v18 = vpop.f32.mrb[186].mxu0  ;;  %v5004_v19 = vpop.permute.xlu0 %5003 }
 0x439   : > { %v4160_v25 = vadd.f32 %v4147_v18, %v3992_v14  ;;  %v9378_v15 = vpop.f32.mrb[187].mxu0  ;;  %v4362_v22 = vadd.f32 %v4347_v4, %v4159_v41  ;;  %v5009_v18 = vpop.permute.xlu1 %5008 }
 0x43a   : > { %v4717_v31 = vpop.f32.mrb[200].mxu1 }
 0x43b   : > { %v4363_v39 = vadd.f32 %v4350_v40, %v4160_v25  ;;  %v9481_v28 = vpop.f32.mrb[201].mxu1 }
 0x43c   : > { %v4720_v48 = vpop.f32.mrb[202].mxu1 }
 0x43d   : > { %v9482_v13 = vpop.f32.mrb[203].mxu1 }
 0x43e   : > { %v4525_v57 = vpop.f32.mrb[188].mxu0 }
 0x43f   : > { %v4564_v50 = vadd.f32 %v4525_v57, %v4354_v52  ;;  %v9433_v36 = vpop.f32.mrb[189].mxu0 }
 0x440   : > { %v4528_v12 = vpop.f32.mrb[190].mxu0 }
 0x441   : > { %v4565_v61 = vadd.f32 %v4528_v12, %v4355_v23  ;;  %v9434_v37 = vpop.f32.mrb[191].mxu0  ;;  %v12194_v59 = vadd.f32 %v4693_v20, %v4564_v50  ;;  %v5014_v12 = vpop.permute.xlu0 %5013 }
 0x442   : > { %v4725_v8 = vpop.f32.mrb[204].mxu1 }
 0x443   : > { %v12196_v47 = vadd.f32 %v4696_v2, %v4565_v61  ;;  %v9485_v55 = vpop.f32.mrb[205].mxu1  ;;  %v5019_v61 = vpop.permute.xlu1 %5018 }
 0x444   : > { %v4728_v14 = vpop.f32.mrb[206].mxu1 }
 0x445   : > { %v9486_v45 = vpop.f32.mrb[207].mxu1 }
 0x446   : > { %v4533_v4 = vpop.f32.mrb[192].mxu0 }
 0x447   : > { %v4566_v56 = vadd.f32 %v4533_v4, %v4356_v58  ;;  %v9437_v40 = vpop.f32.mrb[193].mxu0 }
 0x448   : > { %v4536_v9 = vpop.f32.mrb[194].mxu0 }
 0x449   : > { %v4567_v3 = vadd.f32 %v4536_v9, %v4357_v60  ;;  %v9438_v43 = vpop.f32.mrb[195].mxu0  ;;  %v12198_v51 = vadd.f32 %v4701_v53, %v4566_v56  ;;  %v10210_v56 = vld [vmem:[%s12930_s6 + $0x4c0] sm:$0xff]  }
 0x44b   : > { %v12200_v52 = vadd.f32 %v4704_v5, %v4567_v3 }
 0x44e   : > { %v4541_v23 = vpop.f32.mrb[196].mxu0 }
 0x44f   : > { %v4568_v0 = vadd.f32 %v4541_v23, %v4358_v11  ;;  %v9441_v20 = vpop.f32.mrb[197].mxu0 }
 0x450   : > { %v4544_v26 = vpop.f32.mrb[198].mxu0  ;;  %v10213_v20 = vld [vmem:[%s12930_s6 + $0x4c8] sm:$0xff]  }
 0x451   : > { %v4569_v63 = vadd.f32 %v4544_v26, %v4359_v54  ;;  %v9442_v2 = vpop.f32.mrb[199].mxu0  ;;  %v12202_v33 = vadd.f32 %v4709_v35, %v4568_v0  ;;  %v5024_v26 = vpop.permute.xlu0 %5023 }
 0x453   : > { %v12204_v24 = vadd.f32 %v4712_v34, %v4569_v63  ;;  %v5029_v63 = vpop.permute.xlu1 %5028 }
 0x456   : > { %v4549_v42 = vpop.f32.mrb[200].mxu0 }
 0x457   : > { %v4570_v58 = vadd.f32 %v4549_v42, %v4360_v46  ;;  %v9445_v17 = vpop.f32.mrb[201].mxu0 }
 0x458   : > { %v4552_v6 = vpop.f32.mrb[202].mxu0 }
 0x459   : > { %v4571_v60 = vadd.f32 %v4552_v6, %v4361_v27  ;;  %v9446_v38 = vpop.f32.mrb[203].mxu0  ;;  %v12206_v53 = vadd.f32 %v4717_v31, %v4570_v58 }
 0x45b   : > { %v12208_v5 = vadd.f32 %v4720_v48, %v4571_v60 }
 0x45e   : > { %v4557_v7 = vpop.f32.mrb[204].mxu0 }
 0x45f   : > { %v4572_v11 = vadd.f32 %v4557_v7, %v4362_v22  ;;  %v9449_v30 = vpop.f32.mrb[205].mxu0 }
 0x460   : > { %v4560_v49 = vpop.f32.mrb[206].mxu0 }
 0x461   : > { %v4573_v54 = vadd.f32 %v4560_v49, %v4363_v39  ;;  %v9450_v62 = vpop.f32.mrb[207].mxu0  ;;  %v12210_v21 = vadd.f32 %v4725_v8, %v4572_v11  ;;  %v10216_v11 = vld [vmem:[%s12930_s6 + $0x4d0] sm:$0xff]  }
 0x463   : > { %v12212_v29 = vadd.f32 %v4728_v14, %v4573_v54 }
 0x466   : > { %v4907_v46 = vpop.f32.mrb[208].mxu0 }
 0x467   : > { %v4908_v35 = vadd.f32 %v12217_v32, %v4907_v46  ;;  %v9505_v27 = vpop.f32.mrb[209].mxu0 }
 0x468   : > { %v4910_v16 = vpop.f32.mrb[210].mxu0 }
 0x469   : > { %v4961_v34 = vmax.f32 %v4908_v35, 0.0  ;;  %v4911_v10 = vadd.f32 %v12217_v32, %v4910_v16  ;;  %v9506_v44 = vpop.f32.mrb[211].mxu0 }
 0x46a   : > { %v5039_v44 = vpop.permute.xlu1 %5038 }
 0x46b   : > { %v4962_v41 = vmax.f32 %v4911_v10, 0.0  ;;  %v5066_v25 = vmul.f32 %v5004_v19, %v4961_v34  ;;  %v10220_v34 = vld [vmem:[%s12930_s6 + $0x4d8] sm:$0xff]   ;;  %v5034_v10 = vpop.permute.xlu0 %5033 }
 0x46d   : > { %v5067_v15 = vmul.f32 %v5009_v18, %v4962_v41 }
 0x46e   : > { %v4915_v22 = vpop.f32.mrb[212].mxu0 }
 0x46f   : > { %v8257_v31 = vpack.c.bf16 %v5067_v15, %v5066_v25  ;;  %v4916_v39 = vadd.f32 %v12217_v32, %v4915_v22  ;;  %v9509_v28 = vpop.f32.mrb[213].mxu0  ;;  %v10224_v15 = vld [vmem:[%s12930_s6 + $0x580] sm:$0xff]  }
 0x470   : > { %v4918_v48 = vpop.f32.mrb[214].mxu0 }
 0x471   : > { %8258 = vst [vmem:[#allocation2] sm:$0xff] %v8257_v31   ;;  %v4963_v13 = vmax.f32 %v4916_v39, 0.0  ;;  %v4919_v57 = vadd.f32 %v12217_v32, %v4918_v48  ;;  %v9510_v50 = vpop.f32.mrb[215].mxu0 }
 0x473   : > { %v4964_v36 = vmax.f32 %v4919_v57, 0.0  ;;  %v5068_v37 = vmul.f32 %v5014_v12, %v4963_v13  ;;  %v10223_v13 = vld [vmem:[%s12930_s6 + $0x4e0] sm:$0xff]   ;;  %v10226_v57 = vld [vmem:[%s12930_s6 + $0x588] sm:$0xff]  }
 0x475   : > { %v5069_v8 = vmul.f32 %v5019_v61, %v4964_v36 }
 0x476   : > { %v4923_v55 = vpop.f32.mrb[216].mxu0 }
 0x477   : > { %v8262_v14 = vpack.c.bf16 %v5069_v8, %v5068_v37  ;;  %v4924_v45 = vadd.f32 %v12217_v32, %v4923_v55  ;;  %v9513_v4 = vpop.f32.mrb[217].mxu0 }
 0x478   : > { %v4926_v40 = vpop.f32.mrb[218].mxu0  ;;  %v10209_v9 = vld [vmem:[#allocation2] sm:$0xff]  }
 0x479   : > { %8330 = vst [vmem:[#allocation2 + $0x8] sm:$0xff] %v8262_v14   ;;  %v4965_v3 = vmax.f32 %v4924_v45, 0.0  ;;  %v4927_v43 = vadd.f32 %v12217_v32, %v4926_v40  ;;  %v9514_v23 = vpop.f32.mrb[219].mxu0  ;;  %9548 = vmatmul.mubr.bf16.vlgmr.msra.gmra.mrb[208].mxu1 %v10209_v9  ;;  %v12234_v58 = vld [vmem:[#allocation2 + $0x4] sm:$0xf]  ;;  %v10227_v14 = vld [vmem:[%s12930_s6 + $0x4e8] sm:$0xff]  }
 0x47a   : > { %9568 = vmatpush3.bf16.msra.mxu1 %v10210_v56  ;;  %9551 = vmatprep.mubr.msk.bf16.mxu1 %vm10345_vm0, %v10344_v1  ;;  %v5569_v17 = vld [vmem:[#allocation2] sm:$0xe]  ;;  %v6150_v4 = vld [vmem:[#allocation2 + $0x4] sm:$0xc] }
 0x47b   : > { %v4966_v0 = vmax.f32 %v4927_v43, 0.0  ;;  %9569 = vmatprep.subr.bf16.mxu1 %v10344_v1  ;;  %v5070_v2 = vmul.f32 %v5024_v26, %v4965_v3  ;;  %v7974_v54 = vcombine.low %v5569_v17, %v12234_v58  ;;  %v5333_v37 = vld [vmem:[#allocation2] sm:$0xf]  ;;  %v5044_v3 = vpop.permute.xlu0 %5043  ;;  %v5049_v43 = vpop.permute.xlu1 %5048  ;;  %v10229_v26 = vld [vmem:[%s12930_s6 + $0x590] sm:$0xff]  }
 0x47d   : > { %v5071_v42 = vmul.f32 %v5029_v63, %v4966_v0  ;;  %v5590_v41 = vrot.slane %v7974_v54, 1  ;;  %v12286_v63 = vcombine.low %v5333_v37, %v12234_v58  ;;  %v10232_v58 = vld [vmem:[%s12930_s6 + $0x598] sm:$0xff]  }
 0x47e   : > { %v4931_v6 = vpop.f32.mrb[220].mxu0  ;;  %9570 = vmatpush3.bf16.msra.mxu1 %v10213_v20 }
 0x47f   : > { %v8267_v60 = vpack.c.bf16 %v5071_v42, %v5070_v2  ;;  %v4932_v38 = vadd.f32 %v12217_v32, %v4931_v6  ;;  %v9517_v7 = vpop.f32.mrb[221].mxu0  ;;  %9571 = vmatprep.subr.bf16.mxu1 %v10344_v1 }
 0x480   : > { %v4934_v30 = vpop.f32.mrb[222].mxu0  ;;  %v10214_v49 = vld [vmem:[#allocation2 + $0x8] sm:$0xff]  }
 0x481   : > { %8331 = vst [vmem:[#allocation2 + $0x10] sm:$0xff] %v8267_v60   ;;  %v4967_v62 = vmax.f32 %v4932_v38, 0.0  ;;  %v4935_v46 = vadd.f32 %v12217_v32, %v4934_v30  ;;  %v9518_v35 = vpop.f32.mrb[223].mxu0  ;;  %9552 = vmatmul.mubr.bf16.gmra.mrb[212].mxu1 %v10214_v49  ;;  %v12243_v27 = vld [vmem:[#allocation2 + $0x8] sm:$0xff]   ;;  %v10230_v38 = vld [vmem:[%s12930_s6 + $0x4f0] sm:$0xff]  }
 0x482   : > { %9572 = vmatpush3.bf16.msra.mxu1 %v10216_v11  ;;  %9555 = vmatprep.mubr.msk.bf16.mxu1 %vm10345_vm0, %v10344_v1  ;;  %v5591_v19 = vrot.slane %v12243_v27, 1  ;;  %v12263_v50 = vld [vmem:[#allocation2 + $0x8] sm:$0xf] }
 0x483   : > { %v4968_v16 = vmax.f32 %v4935_v46, 0.0  ;;  %9573 = vmatprep.subr.bf16.mxu1 %v10344_v1  ;;  %v5072_v18 = vmul.f32 %v5034_v10, %v4967_v62  ;;  %v8054_v9 = vcombine.low %v6150_v4, %v12263_v50  ;;  %v5392_v10 = vshll.u32 %v12286_v63, 16 }
 0x484   : > { %v5592_v31 = vsel %vm1271_vm1, %v5590_v41, %v5591_v19 }
 0x485   : > { %v5073_v25 = vmul.f32 %v5039_v44, %v4968_v16  ;;  %9620 = vmatmul.mubr.bf16.vlgmr.msra.gmra.mrb[236].mxu0 %v5592_v31  ;;  %v6171_v7 = vrot.slane %v8054_v9, 2  ;;  %v10235_v31 = vld [vmem:[%s12930_s6 + $0x5a0] sm:$0xff]  }
 0x486   : > { %v4939_v22 = vpop.f32.mrb[224].mxu0  ;;  %9574 = vmatpush3.bf16.msra.mxu1 %v10220_v34  ;;  %9623 = vmatprep.mubr.msk.bf16.mxu0 %vm10345_vm0, %v10344_v1  ;;  %v10233_v34 = vld [vmem:[%s12930_s6 + $0x4f8] sm:$0xff]  }
 0x487   : > { %v8272_v39 = vpack.c.bf16 %v5073_v25, %v5072_v18  ;;  %v4940_v28 = vadd.f32 %v12217_v32, %v4939_v22  ;;  %v9521_v48 = vpop.f32.mrb[225].mxu0  ;;  %9575 = vmatprep.subr.bf16.mxu1 %v10344_v1  ;;  %9676 = vmatpush3.bf16.msra.mxu0 %v10224_v15  ;;  %v5059_v18 = vpop.permute.xlu1 %5058 }
 0x488   : > { %v4942_v36 = vpop.f32.mrb[226].mxu0  ;;  %v10221_v12 = vld [vmem:[#allocation2 + $0x10] sm:$0xff]   ;;  %9677 = vmatprep.subr.bf16.mxu0 %v10344_v1  ;;  %v5394_v48 = vrot.slane %v5392_v10, 1 }
 0x489   : > { %8332 = vst [vmem:[#allocation2 + $0x18] sm:$0xff] %v8272_v39   ;;  %v4969_v61 = vmax.f32 %v4940_v28, 0.0  ;;  %v4943_v8 = vadd.f32 %v12217_v32, %v4942_v36  ;;  %v9522_v55 = vpop.f32.mrb[227].mxu0  ;;  %9556 = vmatmul.mubr.bf16.gmra.mrb[216].mxu1 %v10221_v12  ;;  %v12272_v45 = vld [vmem:[#allocation2 + $0x10] sm:$0xff]   ;;  %v5397_v36 = vshll.u32 %v12243_v27, 16  ;;  %v10237_v12 = vld [vmem:[%s12930_s6 + $0x5a8] sm:$0xff]  }
 0x48a   : > { %9576 = vmatpush3.bf16.msra.mxu1 %v10223_v13  ;;  %9559 = vmatprep.mubr.msk.bf16.mxu1 %vm10345_vm0, %v10344_v1  ;;  %v12277_v40 = vld [vmem:[#allocation2 + $0xc] sm:$0xff]   ;;  %v5593_v23 = vrot.slane %v12272_v45, 1  ;;  %v5737_v55 = vld [vmem:[#allocation2 + $0x4] sm:$0xe] }
 0x48b   : > { %v4970_v56 = vmax.f32 %v4943_v8, 0.0  ;;  %9577 = vmatprep.subr.bf16.mxu1 %v10344_v1  ;;  %v5074_v0 = vmul.f32 %v5044_v3, %v4969_v61  ;;  %9678 = vmatpush3.bf16.msra.mxu0 %v10226_v57  ;;  %v6172_v11 = vrot.slane %v12277_v40, 2 }
 0x48c   : > { %v5594_v42 = vsel %vm1271_vm1, %v5591_v19, %v5593_v23  ;;  %9679 = vmatprep.subr.bf16.mxu0 %v10344_v1  ;;  %v5054_v19 = vpop.permute.xlu0 %5053 }
 0x48d   : > { %v5075_v20 = vmul.f32 %v5049_v43, %v4970_v56  ;;  %9624 = vmatmul.mubr.bf16.gmra.mrb[240].mxu0 %v5594_v42  ;;  %v12303_v35 = vsel %vm1854_vm4, %v6171_v7, %v6172_v11  ;;  %v10241_v7 = vld [vmem:[%s12930_s6 + $0x5b8] sm:$0xff]  }
 0x48e   : > { %v4947_v2 = vpop.f32.mrb[228].mxu0  ;;  %9578 = vmatpush3.bf16.msra.mxu1 %v10227_v14  ;;  %9627 = vmatprep.mubr.msk.bf16.mxu0 %vm10345_vm0, %v10344_v1 }
 0x48f   : > { %v8277_v17 = vpack.c.bf16 %v5075_v20, %v5074_v0  ;;  %v4948_v6 = vadd.f32 %v12217_v32, %v4947_v2  ;;  %v9525_v60 = vpop.f32.mrb[229].mxu0  ;;  %9579 = vmatprep.subr.bf16.mxu1 %v10344_v1  ;;  %9680 = vmatpush3.bf16.msra.mxu0 %v10229_v26  ;;  %v12344_v20 = vcombine.low %v5737_v55, %v12263_v50  ;;  %v5390_v26 = vshrl.u32 %v12286_v63, 16  ;;  %v6318_v50 = vld [vmem:[#allocation2 + $0x8] sm:$0xc] }
 0x490   : > { %v4950_v30 = vpop.f32.mrb[230].mxu0  ;;  %v10225_v49 = vld [vmem:[#allocation2 + $0x18] sm:$0xff]   ;;  %9681 = vmatprep.subr.bf16.mxu0 %v10344_v1  ;;  %v5064_v9 = vpop.permute.xlu0 %5063  ;;  %v10239_v60 = vld [vmem:[%s12930_s6 + $0x5b0] sm:$0xff]   ;;  %v5409_v55 = vshrl.u32 %v12272_v45, 16 }
 0x491   : > { %8333 = vst [vmem:[#allocation2 + $0x20] sm:$0xff] %v8277_v17   ;;  %v4971_v54 = vmax.f32 %v4948_v6, 0.0  ;;  %v4951_v62 = vadd.f32 %v12217_v32, %v4950_v30  ;;  %v9526_v46 = vpop.f32.mrb[231].mxu0  ;;  %9560 = vmatmul.mubr.bf16.gmra.mrb[220].mxu1 %v10225_v49  ;;  %v12305_v16 = vld [vmem:[#allocation2 + $0x18] sm:$0xff]   ;;  %v5399_v6 = vrot.slane %v5397_v36, 1  ;;  %v5965_v30 = vshll.u32 %v12344_v20, 16 }
 0x492   : > { %9580 = vmatpush3.bf16.msra.mxu1 %v10230_v38  ;;  %9563 = vmatprep.mubr.msk.bf16.mxu1 %vm10345_vm0, %v10344_v1  ;;  %v12314_v41 = vld [vmem:[#allocation2 + $0x14] sm:$0xff]   ;;  %v5595_v25 = vrot.slane %v12305_v16, 1  ;;  %v5395_v38 = vor.u32 %v5394_v48, %v5390_v26  ;;  %v5970_v49 = vshrl.u32 %v12277_v40, 16 }
 0x493   : > { %v4972_v44 = vmax.f32 %v4951_v62, 0.0  ;;  %9581 = vmatprep.subr.bf16.mxu1 %v10344_v1  ;;  %v5076_v15 = vmul.f32 %v5054_v19, %v4971_v54  ;;  %9682 = vmatpush3.bf16.msra.mxu0 %v10232_v58  ;;  %v6174_v61 = vrot.slane %v12314_v41, 2  ;;  %v10236_v58 = vld [vmem:[%s12930_s6 + $0x540] sm:$0xff]   ;;  %v5973_v54 = vshll.u32 %v12277_v40, 16  ;;  %v12366_v62 = vld [vmem:[#allocation2 + $0xc] sm:$0xf] }
 0x494   : > { %v5596_v28 = vsel %vm1271_vm1, %v5593_v23, %v5595_v25  ;;  %9683 = vmatprep.subr.bf16.mxu0 %v10344_v1  ;;  %v5400_v10 = vsel %vm953_vm2, %v5395_v38, %v5399_v6 }
 0x495   : > { %v5077_v22 = vmul.f32 %v5059_v18, %v4972_v44  ;;  %9628 = vmatmul.mubr.bf16.gmra.mrb[244].mxu0 %v5596_v28  ;;  %v12335_v56 = vsel %vm1854_vm4, %v6172_v11, %v6174_v61  ;;  %v5962_v11 = vshrl.u32 %v12344_v20, 16  ;;  %v12379_v18 = vcombine.low %v6318_v50, %v12366_v62 }
 0x496   : > { %v4955_v39 = vpop.f32.mrb[232].mxu0  ;;  %9582 = vmatpush3.bf16.msra.mxu1 %v10233_v34  ;;  %9631 = vmatprep.mubr.msk.bf16.mxu0 %vm10345_vm0, %v10344_v1  ;;  %v5405_v34 = vshll.u32 %v12272_v45, 16 }
 0x497   : > { %v8282_v13 = vpack.c.bf16 %v5077_v22, %v5076_v15  ;;  %v4956_v57 = vadd.f32 %v12217_v32, %v4955_v39  ;;  %v9529_v37 = vpop.f32.mrb[233].mxu0  ;;  %9639 = vmatprep.subr.bf16.mxu1 %v10344_v1  ;;  %9684 = vmatpush3.bf16.msra.mxu0 %v10235_v31  ;;  %v5972_v15 = vrot.slane %v5970_v49, 1  ;;  %v5975_v22 = vrot.slane %v5973_v54, 2 }
 0x498   : > { %v10231_v8 = vld [vmem:[#allocation2 + $0x20] sm:$0xff]   ;;  %v4958_v14 = vpop.f32.mrb[234].mxu0  ;;  %9685 = vmatprep.subr.bf16.mxu0 %v10344_v1  ;;  %v5401_v39 = vshrl.u32 %v12243_v27, 16  ;;  %v5407_v48 = vrot.slane %v5405_v34, 1  ;;  %v6543_v37 = vshrl.u32 %v12379_v18, 16  ;;  %v10242_v27 = vld [vmem:[%s12930_s6 + $0x550] sm:$0xff]  }
 0x499   : > { %8334 = vst [vmem:[#allocation2 + $0x28] sm:$0xff] %v8282_v13   ;;  %v4973_v32 = vmax.f32 %v4956_v57, 0.0  ;;  %v12332_v4 = vld [vmem:[#allocation2 + $0x20] sm:$0xff]   ;;  %9564 = vmatmul.mubr.bf16.gmra.mrb[224].mxu1 %v10231_v8  ;;  %v9530_v43 = vpop.f32.mrb[235].mxu0  ;;  %v5964_v13 = vrot.slane %v5962_v11, 1  ;;  %v5967_v57 = vrot.slane %v5965_v30, 2  ;;  %v12399_v8 = vor.u32 %v5975_v22, %v5972_v15 }
 0x49a   : > { %v12338_v3 = vld [vmem:[#allocation2 + $0x1c] sm:$0xff]   ;;  %v5597_v0 = vrot.slane %v12332_v4, 1  ;;  %9583 = vmatprep.mubr.msk.bf16.mxu1 %vm10345_vm0, %v10344_v1  ;;  %v5403_v36 = vor.u32 %v5401_v39, %v5399_v6  ;;  %v5413_v14 = vshll.u32 %v12305_v16, 16  ;;  %v5411_v45 = vor.u32 %v5409_v55, %v5407_v48 }
 0x49b   : > { %v5078_v23 = vmul.f32 %v5064_v9, %v4973_v32  ;;  %v6176_v2 = vrot.slane %v12338_v3, 2  ;;  %9686 = vmatpush3.bf16.msra.mxu0 %v10237_v12  ;;  %v12392_v12 = vld [vmem:[#allocation2 + $0x10] sm:$0xff]   ;;  %v5979_v32 = vshrl.u32 %v12314_v41, 16  ;;  %v12407_v9 = vld [vmem:[#allocation2 + $0x18] sm:$0xff]   ;;  %v5968_v26 = vor.u32 %v5967_v57, %v5964_v13  ;;  %v10248_v15 = vld [vmem:[%s12930_s6 + $0x600] sm:$0xff]  }
 0x49c   : > { %v5598_v17 = vsel %vm1271_vm1, %v5595_v25, %v5597_v0  ;;  %9687 = vmatprep.subr.bf16.mxu0 %v10344_v1  ;;  %v10240_v25 = vld [vmem:[%s12930_s6 + $0x548] sm:$0xff]   ;;  %v6545_v38 = vrot.slane %v6543_v37, 2  ;;  %v5415_v11 = vrot.slane %v5413_v14, 1  ;;  %v6554_v49 = vshll.u32 %v12392_v12, 16 }
 0x49d   : > { %v8193_v42 = vpack.c.bf16 %v5078_v23, %v5078_v23  ;;  %v12357_v63 = vsel %vm1854_vm4, %v6174_v61, %v6176_v2  ;;  %9632 = vmatmul.mubr.bf16.gmra.mrb[248].mxu0 %v5598_v17  ;;  %v12415_v17 = vld [vmem:[#allocation2 + $0x20] sm:$0xff]   ;;  %v5977_v50 = vsel %vm1643_vm3, %v5968_v26, %v12399_v8  ;;  %v5981_v30 = vrot.slane %v5979_v32, 1 }
 0x49e   : > { %9635 = vmatprep.mubr.msk.bf16.mxu0 %vm10345_vm0, %v10344_v1  ;;  %v6556_v22 = vrot.slane %v6554_v49, 3  ;;  %v6572_v39 = vshll.u32 %v12415_v17, 16  ;;  %v5416_v32 = vsel %vm953_vm2, %v5411_v45, %v5415_v11  ;;  %v5421_v26 = vshll.u32 %v12332_v4, 16 }
 0x49f   : > { %5144 = vst [vmem:[#allocation2 + $0x30] sm:$0xf] %v8193_v42  ;;  %9688 = vmatpush3.bf16.msra.mxu0 %v10239_v60  ;;  %v5982_v42 = vshll.u32 %v12314_v41, 16 }
 0x4a0   : > { %v12370_v46 = vld [vmem:[#allocation2 + $0x28] ss:$0 sps:$4 sm:$0x11]   ;;  %9689 = vmatprep.subr.bf16.mxu0 %v10344_v1  ;;  %v12389_v28 = vld [vmem:[#allocation2 + $0x2c] ss:$0 sps:$4 sm:$0x33]  }
 0x4a1   : > { %9584 = vmatmul.mubr.bf16.vlgmr.msra.gmra.mrb[228].mxu1 %v5400_v10  ;;  %v5599_v44 = vrot.slane %v12370_v46, 1  ;;  %v12376_v19 = vld [vmem:[#allocation2 + $0x24] sm:$0xff]   ;;  %v6180_v23 = vrot.slane %v12389_v28, 2  ;;  %v6560_v10 = vshrl.u32 %v12407_v9, 16  ;;  %v6574_v55 = vrot.slane %v6572_v39, 3 }
 0x4a2   : > { %9640 = vmatpush3.bf16.msra.mxu1 %v10236_v58  ;;  %9587 = vmatprep.mubr.msk.bf16.mxu1 %vm10345_vm0, %v10344_v1  ;;  %v6178_v61 = vrot.slane %v12376_v19, 2  ;;  %v12417_v6 = vld [vmem:[#allocation2 + $0x28] sm:$0xff]   ;;  %v6551_v58 = vshrl.u32 %v12392_v12, 16 }
 0x4a3   : > { %v5600_v31 = vsel %vm1271_vm1, %v5597_v0, %v5599_v44  ;;  %9641 = vmatprep.subr.bf16.mxu1 %v10344_v1  ;;  %9690 = vmatpush3.bf16.msra.mxu0 %v10241_v7  ;;  %v5408_v0 = vsel %vm953_vm2, %v5403_v36, %v5407_v48  ;;  %v10245_v7 = vld [vmem:[%s12930_s6 + $0x558] sm:$0xff]   ;;  %v6563_v44 = vshll.u32 %v12407_v9, 16  ;;  %v6562_v13 = vrot.slane %v6560_v10, 2 }
 0x4a4   : > { %9747 = vmatprep.subr.bf16.mxu0 %v10344_v1  ;;  %v12410_v43 = vsel %vm1854_vm4, %v6176_v2, %v6178_v61  ;;  %v12420_v60 = vsel %vm1854_vm4, %v6178_v61, %v6180_v23  ;;  %v6546_v2 = vshll.u32 %v12379_v18, 16  ;;  %v6553_v34 = vrot.slane %v6551_v58, 2  ;;  %v10247_v61 = vld [vmem:[%s12930_s6 + $0x560] sm:$0xff]  }
 0x4a5   : > { %9636 = vmatmul.mubr.bf16.gmra.mrb[252].mxu0 %v5600_v31  ;;  %v6569_v31 = vshrl.u32 %v12415_v17, 16  ;;  %v6565_v57 = vrot.slane %v6563_v44, 3  ;;  %v6578_v36 = vshrl.u32 %v12417_v6, 16  ;;  %v6581_v14 = vshll.u32 %v12417_v6, 16 }
 0x4a6   : > { %9642 = vmatpush3.bf16.msra.mxu1 %v10240_v25  ;;  %9691 = vmatprep.mubr.msk.bf16.mxu0 %vm10345_vm0, %v10344_v1  ;;  %v6548_v54 = vrot.slane %v6546_v2, 3  ;;  %v5984_v25 = vrot.slane %v5982_v42, 2  ;;  %v6557_v37 = vor.u32 %v6556_v22, %v6553_v34  ;;  %v10249_v42 = vld [vmem:[%s12930_s6 + $0x608] sm:$0xff]   ;;  %v5417_v10 = vshrl.u32 %v12305_v16, 16  ;;  %v10253_v16 = vld [vmem:[%s12930_s6 + $0x570] sm:$0xff]  }
 0x4a7   : > { %9643 = vmatprep.subr.bf16.mxu1 %v10344_v1  ;;  %v6566_v23 = vor.u32 %v6565_v57, %v6562_v13  ;;  %v6583_v58 = vrot.slane %v6581_v14, 3  ;;  %v5423_v44 = vrot.slane %v5421_v26, 1  ;;  %v10254_v57 = vld [vmem:[%s12930_s6 + $0x618] sm:$0xff]   ;;  %v10259_v26 = vld [vmem:[%s12930_s6 + $0x628] sm:$0xff]  }
 0x4a8   : > { %v6549_v48 = vor.u32 %v6548_v54, %v6545_v38  ;;  %v5985_v45 = vor.u32 %v5984_v25, %v5981_v30  ;;  %v10250_v54 = vld [vmem:[%s12930_s6 + $0x568] sm:$0xff]   ;;  %v10252_v25 = vld [vmem:[%s12930_s6 + $0x610] sm:$0xff]  }
 0x4a9   : > { %9588 = vmatmul.mubr.bf16.gmra.mrb[232].mxu1 %v5408_v0  ;;  %v6580_v0 = vrot.slane %v6578_v36, 2  ;;  %v12460_v49 = vsel %vm2226_vm6, %v6557_v37, %v6566_v23  ;;  %v5997_v36 = vshrl.u32 %v12376_v19, 16 }
 0x4aa   : > { %9644 = vmatpush3.bf16.msra.mxu1 %v10242_v27  ;;  %9591 = vmatprep.mubr.msk.bf16.mxu1 %vm10345_vm0, %v10344_v1  ;;  %v6571_v27 = vrot.slane %v6569_v31, 2  ;;  %v12454_v38 = vsel %vm2226_vm6, %v6549_v48, %v6557_v37  ;;  %v5986_v22 = vsel %vm1643_vm3, %v12399_v8, %v5985_v45  ;;  %v5419_v48 = vor.u32 %v5417_v10, %v5415_v11 }
 0x4ab   : > { %9645 = vmatprep.subr.bf16.mxu1 %v10344_v1  ;;  %v12470_v30 = vor.u32 %v6583_v58, %v6580_v0  ;;  %v5429_v8 = vshll.u32 %v12370_v46, 16  ;;  %v10255_v46 = vld [vmem:[%s12930_s6 + $0x578] sm:$0xff]   ;;  %v5425_v37 = vshrl.u32 %v12332_v4, 16  ;;  %v6009_v58 = vshll.u32 %v12389_v28, 16 }
 0x4ac   : > { %v6575_v2 = vor.u32 %v6574_v55, %v6571_v27  ;;  %v5424_v13 = vsel %vm953_vm2, %v5419_v48, %v5423_v44  ;;  %v10257_v55 = vld [vmem:[%s12930_s6 + $0x620] sm:$0xff]   ;;  %v10264_v48 = vld [vmem:[%s12930_s6 + $0x5d0] sm:$0xff]  }
 0x4ad   : > { %9692 = vmatmul.mubr.bf16.vlgmr.msra.gmra.mrb[0].mxu0 %v5977_v50  ;;  %v5988_v50 = vshrl.u32 %v12338_v3, 16  ;;  %v5431_v27 = vrot.slane %v5429_v8, 1  ;;  %v5427_v0 = vor.u32 %v5425_v37, %v5423_v44  ;;  %v6011_v10 = vrot.slane %v6009_v58, 2  ;;  %v10272_v37 = vld [vmem:[%s12930_s6 + $0x5e8] sm:$0xff]  }
 0x4ae   : > { %9646 = vmatpush3.bf16.msra.mxu1 %v10245_v7  ;;  %9695 = vmatprep.mubr.msk.bf16.mxu0 %vm10345_vm0, %v10344_v1  ;;  %v5991_v7 = vshll.u32 %v12338_v3, 16  ;;  %v12468_v34 = vsel %vm2226_vm6, %v6566_v23, %v6575_v2  ;;  %v5793_v44 = vrot.slane %v12344_v20, 1  ;;  %v10262_v20 = vld [vmem:[%s12930_s6 + $0x5c8] sm:$0xff]   ;;  %v6374_v8 = vrot.slane %v12379_v18, 2 }
 0x4af   : > { %9647 = vmatprep.subr.bf16.mxu1 %v10344_v1  ;;  %9748 = vmatpush3.bf16.msra.mxu0 %v10248_v15  ;;  %v12479_v15 = vsel %vm2226_vm6, %v6575_v2, %v12470_v30  ;;  %v5990_v31 = vrot.slane %v5988_v50, 1  ;;  %v5432_v4 = vsel %vm953_vm2, %v5427_v0, %v5431_v27  ;;  %v6006_v2 = vshrl.u32 %v12389_v28, 16  ;;  %v10261_v50 = vld [vmem:[%s12930_s6 + $0x630] sm:$0xff]   ;;  %v10258_v28 = vld [vmem:[%s12930_s6 + $0x5c0] sm:$0xff]   ;;  %v10277_v0 = vld [vmem:[%s12930_s6 + $0x698] sm:$0xff]  }
 0x4b0   : > { %9749 = vmatprep.subr.bf16.mxu0 %v10344_v1  ;;  %v5993_v39 = vrot.slane %v5991_v7, 2  ;;  %v5800_v27 = vrot.slane %v12376_v19, 1 }
 0x4b1   : > { %9592 = vmatmul.mubr.bf16.gmra.mrb[236].mxu1 %v5416_v32  ;;  %v5999_v32 = vrot.slane %v5997_v36, 1 }
 0x4b2   : > { %9648 = vmatpush3.bf16.msra.mxu1 %v10247_v61  ;;  %9595 = vmatprep.mubr.msk.bf16.mxu1 %vm10345_vm0, %v10344_v1  ;;  %v5994_v11 = vor.u32 %v5993_v39, %v5990_v31  ;;  %v6000_v61 = vshll.u32 %v12376_v19, 16  ;;  %v5796_v31 = vrot.slane %v12314_v41, 1  ;;  %v6375_v41 = vrot.slane %v12392_v12, 2 }
 0x4b3   : > { %9649 = vmatprep.subr.bf16.mxu1 %v10344_v1  ;;  %9750 = vmatpush3.bf16.msra.mxu0 %v10249_v42 }
 0x4b4   : > { %9751 = vmatprep.subr.bf16.mxu0 %v10344_v1  ;;  %v5995_v14 = vsel %vm1643_vm3, %v5985_v45, %v5994_v11  ;;  %v6002_v23 = vrot.slane %v6000_v61, 2  ;;  %v5794_v45 = vrot.slane %v12277_v40, 1  ;;  %v6376_v36 = vsel %vm1854_vm4, %v6374_v8, %v6375_v41  ;;  %v10269_v61 = vld [vmem:[%s12930_s6 + $0x5e0] sm:$0xff]  }
 0x4b5   : > { %9696 = vmatmul.mubr.bf16.gmra.mrb[4].mxu0 %v5986_v22 }
 0x4b6   : > { %9650 = vmatpush3.bf16.msra.mxu1 %v10250_v54  ;;  %9699 = vmatprep.mubr.msk.bf16.mxu0 %vm10345_vm0, %v10344_v1  ;;  %v6003_v42 = vor.u32 %v6002_v23, %v5999_v32  ;;  %v6008_v54 = vrot.slane %v6006_v2, 1  ;;  %v5795_v40 = vsel %vm1271_vm1, %v5793_v44, %v5794_v45  ;;  %v10275_v32 = vld [vmem:[%s12930_s6 + $0x5f0] sm:$0xff]   ;;  %v10276_v23 = vld [vmem:[#allocation2 + $0x2c] ss:$0 sps:$4 sm:$0x11]   ;;  %v10280_v2 = vld [vmem:[%s12930_s6 + $0x6a0] sm:$0xff]  }
 0x4b7   : > { %9651 = vmatprep.subr.bf16.mxu1 %v10344_v1  ;;  %9752 = vmatpush3.bf16.msra.mxu0 %v10252_v25  ;;  %v10263_v25 = vld [vmem:[%s12930_s6 + $0x638] sm:$0xff]   ;;  %v10284_v44 = vld [vmem:[#allocation2 + $0x30] ss:$0 sps:$4 sm:$0x33]  }
 0x4b8   : > { %9753 = vmatprep.subr.bf16.mxu0 %v10344_v1  ;;  %v6004_v7 = vsel %vm1643_vm3, %v5994_v11, %v6003_v42  ;;  %v6012_v22 = vor.u32 %v6011_v10, %v6008_v54  ;;  %v10270_v11 = vld [vmem:[%s12930_s6 + $0x680] sm:$0xff]   ;;  %v10285_v54 = vld [vmem:[%s12930_s6 + $0x6b0] sm:$0xff]  }
 0x4b9   : > { %9596 = vmatmul.mubr.bf16.gmra.mrb[240].mxu1 %v5424_v13  ;;  %v10267_v13 = vld [vmem:[%s12930_s6 + $0x5d8] sm:$0xff]  }
 0x4ba   : > { %9652 = vmatpush3.bf16.msra.mxu1 %v10253_v16  ;;  %9599 = vmatprep.mubr.msk.bf16.mxu1 %vm10345_vm0, %v10344_v1  ;;  %v6013_v39 = vsel %vm1643_vm3, %v6003_v42, %v6012_v22  ;;  %v5797_v16 = vsel %vm1271_vm1, %v5794_v45, %v5796_v31  ;;  %v5802_v42 = vrot.slane %v10276_v23, 1  ;;  %v10286_v22 = vld [vmem:[%s12930_s6 + $0x648] sm:$0xff]  }
 0x4bb   : > { %9653 = vmatprep.subr.bf16.mxu1 %v10344_v1  ;;  %9754 = vmatpush3.bf16.msra.mxu0 %v10254_v57  ;;  %v5798_v57 = vrot.slane %v12338_v3, 1  ;;  %v10271_v3 = vld [vmem:[%s12930_s6 + $0x688] sm:$0xff]  }
 0x4bc   : > { %9755 = vmatprep.subr.bf16.mxu0 %v10344_v1  ;;  %v5803_v45 = vsel %vm1271_vm1, %v5800_v27, %v5802_v42 }
 0x4bd   : > { %9700 = vmatmul.mubr.bf16.gmra.mrb[8].mxu0 %v5995_v14  ;;  %v5799_v18 = vsel %vm1271_vm1, %v5796_v31, %v5798_v57  ;;  %v5801_v19 = vsel %vm1271_vm1, %v5798_v57, %v5800_v27  ;;  %v10294_v57 = vld [vmem:[%s12930_s6 + $0x678] sm:$0xff]  }
 0x4be   : > { %9654 = vmatpush3.bf16.msra.mxu1 %v10255_v46  ;;  %9703 = vmatprep.mubr.msk.bf16.mxu0 %vm10345_vm0, %v10344_v1  ;;  %v6377_v46 = vrot.slane %v12407_v9, 2 }
 0x4bf   : > { %9711 = vmatprep.subr.bf16.mxu1 %v10344_v1  ;;  %9756 = vmatpush3.bf16.msra.mxu0 %v10257_v55  ;;  %v10274_v55 = vld [vmem:[%s12930_s6 + $0x690] sm:$0xff]  }
 0x4c0   : > { %9757 = vmatprep.subr.bf16.mxu0 %v10344_v1  ;;  %v6378_v14 = vsel %vm1854_vm4, %v6375_v41, %v6377_v46 }
 0x4c1   : > { %9600 = vmatmul.mubr.bf16.gmra.mrb[244].mxu1 %v5432_v4  ;;  %v6379_v4 = vrot.slane %v12415_v17, 2 }
 0x4c2   : > { %9655 = vmatprep.mubr.msk.bf16.mxu1 %vm10345_vm0, %v10344_v1 }
 0x4c3   : > { %9758 = vmatpush3.bf16.msra.mxu0 %v10259_v26  ;;  %v10278_v26 = vld [vmem:[%s12930_s6 + $0x5f8] sm:$0xff]   ;;  %v6380_v58 = vsel %vm1854_vm4, %v6377_v46, %v6379_v4 }
 0x4c4   : > { %9759 = vmatprep.subr.bf16.mxu0 %v10344_v1 }
 0x4c5   : > { %9704 = vmatmul.mubr.bf16.gmra.mrb[12].mxu0 %v6004_v7  ;;  %v6381_v7 = vrot.slane %v12417_v6, 2 }
 0x4c6   : > { %9707 = vmatprep.mubr.msk.bf16.mxu0 %vm10345_vm0, %v10344_v1 }
 0x4c7   : > { %9760 = vmatpush3.bf16.msra.mxu0 %v10261_v50  ;;  %v10283_v50 = vld [vmem:[%s12930_s6 + $0x6a8] sm:$0xff]   ;;  %v6382_v10 = vsel %vm1854_vm4, %v6379_v4, %v6381_v7 }
 0x4c8   : > { %9761 = vmatprep.subr.bf16.mxu0 %v10344_v1 }
 0x4c9   : > { %9656 = vmatmul.mubr.bf16.vlgmr.msra.gmra.mrb[248].mxu1 %v5795_v40  ;;  %v10287_v40 = vld [vmem:[%s12930_s6 + $0x6b8] sm:$0xff]  }
 0x4ca   : > { %9712 = vmatpush3.bf16.msra.mxu1 %v10258_v28  ;;  %9659 = vmatprep.mubr.msk.bf16.mxu1 %vm10345_vm0, %v10344_v1  ;;  %v10282_v28 = vld [vmem:[%s12930_s6 + $0x640] sm:$0xff]  }
 0x4cb   : > { %9713 = vmatprep.subr.bf16.mxu1 %v10344_v1  ;;  %9762 = vmatpush3.bf16.msra.mxu0 %v10263_v25  ;;  %v6383_v25 = vrot.slane %v10284_v44, 2 }
 0x4cc   : > { %9819 = vmatprep.subr.bf16.mxu0 %v10344_v1 }
 0x4cd   : > { %9708 = vmatmul.mubr.bf16.gmra.mrb[16].mxu0 %v6013_v39  ;;  %v6384_v31 = vsel %vm1854_vm4, %v6381_v7, %v6383_v25 }
 0x4ce   : > { %9714 = vmatpush3.bf16.msra.mxu1 %v10262_v20  ;;  %9763 = vmatprep.mubr.msk.bf16.mxu0 %vm10345_vm0, %v10344_v1  ;;  %v6731_v20 = vld [vmem:[#allocation2 + $0x8] sm:$0x8] }
 0x4cf   : > { %9715 = vmatprep.subr.bf16.mxu1 %v10344_v1  ;;  %v8134_v39 = vcombine.low %v6731_v20, %v12366_v62  ;;  %v6755_v62 = vrot.slane %v12407_v9, 3  ;;  %v6757_v9 = vrot.slane %v12415_v17, 3 }
 0x4d1   : > { %9660 = vmatmul.mubr.bf16.gmra.mrb[252].mxu1 %v5797_v16  ;;  %v10290_v16 = vld [vmem:[%s12930_s6 + $0x658] sm:$0xff]   ;;  %v6752_v41 = vrot.slane %v8134_v39, 3 }
 0x4d2   : > { %9716 = vmatpush3.bf16.msra.mxu1 %v10264_v48  ;;  %9663 = vmatprep.mubr.msk.bf16.mxu1 %vm10345_vm0, %v10344_v1  ;;  %v6753_v48 = vrot.slane %v12392_v12, 3  ;;  %v10292_v12 = vld [vmem:[%s12930_s6 + $0x668] sm:$0xff]   ;;  %v10299_v39 = vld [vmem:[%s12932_s8 + $0x18] sm:$0xff]  }
 0x4d3   : > { %9717 = vmatprep.subr.bf16.mxu1 %v10344_v1 }
 0x4d4   : > { %v6756_v8 = vsel %vm2437_vm5, %v6753_v48, %v6755_v62 }
 0x4d5   : > { %9764 = vmatmul.mubr.bf16.vlgmr.msra.gmra.mrb[20].mxu0 %v6376_v36  ;;  %v10295_v36 = vld [vmem:[#allocation2 + $0x30] ss:$0 sps:$4 sm:$0x77]  }
 0x4d6   : > { %9718 = vmatpush3.bf16.msra.mxu1 %v10267_v13  ;;  %9767 = vmatprep.mubr.msk.bf16.mxu0 %vm10345_vm0, %v10344_v1  ;;  %v6754_v13 = vsel %vm2437_vm5, %v6752_v41, %v6753_v48 }
 0x4d7   : > { %9719 = vmatprep.subr.bf16.mxu1 %v10344_v1  ;;  %9820 = vmatpush3.bf16.msra.mxu0 %v10270_v11  ;;  %v6758_v11 = vsel %vm2437_vm5, %v6755_v62, %v6757_v9 }
 0x4d8   : > { %9821 = vmatprep.subr.bf16.mxu0 %v10344_v1 }
 0x4d9   : > { %9664 = vmatmul.mubr.bf16.gmra.mrb[0].mxu1 %v5799_v18 }
 0x4da   : > { %9720 = vmatpush3.bf16.msra.mxu1 %v10269_v61  ;;  %9667 = vmatprep.mubr.msk.bf16.mxu1 %vm10345_vm0, %v10344_v1  ;;  %v6761_v61 = vrot.slane %v10295_v36, 3 }
 0x4db   : > { %9721 = vmatprep.subr.bf16.mxu1 %v10344_v1  ;;  %9822 = vmatpush3.bf16.msra.mxu0 %v10271_v3 }
 0x4dc   : > { %9823 = vmatprep.subr.bf16.mxu0 %v10344_v1 }
 0x4dd   : > { %9768 = vmatmul.mubr.bf16.gmra.mrb[24].mxu0 %v6378_v14 }
 0x4de   : > { %9722 = vmatpush3.bf16.msra.mxu1 %v10272_v37  ;;  %9771 = vmatprep.mubr.msk.bf16.mxu0 %vm10345_vm0, %v10344_v1 }
 0x4df   : > { %9723 = vmatprep.subr.bf16.mxu1 %v10344_v1  ;;  %9824 = vmatpush3.bf16.msra.mxu0 %v10274_v55 }
 0x4e0   : > { %9825 = vmatprep.subr.bf16.mxu0 %v10344_v1 }
 0x4e1   : > { %9668 = vmatmul.mubr.bf16.gmra.mrb[4].mxu1 %v5801_v19 }
 0x4e2   : > { %9724 = vmatpush3.bf16.msra.mxu1 %v10275_v32  ;;  %9671 = vmatprep.mubr.msk.bf16.mxu1 %vm10345_vm0, %v10344_v1 }
 0x4e3   : > { %9725 = vmatprep.subr.bf16.mxu1 %v10344_v1  ;;  %9826 = vmatpush3.bf16.msra.mxu0 %v10277_v0 }
 0x4e4   : > { %9827 = vmatprep.subr.bf16.mxu0 %v10344_v1 }
 0x4e5   : > { %9772 = vmatmul.mubr.bf16.gmra.mrb[28].mxu0 %v6380_v58 }
 0x4e6   : > { %9726 = vmatpush3.bf16.msra.mxu1 %v10278_v26  ;;  %9775 = vmatprep.mubr.msk.bf16.mxu0 %vm10345_vm0, %v10344_v1 }
 0x4e7   : > { %9783 = vmatprep.subr.bf16.mxu1 %v10344_v1  ;;  %9828 = vmatpush3.bf16.msra.mxu0 %v10280_v2 }
 0x4e8   : > { %9829 = vmatprep.subr.bf16.mxu0 %v10344_v1 }
 0x4e9   : > { %9672 = vmatmul.mubr.bf16.gmra.mrb[8].mxu1 %v5803_v45 }
 0x4ea   : > { %9727 = vmatprep.mubr.msk.bf16.mxu1 %vm10345_vm0, %v10344_v1 }
 0x4eb   : > { %9830 = vmatpush3.bf16.msra.mxu0 %v10283_v50 }
 0x4ec   : > { %9831 = vmatprep.subr.bf16.mxu0 %v10344_v1 }
 0x4ed   : > { %9776 = vmatmul.mubr.bf16.gmra.mrb[32].mxu0 %v6382_v10 }
 0x4ee   : > { %9779 = vmatprep.mubr.msk.bf16.mxu0 %vm10345_vm0, %v10344_v1 }
 0x4ef   : > { %9832 = vmatpush3.bf16.msra.mxu0 %v10285_v54  ;;  %v10297_v54 = vld [vmem:[%s12932_s8 + $0x8] sm:$0xff]  }
 0x4f0   : > { %9833 = vmatprep.subr.bf16.mxu0 %v10344_v1 }
 0x4f1   : > { %9728 = vmatmul.mubr.bf16.vlgmr.msra.gmra.mrb[12].mxu1 %v12303_v35  ;;  %v10288_v35 = vld [vmem:[%s12930_s6 + $0x650] sm:$0xff]  }
 0x4f2   : > { %9784 = vmatpush3.bf16.msra.mxu1 %v10282_v28  ;;  %9731 = vmatprep.mubr.msk.bf16.mxu1 %vm10345_vm0, %v10344_v1 }
 0x4f3   : > { %9785 = vmatprep.subr.bf16.mxu1 %v10344_v1  ;;  %9834 = vmatpush3.bf16.msra.mxu0 %v10287_v40 }
 0x4f4   : > { %9855 = vmatprep.subr.bf16.mxu0 %v10344_v1 }
 0x4f5   : > { %9780 = vmatmul.mubr.bf16.gmra.mrb[36].mxu0 %v6384_v31 }
 0x4f6   : > { %9786 = vmatpush3.bf16.msra.mxu1 %v10286_v22  ;;  %9835 = vmatprep.mubr.msk.bf16.mxu0 %vm10345_vm0, %v10344_v1 }
 0x4f7   : > { %9787 = vmatprep.subr.bf16.mxu1 %v10344_v1 }
 0x4f9   : > { %9732 = vmatmul.mubr.bf16.gmra.mrb[16].mxu1 %v12335_v56  ;;  %v10291_v56 = vld [vmem:[%s12930_s6 + $0x660] sm:$0xff]  }
 0x4fa   : > { %9788 = vmatpush3.bf16.msra.mxu1 %v10288_v35  ;;  %9735 = vmatprep.mubr.msk.bf16.mxu1 %vm10345_vm0, %v10344_v1 }
 0x4fb   : > { %9789 = vmatprep.subr.bf16.mxu1 %v10344_v1 }
 0x4fd   : > { %9836 = vmatmul.mubr.bf16.vlgmr.msra.gmra.mrb[40].mxu0 %v6754_v13  ;;  %v10300_v13 = vld [vmem:[%s12932_s8 + $0x20] sm:$0xff]  }
 0x4fe   : > { %9790 = vmatpush3.bf16.msra.mxu1 %v10290_v16  ;;  %9839 = vmatprep.mubr.msk.bf16.mxu0 %vm10345_vm0, %v10344_v1 }
 0x4ff   : > { %9791 = vmatprep.subr.bf16.mxu1 %v10344_v1 }
 0x501   : > { %9736 = vmatmul.mubr.bf16.gmra.mrb[20].mxu1 %v12357_v63  ;;  %v10293_v63 = vld [vmem:[%s12930_s6 + $0x670] sm:$0xff]  }
 0x502   : > { %9792 = vmatpush3.bf16.msra.mxu1 %v10291_v56  ;;  %9739 = vmatprep.mubr.msk.bf16.mxu1 %vm10345_vm0, %v10344_v1 }
 0x503   : > { %9793 = vmatprep.subr.bf16.mxu1 %v10344_v1 }
 0x505   : > { %9840 = vmatmul.mubr.bf16.gmra.mrb[44].mxu0 %v6756_v8 }
 0x506   : > { %9794 = vmatpush3.bf16.msra.mxu1 %v10292_v12  ;;  %9843 = vmatprep.mubr.msk.bf16.mxu0 %vm10345_vm0, %v10344_v1 }
 0x507   : > { %9795 = vmatprep.subr.bf16.mxu1 %v10344_v1 }
 0x509   : > { %9740 = vmatmul.mubr.bf16.gmra.mrb[24].mxu1 %v12410_v43  ;;  %v6759_v43 = vrot.slane %v12417_v6, 3  ;;  %v6587_v6 = vshrl.u32 %v10295_v36, 16 }
 0x50a   : > { %9796 = vmatpush3.bf16.msra.mxu1 %v10293_v63  ;;  %9743 = vmatprep.mubr.msk.bf16.mxu1 %vm10345_vm0, %v10344_v1 }
 0x50b   : > { %9797 = vmatprep.subr.bf16.mxu1 %v10344_v1  ;;  %v6760_v17 = vsel %vm2437_vm5, %v6757_v9, %v6759_v43  ;;  %v6589_v18 = vrot.slane %v6587_v6, 2 }
 0x50d   : > { %9844 = vmatmul.mubr.bf16.gmra.mrb[48].mxu0 %v6758_v11 }
 0x50e   : > { %9798 = vmatpush3.bf16.msra.mxu1 %v10294_v57  ;;  %9847 = vmatprep.mubr.msk.bf16.mxu0 %vm10345_vm0, %v10344_v1 }
 0x50f   : > { %9891 = vmatprep.subr.bf16.mxu1 %v10344_v1 }
 0x511   : > { %9744 = vmatmul.mubr.bf16.gmra.mrb[28].mxu1 %v12420_v60  ;;  %v6762_v60 = vsel %vm2437_vm5, %v6759_v43, %v6761_v61 }
 0x512   : > { %9799 = vmatprep.mubr.msk.bf16.mxu1 %vm10345_vm0, %v10344_v1 }
 0x515   : > { %9848 = vmatmul.mubr.bf16.gmra.mrb[52].mxu0 %v6760_v17 }
 0x516   : > { %9851 = vmatprep.mubr.msk.bf16.mxu0 %vm10345_vm0, %v10344_v1 }
 0x519   : > { %9800 = vmatmul.mubr.bf16.vlgmr.msra.gmra.mrb[32].mxu1 %v12454_v38  ;;  %v6590_v38 = vshll.u32 %v10295_v36, 16 }
 0x51a   : > { %9803 = vmatprep.mubr.msk.bf16.mxu1 %vm10345_vm0, %v10344_v1 }
 0x51b   : > { %v6592_v3 = vrot.slane %v6590_v38, 3  ;;  %v10301_v38 = vld [vmem:[%s12932_s8 + $0x28] sm:$0xff]  }
 0x51d   : > { %9852 = vmatmul.mubr.bf16.gmra.mrb[56].mxu0 %v6762_v60  ;;  %v6593_v46 = vor.u32 %v6592_v3, %v6589_v18 }
 0x51e   : > { %9871 = vmatprep.mubr.msk.bf16.mxu0 %vm10345_vm0, %v10344_v1 }
 0x521   : > { %9804 = vmatmul.mubr.bf16.gmra.mrb[36].mxu1 %v12460_v49  ;;  %v6594_v49 = vsel %vm2226_vm6, %v12470_v30, %v6593_v46  ;;  %v10302_v46 = vld [vmem:[%s12932_s8 + $0x30] sm:$0xff]  }
 0x522   : > { %9807 = vmatprep.mubr.msk.bf16.mxu1 %vm10345_vm0, %v10344_v1 }
 0x529   : > { %9808 = vmatmul.mubr.bf16.gmra.mrb[40].mxu1 %v12468_v34 }
 0x52a   : > { %9811 = vmatprep.mubr.msk.bf16.mxu1 %vm10345_vm0, %v10344_v1 }
 0x531   : > { %9812 = vmatmul.mubr.bf16.gmra.mrb[44].mxu1 %v12479_v15 }
 0x532   : > { %9815 = vmatprep.mubr.msk.bf16.mxu1 %vm10345_vm0, %v10344_v1 }
 0x539   : > { %9816 = vmatmul.mubr.bf16.gmra.mrb[48].mxu1 %v6594_v49 }
 0x53a   : > { %9875 = vmatprep.mubr.msk.bf16.mxu1 %vm10345_vm0, %v10344_v1 }
 0x54c   : > { %v5284_v34 = vpop.f32.mrb[208].mxu1 }
 0x54d   : > { %v12725_v37 = vadd.f32 %v5284_v34, %v12194_v59  ;;  %v9549_v27 = vpop.f32.mrb[209].mxu1 }
 0x54e   : > { %v5287_v55 = vpop.f32.mrb[210].mxu1 }
 0x54f   : > { %v12728_v14 = vadd.f32 %v5287_v55, %v12196_v47  ;;  %v9550_v15 = vpop.f32.mrb[211].mxu1  ;;  %v10296_v47 = vld [vmem:[%s12932_s8] sm:$0xff]  }
 0x550   : > { %9899 = vmatpush3.bf16.msra.mxu1 %v10296_v47  ;;  %9856 = vmatpush3.bf16.msra.mxu0 %v10296_v47 }
 0x551   : > { %9857 = vmatprep.subr.bf16.mxu0 %v10344_v1  ;;  %9892 = vmatprep.subr.bf16.mxu1 %v10344_v1 }
 0x554   : > { %v5292_v32 = vpop.f32.mrb[212].mxu1  ;;  %9858 = vmatpush3.bf16.msra.mxu0 %v10297_v54  ;;  %9900 = vmatpush3.bf16.msra.mxu1 %v10297_v54 }
 0x555   : > { %v12731_v19 = vadd.f32 %v5292_v32, %v12198_v51  ;;  %v9553_v23 = vpop.f32.mrb[213].mxu1  ;;  %9859 = vmatprep.subr.bf16.mxu0 %v10344_v1  ;;  %9893 = vmatprep.subr.bf16.mxu1 %v10344_v1 }
 0x556   : > { %v5295_v30 = vpop.f32.mrb[214].mxu1 }
 0x557   : > { %v12734_v0 = vadd.f32 %v5295_v30, %v12200_v52  ;;  %v9554_v4 = vpop.f32.mrb[215].mxu1 }
 0x558   : > { %v12736_v26 = vpop.f32.mrb[236].mxu0  ;;  %v10303_v4 = vld [vmem:[%s12932_s8 + $0x38] sm:$0xff]  }
 0x559   : > { %v9621_v59 = vpop.f32.mrb[237].mxu0 }
 0x55a   : > { %v12738_v42 = vpop.f32.mrb[238].mxu0 }
 0x55b   : > { %v9622_v2 = vpop.f32.mrb[239].mxu0 }
 0x55c   : > { %v5300_v58 = vpop.f32.mrb[216].mxu1 }
 0x55d   : > { %v12744_v51 = vadd.f32 %v5300_v58, %v12202_v33  ;;  %v9557_v45 = vpop.f32.mrb[217].mxu1 }
 0x55e   : > { %v5303_v52 = vpop.f32.mrb[218].mxu1 }
 0x55f   : > { %v12749_v50 = vadd.f32 %v5303_v52, %v12204_v24  ;;  %v9558_v7 = vpop.f32.mrb[219].mxu1  ;;  %v10298_v24 = vld [vmem:[%s12932_s8 + $0x10] sm:$0xff]  }
 0x560   : > { %v12754_v10 = vpop.f32.mrb[240].mxu0  ;;  %9860 = vmatpush3.bf16.msra.mxu0 %v10298_v24  ;;  %9901 = vmatpush3.bf16.msra.mxu1 %v10298_v24 }
 0x561   : > { %v9625_v33 = vpop.f32.mrb[241].mxu0  ;;  %9861 = vmatprep.subr.bf16.mxu0 %v10344_v1  ;;  %9894 = vmatprep.subr.bf16.mxu1 %v10344_v1 }
 0x562   : > { %v12758_v44 = vpop.f32.mrb[242].mxu0 }
 0x563   : > { %v9626_v28 = vpop.f32.mrb[243].mxu0 }
 0x564   : > { %v5308_v40 = vpop.f32.mrb[220].mxu1  ;;  %9862 = vmatpush3.bf16.msra.mxu0 %v10299_v39  ;;  %9902 = vmatpush3.bf16.msra.mxu1 %v10299_v39 }
 0x565   : > { %v12764_v25 = vadd.f32 %v5308_v40, %v12206_v53  ;;  %v9561_v22 = vpop.f32.mrb[221].mxu1  ;;  %9863 = vmatprep.subr.bf16.mxu0 %v10344_v1  ;;  %9895 = vmatprep.subr.bf16.mxu1 %v10344_v1 }
 0x566   : > { %v5311_v20 = vpop.f32.mrb[222].mxu1 }
 0x567   : > { %v12767_v31 = vadd.f32 %v5311_v20, %v12208_v5  ;;  %v9562_v35 = vpop.f32.mrb[223].mxu1 }
 0x568   : > { %v12774_v48 = vpop.f32.mrb[244].mxu0  ;;  %9864 = vmatpush3.bf16.msra.mxu0 %v10300_v13  ;;  %9903 = vmatpush3.bf16.msra.mxu1 %v10300_v13 }
 0x569   : > { %v9629_v53 = vpop.f32.mrb[245].mxu0  ;;  %9865 = vmatprep.subr.bf16.mxu0 %v10344_v1  ;;  %9896 = vmatprep.subr.bf16.mxu1 %v10344_v1 }
 0x56a   : > { %v12776_v16 = vpop.f32.mrb[246].mxu0 }
 0x56b   : > { %v9630_v5 = vpop.f32.mrb[247].mxu0 }
 0x56c   : > { %v5316_v41 = vpop.f32.mrb[224].mxu1  ;;  %9866 = vmatpush3.bf16.msra.mxu0 %v10301_v38  ;;  %9904 = vmatpush3.bf16.msra.mxu1 %v10301_v38 }
 0x56d   : > { %v12784_v56 = vadd.f32 %v5316_v41, %v12210_v21  ;;  %v9565_v62 = vpop.f32.mrb[225].mxu1  ;;  %9867 = vmatprep.subr.bf16.mxu0 %v10344_v1  ;;  %9897 = vmatprep.subr.bf16.mxu1 %v10344_v1 }
 0x56e   : > { %v5319_v12 = vpop.f32.mrb[226].mxu1 }
 0x56f   : > { %v12787_v8 = vadd.f32 %v5319_v12, %v12212_v29  ;;  %v9566_v63 = vpop.f32.mrb[227].mxu1 }
 0x570   : > { %v5712_v9 = vpop.f32.mrb[248].mxu0  ;;  %9868 = vmatpush3.bf16.msra.mxu0 %v10302_v46  ;;  %9905 = vmatpush3.bf16.msra.mxu1 %v10302_v46 }
 0x571   : > { %v9633_v57 = vpop.f32.mrb[249].mxu0  ;;  %9869 = vmatprep.subr.bf16.mxu0 %v10344_v1  ;;  %9898 = vmatprep.subr.bf16.mxu1 %v10344_v1 }
 0x572   : > { %v5715_v11 = vpop.f32.mrb[250].mxu0 }
 0x573   : > { %v9634_v43 = vpop.f32.mrb[251].mxu0 }
 0x574   : > { %v5520_v17 = vpop.f32.mrb[228].mxu1  ;;  %9870 = vmatpush3.bf16.msra.mxu0 %v10303_v4  ;;  %9906 = vmatpush3.bf16.msra.mxu1 %v10303_v4 }
 0x575   : > { %v5559_v21 = vadd.f32 %v5520_v17, %v12725_v37  ;;  %v9585_v36 = vpop.f32.mrb[229].mxu1 }
 0x576   : > { %v5523_v61 = vpop.f32.mrb[230].mxu1 }
 0x577   : > { %v5560_v60 = vadd.f32 %v5523_v61, %v12728_v14  ;;  %v9586_v6 = vpop.f32.mrb[231].mxu1  ;;  %v12794_v29 = vadd.f32 %v12736_v26, %v5559_v21 }
 0x578   : > { %v5720_v18 = vpop.f32.mrb[252].mxu0 }
 0x579   : > { %v12800_v3 = vadd.f32 %v12738_v42, %v5560_v60  ;;  %v9637_v49 = vpop.f32.mrb[253].mxu0 }
 0x57a   : > { %v5723_v34 = vpop.f32.mrb[254].mxu0 }
 0x57b   : > { %v9638_v37 = vpop.f32.mrb[255].mxu0 }
 0x57c   : > { %v5528_v27 = vpop.f32.mrb[232].mxu1 }
 0x57d   : > { %v5561_v55 = vadd.f32 %v5528_v27, %v12731_v19  ;;  %v9589_v14 = vpop.f32.mrb[233].mxu1 }
 0x57e   : > { %v5531_v15 = vpop.f32.mrb[234].mxu1 }
 0x57f   : > { %v5562_v32 = vadd.f32 %v5531_v15, %v12734_v0  ;;  %v9590_v23 = vpop.f32.mrb[235].mxu1  ;;  %v5729_v30 = vadd.f32 %v12754_v10, %v5561_v55 }
 0x580   : > { %v6101_v26 = vpop.f32.mrb[0].mxu0 }
 0x581   : > { %v5730_v19 = vadd.f32 %v12758_v44, %v5562_v32  ;;  %v9693_v59 = vpop.f32.mrb[1].mxu0 }
 0x582   : > { %v6104_v42 = vpop.f32.mrb[2].mxu0 }
 0x583   : > { %v9694_v47 = vpop.f32.mrb[3].mxu0 }
 0x584   : > { %v5536_v2 = vpop.f32.mrb[236].mxu1 }
 0x585   : > { %v5563_v58 = vadd.f32 %v5536_v2, %v12744_v51  ;;  %v9593_v45 = vpop.f32.mrb[237].mxu1 }
 0x586   : > { %v5539_v0 = vpop.f32.mrb[238].mxu1 }
 0x587   : > { %v5564_v52 = vadd.f32 %v5539_v0, %v12749_v50  ;;  %v9594_v7 = vpop.f32.mrb[239].mxu1  ;;  %v5731_v54 = vadd.f32 %v12774_v48, %v5563_v58 }
 0x588   : > { %v6109_v10 = vpop.f32.mrb[4].mxu0 }
 0x589   : > { %v5732_v33 = vadd.f32 %v12776_v16, %v5564_v52  ;;  %v9697_v28 = vpop.f32.mrb[5].mxu0 }
 0x58a   : > { %v6112_v44 = vpop.f32.mrb[6].mxu0 }
 0x58b   : > { %v9698_v40 = vpop.f32.mrb[7].mxu0 }
 0x58c   : > { %v5544_v24 = vpop.f32.mrb[240].mxu1 }
 0x58d   : > { %v5565_v22 = vadd.f32 %v5544_v24, %v12764_v25  ;;  %v9597_v20 = vpop.f32.mrb[241].mxu1 }
 0x58e   : > { %v5547_v35 = vpop.f32.mrb[242].mxu1 }
 0x58f   : > { %v5566_v51 = vadd.f32 %v5547_v35, %v12767_v31  ;;  %v9598_v39 = vpop.f32.mrb[243].mxu1  ;;  %v5733_v53 = vadd.f32 %v5712_v9, %v5565_v22 }
 0x590   : > { %v6117_v5 = vpop.f32.mrb[8].mxu0 }
 0x591   : > { %v5734_v50 = vadd.f32 %v5715_v11, %v5566_v51  ;;  %v9701_v41 = vpop.f32.mrb[9].mxu0 }
 0x592   : > { %v6120_v13 = vpop.f32.mrb[10].mxu0 }
 0x593   : > { %v9702_v48 = vpop.f32.mrb[11].mxu0 }
 0x594   : > { %v5552_v62 = vpop.f32.mrb[244].mxu1 }
 0x595   : > { %v5567_v16 = vadd.f32 %v5552_v62, %v12784_v56  ;;  %v9601_v12 = vpop.f32.mrb[245].mxu1 }
 0x596   : > { %v5555_v63 = vpop.f32.mrb[246].mxu1 }
 0x597   : > { %v5568_v57 = vadd.f32 %v5555_v63, %v12787_v8  ;;  %v9602_v43 = vpop.f32.mrb[247].mxu1  ;;  %v5735_v25 = vadd.f32 %v5720_v18, %v5567_v16 }
 0x598   : > { %v6125_v17 = vpop.f32.mrb[12].mxu0 }
 0x599   : > { %v5736_v21 = vadd.f32 %v5723_v34, %v5568_v57  ;;  %v9705_v36 = vpop.f32.mrb[13].mxu0 }
 0x59a   : > { %v6128_v31 = vpop.f32.mrb[14].mxu0 }
 0x59b   : > { %v9706_v61 = vpop.f32.mrb[15].mxu0 }
 0x59c   : > { %v5891_v9 = vpop.f32.mrb[248].mxu1 }
 0x59d   : > { %v5930_v11 = vadd.f32 %v5891_v9, %v12794_v29  ;;  %v9657_v60 = vpop.f32.mrb[249].mxu1 }
 0x59e   : > { %v5894_v6 = vpop.f32.mrb[250].mxu1 }
 0x59f   : > { %v5931_v38 = vadd.f32 %v5894_v6, %v12800_v3  ;;  %v9658_v46 = vpop.f32.mrb[251].mxu1  ;;  %v6140_v56 = vadd.f32 %v6101_v26, %v5930_v11 }
 0x5a0   : > { %v6133_v49 = vpop.f32.mrb[16].mxu0 }
 0x5a1   : > { %v6141_v37 = vadd.f32 %v6104_v42, %v5931_v38  ;;  %v9709_v27 = vpop.f32.mrb[17].mxu0 }
 0x5a2   : > { %v6136_v8 = vpop.f32.mrb[18].mxu0 }
 0x5a3   : > { %v9710_v55 = vpop.f32.mrb[19].mxu0 }
 0x5a4   : > { %v5899_v18 = vpop.f32.mrb[252].mxu1 }
 0x5a5   : > { %v5932_v14 = vadd.f32 %v5899_v18, %v5729_v30  ;;  %v9661_v34 = vpop.f32.mrb[253].mxu1 }
 0x5a6   : > { %v5902_v15 = vpop.f32.mrb[254].mxu1 }
 0x5a7   : > { %v5933_v32 = vadd.f32 %v5902_v15, %v5730_v19  ;;  %v9662_v23 = vpop.f32.mrb[255].mxu1  ;;  %v6142_v4 = vadd.f32 %v6109_v10, %v5932_v14 }
 0x5a8   : > { %v6472_v59 = vpop.f32.mrb[20].mxu0 }
 0x5a9   : > { %v6143_v29 = vadd.f32 %v6112_v44, %v5933_v32  ;;  %v9765_v47 = vpop.f32.mrb[21].mxu0 }
 0x5aa   : > { %v6475_v2 = vpop.f32.mrb[22].mxu0 }
 0x5ab   : > { %v9766_v58 = vpop.f32.mrb[23].mxu0 }
 0x5ac   : > { %v5907_v3 = vpop.f32.mrb[0].mxu1 }
 0x5ad   : > { %v5934_v45 = vadd.f32 %v5907_v3, %v5731_v54  ;;  %v9665_v26 = vpop.f32.mrb[1].mxu1 }
 0x5ae   : > { %v5910_v0 = vpop.f32.mrb[2].mxu1 }
 0x5af   : > { %v5935_v42 = vadd.f32 %v5910_v0, %v5732_v33  ;;  %v9666_v52 = vpop.f32.mrb[3].mxu1  ;;  %v6144_v7 = vadd.f32 %v6117_v5, %v5934_v45 }
 0x5b0   : > { %v6480_v28 = vpop.f32.mrb[24].mxu0 }
 0x5b1   : > { %v6145_v40 = vadd.f32 %v6120_v13, %v5935_v42  ;;  %v9769_v30 = vpop.f32.mrb[25].mxu0 }
 0x5b2   : > { %v6483_v24 = vpop.f32.mrb[26].mxu0 }
 0x5b3   : > { %v9770_v22 = vpop.f32.mrb[27].mxu0 }
 0x5b4   : > { %v5915_v19 = vpop.f32.mrb[4].mxu1 }
 0x5b5   : > { %v5936_v20 = vadd.f32 %v5915_v19, %v5733_v53  ;;  %v9669_v10 = vpop.f32.mrb[5].mxu1 }
 0x5b6   : > { %v5918_v35 = vpop.f32.mrb[6].mxu1 }
 0x5b7   : > { %v5937_v44 = vadd.f32 %v5918_v35, %v5734_v50  ;;  %v9670_v51 = vpop.f32.mrb[7].mxu1  ;;  %v6146_v39 = vadd.f32 %v6125_v17, %v5936_v20 }
 0x5b8   : > { %v6488_v41 = vpop.f32.mrb[28].mxu0 }
 0x5b9   : > { %v6147_v48 = vadd.f32 %v6128_v31, %v5937_v44  ;;  %v9773_v54 = vpop.f32.mrb[29].mxu0 }
 0x5ba   : > { %v6491_v62 = vpop.f32.mrb[30].mxu0 }
 0x5bb   : > { %v9774_v16 = vpop.f32.mrb[31].mxu0 }
 0x5bc   : > { %v5923_v33 = vpop.f32.mrb[8].mxu1 }
 0x5bd   : > { %v5938_v12 = vadd.f32 %v5923_v33, %v5735_v25  ;;  %v9673_v5 = vpop.f32.mrb[9].mxu1 }
 0x5be   : > { %v5926_v63 = vpop.f32.mrb[10].mxu1 }
 0x5bf   : > { %v5939_v13 = vadd.f32 %v5926_v63, %v5736_v21  ;;  %v9674_v57 = vpop.f32.mrb[11].mxu1  ;;  %v6148_v43 = vadd.f32 %v6133_v49, %v5938_v12 }
 0x5c0   : > { %v6496_v36 = vpop.f32.mrb[32].mxu0 }
 0x5c1   : > { %v6149_v61 = vadd.f32 %v6136_v8, %v5939_v13  ;;  %v9777_v53 = vpop.f32.mrb[33].mxu0 }
 0x5c2   : > { %v6499_v9 = vpop.f32.mrb[34].mxu0 }
 0x5c3   : > { %v9778_v11 = vpop.f32.mrb[35].mxu0 }
 0x5c4   : > { %v6269_v50 = vpop.f32.mrb[12].mxu1 }
 0x5c5   : > { %v6308_v60 = vadd.f32 %v6269_v50, %v6140_v56  ;;  %v9729_v17 = vpop.f32.mrb[13].mxu1 }
 0x5c6   : > { %v6272_v6 = vpop.f32.mrb[14].mxu1  ;;  %v12841_v17 = vld [vmem:[%s12931_s7] ss:$0 sm:$0xff] }
 0x5c7   : > { %v6309_v31 = vadd.f32 %v6272_v6, %v6141_v37  ;;  %v9730_v38 = vpop.f32.mrb[15].mxu1  ;;  %v6511_v46 = vadd.f32 %v6472_v59, %v6308_v60 }
 0x5c8   : > { %v6504_v27 = vpop.f32.mrb[36].mxu0 }
 0x5c9   : > { %v6512_v55 = vadd.f32 %v6475_v2, %v6309_v31  ;;  %v9781_v25 = vpop.f32.mrb[37].mxu0 }
 0x5ca   : > { %v6507_v18 = vpop.f32.mrb[38].mxu0 }
 0x5cb   : > { %v9782_v14 = vpop.f32.mrb[39].mxu0 }
 0x5cc   : > { %v6277_v21 = vpop.f32.mrb[16].mxu1 }
 0x5cd   : > { %v6310_v34 = vadd.f32 %v6277_v21, %v6142_v4  ;;  %v9733_v49 = vpop.f32.mrb[17].mxu1 }
 0x5ce   : > { %v6280_v15 = vpop.f32.mrb[18].mxu1 }
 0x5cf   : > { %v6311_v8 = vadd.f32 %v6280_v15, %v6143_v29  ;;  %v9734_v32 = vpop.f32.mrb[19].mxu1  ;;  %v6513_v23 = vadd.f32 %v6480_v28, %v6310_v34 }
 0x5d0   : > { %v6850_v47 = vpop.f32.mrb[40].mxu0 }
 0x5d1   : > { %v12826_v58 = vadd.f32 %v6483_v24, %v6311_v8  ;;  %v9837_v56 = vpop.f32.mrb[41].mxu0 }
 0x5d2   : > { %v6853_v3 = vpop.f32.mrb[42].mxu0 }
 0x5d3   : > { %v9838_v37 = vpop.f32.mrb[43].mxu0 }
 0x5d4   : > { %v6285_v45 = vpop.f32.mrb[20].mxu1 }
 0x5d5   : > { %v6312_v59 = vadd.f32 %v6285_v45, %v6144_v7  ;;  %v9737_v26 = vpop.f32.mrb[21].mxu1 }
 0x5d6   : > { %v6288_v2 = vpop.f32.mrb[22].mxu1 }
 0x5d7   : > { %v6313_v0 = vadd.f32 %v6288_v2, %v6145_v40  ;;  %v9738_v42 = vpop.f32.mrb[23].mxu1  ;;  %v6515_v52 = vadd.f32 %v6488_v41, %v6312_v59 }
 0x5d8   : > { %v6858_v30 = vpop.f32.mrb[44].mxu0 }
 0x5d9   : > { %v12828_v4 = vadd.f32 %v6491_v62, %v6313_v0  ;;  %v9841_v22 = vpop.f32.mrb[45].mxu0 }
 0x5da   : > { %v6861_v29 = vpop.f32.mrb[46].mxu0 }
 0x5db   : > { %v9842_v19 = vpop.f32.mrb[47].mxu0 }
 0x5dc   : > { %v6293_v28 = vpop.f32.mrb[24].mxu1 }
 0x5dd   : > { %v6314_v20 = vadd.f32 %v6293_v28, %v6146_v39  ;;  %v9741_v24 = vpop.f32.mrb[25].mxu1 }
 0x5de   : > { %v6296_v10 = vpop.f32.mrb[26].mxu1 }
 0x5df   : > { %v6315_v35 = vadd.f32 %v6296_v10, %v6147_v48  ;;  %v9742_v44 = vpop.f32.mrb[27].mxu1  ;;  %v12830_v51 = vadd.f32 %v6496_v36, %v6314_v20 }
 0x5e0   : > { %v6866_v7 = vpop.f32.mrb[48].mxu0 }
 0x5e1   : > { %v12832_v54 = vadd.f32 %v6499_v9, %v6315_v35  ;;  %v9845_v40 = vpop.f32.mrb[49].mxu0 }
 0x5e2   : > { %v6869_v16 = vpop.f32.mrb[50].mxu0 }
 0x5e3   : > { %v9846_v41 = vpop.f32.mrb[51].mxu0 }
 0x5e4   : > { %v6301_v33 = vpop.f32.mrb[28].mxu1 }
 0x5e5   : > { %v6316_v62 = vadd.f32 %v6301_v33, %v6148_v43  ;;  %v9745_v12 = vpop.f32.mrb[29].mxu1 }
 0x5e6   : > { %v6304_v5 = vpop.f32.mrb[30].mxu1 }
 0x5e7   : > { %v6317_v63 = vadd.f32 %v6304_v5, %v6149_v61  ;;  %v9746_v13 = vpop.f32.mrb[31].mxu1  ;;  %v12834_v57 = vadd.f32 %v6504_v27, %v6316_v62 }
 0x5e8   : > { %v6874_v39 = vpop.f32.mrb[52].mxu0 }
 0x5e9   : > { %v12836_v53 = vadd.f32 %v6507_v18, %v6317_v63  ;;  %v9849_v48 = vpop.f32.mrb[53].mxu0 }
 0x5ea   : > { %v6877_v36 = vpop.f32.mrb[54].mxu0 }
 0x5eb   : > { %v9850_v11 = vpop.f32.mrb[55].mxu0 }
 0x5ec   : > { %v6682_v50 = vpop.f32.mrb[32].mxu1 }
 0x5ed   : > { %v6721_v9 = vadd.f32 %v6682_v50, %v6511_v46  ;;  %v9801_v60 = vpop.f32.mrb[33].mxu1 }
 0x5ee   : > { %v6685_v43 = vpop.f32.mrb[34].mxu1 }
 0x5ef   : > { %v6889_v6 = vadd.f32 %v6850_v47, %v6721_v9  ;;  %v6722_v61 = vadd.f32 %v6685_v43, %v6512_v55  ;;  %v9802_v31 = vpop.f32.mrb[35].mxu1 }
 0x5f0   : > { %v6882_v25 = vpop.f32.mrb[56].mxu0 }
 0x5f1   : > { %v6906_v38 = vadd.f32 %v12841_v17, %v6889_v6  ;;  %v6890_v27 = vadd.f32 %v6853_v3, %v6722_v61  ;;  %v9853_v18 = vpop.f32.mrb[57].mxu0 }
 0x5f2   : > { %v6885_v21 = vpop.f32.mrb[58].mxu0  ;;  %v8335_v18 = vld [vmem:[%s10629_s12 + $0x8] sm:$0xff]  }
 0x5f3   : > { %v6907_v14 = vadd.f32 %v12841_v17, %v6890_v27  ;;  %v9854_v34 = vpop.f32.mrb[59].mxu0  ;;  %v6916_v49 = vmax.f32 %v6906_v38, 0.0  ;;  %v7075_v27 = vld [vmem:[%s10629_s12 + $0x4] sm:$0xe] }
 0x5f4   : > { %v6690_v46 = vpop.f32.mrb[36].mxu1 }
 0x5f5   : > { %v6917_v15 = vmax.f32 %v6907_v14, 0.0  ;;  %v6723_v8 = vadd.f32 %v6690_v46, %v6513_v23  ;;  %v9805_v32 = vpop.f32.mrb[37].mxu1  ;;  %v7086_v14 = vunpack.c.l.bf16 %v7075_v27 }
 0x5f6   : > { %v6693_v56 = vpop.f32.mrb[38].mxu1 }
 0x5f7   : > { %v6926_v37 = vpack.c.bf16 %v6917_v15, %v6916_v49  ;;  %v6891_v45 = vadd.f32 %v6858_v30, %v6723_v8  ;;  %v6724_v55 = vadd.f32 %v6693_v56, %v12826_v58  ;;  %v9806_v47 = vpop.f32.mrb[39].mxu1  ;;  %v7109_v34 = vrot.slane %v7086_v14, 3  ;;  %v8336_v49 = vld [vmem:[%s10629_s12 + $0x10] sm:$0xff]  }
 0x5f8   : > { %v8290_v8 = vunpack.c.l.bf16 %v8336_v49 }
 0x5f9   : > { %v6908_v59 = vadd.f32 %v12841_v17, %v6891_v45  ;;  %v6892_v3 = vadd.f32 %v6861_v29, %v6724_v55  ;;  %9872 = vmatmul.mubr.bf16.vlgmr.msra.gmra.mrb[60].mxu0 %v6926_v37  ;;  %v8291_v55 = vunpack.c.h.bf16 %v8336_v49 }
 0x5fb   : > { %v6909_v26 = vadd.f32 %v12841_v17, %v6892_v3  ;;  %v6918_v0 = vmax.f32 %v6908_v59, 0.0 }
 0x5fc   : > { %v6698_v2 = vpop.f32.mrb[40].mxu1 }
 0x5fd   : > { %v6919_v42 = vmax.f32 %v6909_v26, 0.0  ;;  %v6725_v22 = vadd.f32 %v6698_v2, %v6515_v52  ;;  %v9809_v19 = vpop.f32.mrb[41].mxu1  ;;  %v7114_v26 = vrot.slane %v8290_v8, 3 }
 0x5fe   : > { %v6701_v28 = vpop.f32.mrb[42].mxu1 }
 0x5ff   : > { %v6927_v23 = vpack.c.bf16 %v6919_v42, %v6918_v0  ;;  %v6893_v20 = vadd.f32 %v6866_v7, %v6725_v22  ;;  %v6726_v24 = vadd.f32 %v6701_v28, %v12828_v4  ;;  %v9810_v30 = vpop.f32.mrb[43].mxu1  ;;  %v8337_v42 = vld [vmem:[%s10629_s12 + $0x18] sm:$0xff]   ;;  %v7116_v22 = vrot.slane %v8291_v55, 3 }
 0x601   : > { %v6910_v58 = vadd.f32 %v12841_v17, %v6893_v20  ;;  %v6894_v10 = vadd.f32 %v6869_v16, %v6726_v24  ;;  %9876 = vmatmul.mubr.bf16.vlgmr.msra.gmra.mrb[52].mxu1 %v6927_v23  ;;  %v8294_v20 = vunpack.c.l.bf16 %v8337_v42 }
 0x602   : > { %9879 = vmatprep.mubr.msk.bf16.mxu1 %vm10345_vm0, %v10344_v1 }
 0x603   : > { %v6911_v29 = vadd.f32 %v12841_v17, %v6894_v10  ;;  %v6920_v44 = vmax.f32 %v6910_v58, 0.0  ;;  %v7117_v10 = vsel %vm2437_vm5, %v7114_v26, %v7116_v22 }
 0x604   : > { %v6706_v35 = vpop.f32.mrb[44].mxu1 }
 0x605   : > { %v6921_v40 = vmax.f32 %v6911_v29, 0.0  ;;  %v6727_v52 = vadd.f32 %v6706_v35, %v12830_v51  ;;  %v9813_v41 = vpop.f32.mrb[45].mxu1  ;;  %v8295_v29 = vunpack.c.h.bf16 %v8337_v42 }
 0x606   : > { %v6709_v33 = vpop.f32.mrb[46].mxu1 }
 0x607   : > { %v6928_v7 = vpack.c.bf16 %v6921_v40, %v6920_v44  ;;  %v6895_v62 = vadd.f32 %v6874_v39, %v6727_v52  ;;  %v6728_v4 = vadd.f32 %v6709_v33, %v12832_v54  ;;  %v9814_v12 = vpop.f32.mrb[47].mxu1  ;;  %v7118_v52 = vrot.slane %v8294_v20, 3 }
 0x609   : > { %v6912_v16 = vadd.f32 %v12841_v17, %v6895_v62  ;;  %v6896_v5 = vadd.f32 %v6877_v36, %v6728_v4  ;;  %9880 = vmatmul.mubr.bf16.gmra.mrb[56].mxu1 %v6928_v7  ;;  %v8338_v7 = vld [vmem:[%s10629_s12 + $0x20] sm:$0xff]   ;;  %v7120_v62 = vrot.slane %v8295_v29, 3 }
 0x60a   : > { %9883 = vmatprep.mubr.msk.bf16.mxu1 %vm10345_vm0, %v10344_v1 }
 0x60b   : > { %v6913_v63 = vadd.f32 %v12841_v17, %v6896_v5  ;;  %v6922_v48 = vmax.f32 %v6912_v16, 0.0  ;;  %v7119_v16 = vsel %vm2437_vm5, %v7116_v22, %v7118_v52  ;;  %v8298_v5 = vunpack.c.l.bf16 %v8338_v7 }
 0x60c   : > { %v6714_v13 = vpop.f32.mrb[48].mxu1 }
 0x60d   : > { %v6923_v11 = vmax.f32 %v6913_v63, 0.0  ;;  %v6729_v51 = vadd.f32 %v6714_v13, %v12834_v57  ;;  %v9817_v50 = vpop.f32.mrb[49].mxu1 }
 0x60e   : > { %v6717_v39 = vpop.f32.mrb[50].mxu1 }
 0x60f   : > { %v6929_v54 = vpack.c.bf16 %v6923_v11, %v6922_v48  ;;  %v6897_v9 = vadd.f32 %v6882_v25, %v6729_v51  ;;  %v6730_v60 = vadd.f32 %v6717_v39, %v12836_v53  ;;  %v9818_v36 = vpop.f32.mrb[51].mxu1  ;;  %v8286_v25 = vunpack.c.l.bf16 %v8335_v18 }
 0x610   : > { %v8287_v53 = vunpack.c.h.bf16 %v8335_v18  ;;  %v7121_v11 = vsel %vm2437_vm5, %v7118_v52, %v7120_v62  ;;  %v8299_v51 = vunpack.c.h.bf16 %v8338_v7 }
 0x611   : > { %v6914_v43 = vadd.f32 %v12841_v17, %v6897_v9  ;;  %v6898_v6 = vadd.f32 %v6885_v21, %v6730_v60  ;;  %9884 = vmatmul.mubr.bf16.gmra.mrb[60].mxu1 %v6929_v54  ;;  %v7110_v46 = vrot.slane %v8286_v25, 3  ;;  %v12871_v21 = vld [vmem:[%s12933_s9] ss:$0 sm:$0xff]  ;;  %v7122_v9 = vrot.slane %v8298_v5, 3 }
 0x612   : > { %9887 = vmatprep.mubr.msk.bf16.mxu1 %vm10345_vm0, %v10344_v1  ;;  %v7112_v1 = vrot.slane %v8287_v53, 3 }
 0x613   : > { %v6915_v61 = vadd.f32 %v12841_v17, %v6898_v6  ;;  %v6924_v57 = vmax.f32 %v6914_v43, 0.0  ;;  %v7111_v15 = vsel %vm2437_vm5, %v7109_v34, %v7110_v46  ;;  %v7084_v43 = vld [vmem:[%s10629_s12 + $0x28] sm:$0xf]  ;;  %v7123_v18 = vsel %vm2437_vm5, %v7120_v62, %v7122_v9 }
 0x614   : > { %v7113_v45 = vsel %vm2437_vm5, %v7110_v46, %v7112_v1  ;;  %v7115_v23 = vsel %vm2437_vm5, %v7112_v1, %v7114_v26  ;;  %v7095_v25 = vunpack.c.l.bf16 %v7084_v43 }
 0x615   : > { %v6925_v31 = vmax.f32 %v6915_v61, 0.0  ;;  %v7124_v61 = vrot.slane %v8299_v51, 3 }
 0x616   : > { %v7126_v8 = vrot.slane %v7095_v25, 3 }
 0x617   : > { %v6930_v38 = vpack.c.bf16 %v6925_v31, %v6924_v57  ;;  %v7125_v46 = vsel %vm2437_vm5, %v7122_v9, %v7124_v61 }
 0x618   : > { %v7127_v26 = vsel %vm2437_vm5, %v7124_v61, %v7126_v8 }
 0x619   : > { %9888 = vmatmul.mubr.bf16.gmra.mrb[64].mxu1 %v6930_v38  ;;  %v7085_v38 = vld [vmem:[%s10629_s12 + $0x2c] sm:$0x3] }
 0x61a   : > { %v7096_v49 = vunpack.c.l.bf16 %v7085_v38 }
 0x61c   : > { %v7128_v55 = vrot.slane %v7096_v49, 3 }
 0x61e   : > { %v7129_v22 = vsel %vm2437_vm5, %v7126_v8, %v7128_v55 }
 0x6cc   : > { %v7036_v17 = vpop.f32.mrb[60].mxu0 }
 0x6cd   : > { %v7037_v32 = vadd.f32 %v12871_v21, %v7036_v17  ;;  %v9873_v56 = vpop.f32.mrb[61].mxu0 }
 0x6ce   : > { %v7039_v37 = vpop.f32.mrb[62].mxu0 }
 0x6cf   : > { %v7140_v47 = vadd.f32 %v7111_v15, %v7037_v32  ;;  %v7040_v59 = vadd.f32 %v12871_v21, %v7039_v37  ;;  %v9874_v3 = vpop.f32.mrb[63].mxu0 }
 0x6d1   : > { %v7150_v2 = vmax.f32 %v7140_v47, 0.0  ;;  %v7141_v0 = vadd.f32 %v7113_v45, %v7040_v59 }
 0x6d3   : > { %v7151_v19 = vmax.f32 %v7141_v0, 0.0 }
 0x6d4   : > { %v7044_v28 = vpop.f32.mrb[52].mxu1 }
 0x6d5   : > { %7161 = vst [vmem:[#allocation3 + $0x8] sm:$0xff] %v7151_v19  ;;  %v7045_v24 = vadd.f32 %v12871_v21, %v7044_v28  ;;  %v9877_v30 = vpop.f32.mrb[53].mxu1 }
 0x6d6   : > { %v7047_v58 = vpop.f32.mrb[54].mxu1 }
 0x6d7   : > { %v7142_v35 = vadd.f32 %v7115_v23, %v7045_v24  ;;  %v7048_v44 = vadd.f32 %v12871_v21, %v7047_v58  ;;  %v9878_v40 = vpop.f32.mrb[55].mxu1 }
 0x6d9   : > { %v7152_v41 = vmax.f32 %v7142_v35, 0.0  ;;  %v7143_v33 = vadd.f32 %v7117_v10, %v7048_v44 }
 0x6db   : > { %7162 = vst [vmem:[#allocation3 + $0x10] sm:$0xff] %v7152_v41  ;;  %v7153_v4 = vmax.f32 %v7143_v33, 0.0 }
 0x6dc   : > { %v7052_v12 = vpop.f32.mrb[56].mxu1 }
 0x6dd   : > { %7163 = vst [vmem:[#allocation3 + $0x18] sm:$0xff] %v7153_v4  ;;  %v7053_v63 = vadd.f32 %v12871_v21, %v7052_v12  ;;  %v9881_v13 = vpop.f32.mrb[57].mxu1 }
 0x6de   : > { %v7055_v48 = vpop.f32.mrb[58].mxu1 }
 0x6df   : > { %v7144_v50 = vadd.f32 %v7119_v16, %v7053_v63  ;;  %v7056_v39 = vadd.f32 %v12871_v21, %v7055_v48  ;;  %v9882_v54 = vpop.f32.mrb[59].mxu1 }
 0x6e1   : > { %v7154_v60 = vmax.f32 %v7144_v50, 0.0  ;;  %v7145_v36 = vadd.f32 %v7121_v11, %v7056_v39 }
 0x6e2   : > { %v7173_v6 = vld [vmem:[#allocation3 + $0xa] sm:$0xff] }
 0x6e3   : > { %v8303_v57 = vpack.c.bf16 %v7173_v6, %v7150_v2  ;;  %7164 = vst [vmem:[#allocation3 + $0x20] sm:$0xff] %v7154_v60  ;;  %v7155_v31 = vmax.f32 %v7145_v36, 0.0 }
 0x6e4   : > { %v7060_v27 = vpop.f32.mrb[60].mxu1  ;;  %v7176_v37 = vld [vmem:[#allocation3 + $0x14] sm:$0xff] }
 0x6e5   : > { %8304 = vst [vmem:[%s12894_s30] sm:$0xff] %v8303_v57   ;;  %v7061_v14 = vadd.f32 %v12871_v21, %v7060_v27  ;;  %v9885_v53 = vpop.f32.mrb[61].mxu1 }
 0x6e6   : > { %v7063_v34 = vpop.f32.mrb[62].mxu1 }
 0x6e7   : > { %v7146_v1 = vadd.f32 %v7123_v18, %v7061_v14  ;;  %v7064_v17 = vadd.f32 %v12871_v21, %v7063_v34  ;;  %v9886_v15 = vpop.f32.mrb[63].mxu1 }
 0x6e9   : > { %v7156_v32 = vmax.f32 %v7146_v1, 0.0  ;;  %v7147_v56 = vadd.f32 %v7125_v46, %v7064_v17 }
 0x6ea   : > { %v7179_v45 = vld [vmem:[#allocation3 + $0x1e] sm:$0xff] }
 0x6eb   : > { %v8308_v47 = vpack.c.bf16 %v7179_v45, %v7176_v37  ;;  %7166 = vst [vmem:[#allocation3 + $0x30] sm:$0xff] %v7156_v32  ;;  %v7157_v59 = vmax.f32 %v7147_v56, 0.0 }
 0x6ec   : > { %v7068_v3 = vpop.f32.mrb[64].mxu1 }
 0x6ed   : > { %8339 = vst [vmem:[%s12894_s30 + $0x8] sm:$0xff] %v8308_v47   ;;  %7167 = vst [vmem:[#allocation3 + $0x38] sm:$0xff] %v7157_v59  ;;  %v7069_v2 = vadd.f32 %v12871_v21, %v7068_v3  ;;  %v9889_v0 = vpop.f32.mrb[65].mxu1 }
 0x6ee   : > { %v7071_v42 = vpop.f32.mrb[66].mxu1 }
 0x6ef   : > { %v7148_v19 = vadd.f32 %v7127_v26, %v7069_v2  ;;  %v7072_v28 = vadd.f32 %v12871_v21, %v7071_v42  ;;  %v9890_v23 = vpop.f32.mrb[67].mxu1 }
 0x6f1   : > { %v7158_v20 = vmax.f32 %v7148_v19, 0.0  ;;  %v7149_v24 = vadd.f32 %v7129_v22, %v7072_v28 }
 0x6f3   : > { %7168 = vst [vmem:[#allocation3 + $0x40] sm:$0xff] %v7158_v20  ;;  %v7159_v30 = vmax.f32 %v7149_v24, 0.0 }
 0x6f4   : > { %v7185_v58 = vld [vmem:[#allocation3 + $0x32] sm:$0xff] }
 0x6f5   : > { %v8313_v10 = vpack.c.bf16 %v7185_v58, %v7155_v31  ;;  %7169 = vst [vmem:[#allocation3 + $0x48] sm:$0xff] %v7159_v30 }
 0x6f7   : > { %8340 = vst [vmem:[%s12894_s30 + $0x10] sm:$0xff] %v8313_v10  }
 0x6fa   : > { %v7188_v29 = vld [vmem:[#allocation3 + $0x3c] sm:$0xff] }
 0x6fc   : > { %v7191_v35 = vld [vmem:[#allocation3 + $0x46] sm:$0xff] }
 0x6fd   : > { %v8318_v44 = vpack.c.bf16 %v7191_v35, %v7188_v29 }
 0x6ff   : > { %8341 = vst [vmem:[%s12894_s30 + $0x18] sm:$0xff] %v8318_v44  }
 0x700 PF: > { %s20_s17 = sadd.s32 1, %s10342_s17   ;;  %s12939_s13 = smov %s10334_s15 }
 0x701   : > { %p17_p5 = scmp.ge.s32.totalorder %s20_s17, 18   ;;  %s12940_s14 = smov %s10338_s16 }
 0x702   : > { %s12941_s15 = smov %s12944_s18  ;;  %s12942_s16 = smov %s12948_s19 }
 0x703   :  { %19 = sbr.rel (!%p17_p5) target bundleno = 3 (0x3), region = 122 }

</bundles_post_ra>
